<compile_context>
chip_gen: v5e
topology: v5e:2x2
jax: 0.10.0
libtpu: 0.0.40
codegen_flags: <defaults>
</compile_context>

<pallas_src>
import functools
import numpy as np

import jax
import jax.numpy as jnp
from jax import lax
from jax.experimental import pallas as pl
from jax.experimental.pallas import tpu as pltpu

# ------------------------------ model config --------------------------------
IN_CH, OUT_CH, NTD, FIRST, MAXC = 4, 3, 2, 8, 1024
H0 = W0 = 16                      # spatial size of the (2, 4, 16, 16) input
IN_PAD = 8                        # input channels zero-padded to a sublane multiple

# Per level: (W, valid flattened H*W, padded lane count L).
LVL = ((16, 256, 256), (8, 64, 128), (4, 16, 128))

_WBUF_LANES = 384                 # lane width of the consolidated weight buffer
_MASK_STRIDE = 16                 # rows reserved per level in the mask table


# --------------------------- roll convention probe ---------------------------
@functools.lru_cache(maxsize=None)
def _roll_like_jnp():
    """True iff pltpu.roll(x, s, ax) == jnp.roll(x, s, ax) (out[i] = in[i-s]).

    Resolved once, eagerly (outside any jit trace), so the static shift amounts
    baked into the kernel always match the hardware semantics.
    """
    def k(x_ref, o_ref):
        o_ref[...] = pltpu.roll(x_ref[...], 1, 1)

    try:
        x = jnp.zeros((8, 128), jnp.float32).at[0, 0].set(1.0)
        y = np.asarray(jax.block_until_ready(
            pl.pallas_call(k, out_shape=jax.ShapeDtypeStruct((8, 128), jnp.float32))(x)))
        if y[0, 1] == 1.0:
            return True
        if y[0, 127] == 1.0:
            return False
    except Exception:  # pragma: no cover - fall back to the jnp convention
        pass
    return True


# ------------------------------- parameters ----------------------------------
def build_params(key):
    """Random parameters matching the channel plan of the PyTorch module."""
    keys = iter(jax.random.split(key, 64))

    def conv_p(cin, cout, k=3):
        w = jax.random.normal(next(keys), (k, k, cin, cout), jnp.float32)
        w = w / float(np.sqrt(k * k * cin))
        b = jax.random.normal(next(keys), (cout,), jnp.float32) * 0.01
        return {'w': w, 'b': b}

    raw = {}
    inter = (IN_CH + FIRST) // 2
    raw['cb0'] = [conv_p(IN_CH, inter), conv_p(inter, FIRST)]
    chans, c = [FIRST], FIRST
    for i in range(NTD):
        out_c = min(2 * c, MAXC)
        inter = (c + out_c) // 2
        raw[f'cb{i + 1}'] = [conv_p(c, inter), conv_p(inter, out_c)]
        chans.append(out_c)
        c = out_c
    for i in reversed(range(NTD)):
        out_c = chans[i]
        wt = jax.random.normal(next(keys), (2, 2, c, out_c), jnp.float32)
        wt = wt / float(np.sqrt(4 * c))
        bt = jax.random.normal(next(keys), (out_c,), jnp.float32) * 0.01
        raw[f'tu{i}'] = {'w': wt, 'b': bt}
        raw[f'eb{i}'] = [conv_p(2 * out_c, out_c), conv_p(out_c, out_c)]
        c = out_c
    wo = jax.random.normal(next(keys), (c, OUT_CH), jnp.float32) / float(np.sqrt(c))
    bo = jax.random.normal(next(keys), (OUT_CH,), jnp.float32) * 0.01
    raw['out0'] = {'w': wo, 'b': bo}
    return raw


# ------------------------------ weight packing --------------------------------
def _ceil8(n):
    return -(-n // 8) * 8


def _pad_conv(p):
    """Zero-pad a conv param so cin/cout are multiples of 8 (aligned stacking)."""
    w, b = p['w'], p['b']
    cin, cout = w.shape[-2], w.shape[-1]
    cin_t, cout_t = _ceil8(cin), _ceil8(cout)
    w = jnp.pad(w, [(0, 0)] * (w.ndim - 2) + [(0, cin_t - cin), (0, cout_t - cout)])
    b = jnp.pad(b, ((0, cout_t - cout),))
    return {'w': w, 'b': b}


def _pack_taps(w):
    """(kh, kw, Cin, Cout) -> (Cout, kh*kw*Cin), tap-major columns."""
    kh, kw, cin, cout = w.shape
    return jnp.transpose(w.reshape(kh * kw, cin, cout), (2, 0, 1)).reshape(cout, kh * kw * cin)


def _with_bias(m, b):
    return jnp.concatenate([m, b[:, None]], axis=1)


def pack_params(raw):
    """Fold biases, stack taps and consolidate all weights into ONE bf16 buffer."""
    cb0a, cb0b = _pad_conv(raw['cb0'][0]), _pad_conv(raw['cb0'][1])
    cb1a, cb1b = _pad_conv(raw['cb1'][0]), _pad_conv(raw['cb1'][1])
    cb2a, cb2b = _pad_conv(raw['cb2'][0]), _pad_conv(raw['cb2'][1])
    tu1, tu0 = raw['tu1'], raw['tu0']
    eb1a, eb1b = raw['eb1'][0], raw['eb1'][1]
    eb0a, eb0b = raw['eb0'][0], raw['eb0'][1]

    def conv_mat(p):
        return _with_bias(_pack_taps(p['w']), p['b'])

    def eb_mat(p, c_up):
        # Skip-concat order is [upsampled, shortcut]; split K in the same order.
        w, b = p['w'], p['b']
        m = jnp.concatenate([_pack_taps(w[:, :, :c_up, :]),
                             _pack_taps(w[:, :, c_up:, :])], axis=1)
        return _with_bias(m, b)

    mats = {
        'cb0a': conv_mat(cb0a), 'cb0b': conv_mat(cb0b),
        'cb1a': conv_mat(cb1a), 'cb1b': conv_mat(cb1b),
        'cb2a': conv_mat(cb2a), 'cb2b': conv_mat(cb2b),
        'tu1': conv_mat(tu1),
        'eb1a': eb_mat(eb1a, tu1['w'].shape[-1]), 'eb1b': conv_mat(eb1b),
        'tu0': conv_mat(tu0),
        'eb0a': eb_mat(eb0a, tu0['w'].shape[-1]), 'eb0b': conv_mat(eb0b),
        'out': _with_bias(jnp.transpose(raw['out0']['w']), raw['out0']['b']),
    }

    order = ['cb0a', 'cb0b', 'cb1a', 'cb1b', 'cb2a', 'cb2b',
             'tu1', 'eb1a', 'eb1b', 'tu0', 'eb0a', 'eb0b', 'out']
    plan, blocks, row = {}, [], 0
    for name in order:
        m = mats[name]
        cout, k = int(m.shape[0]), int(m.shape[1])
        assert k <= _WBUF_LANES, (name, k)
        plan[name] = (row, cout, k)
        pad_r = -cout % 16                          # bf16 sublane tile = 16 rows
        blocks.append(jnp.pad(m, ((0, pad_r), (0, _WBUF_LANES - k))))
        row += cout + pad_r
    wbuf = jnp.concatenate(blocks, axis=0).astype(jnp.bfloat16)

    assert plan['cb0a'][2] == 9 * IN_PAD + 1        # kernel stacks IN_PAD channels
    assert plan['out'][1] == OUT_CH
    return wbuf, plan


# ------------------------- constant spatial operators --------------------------
def build_masks():
    """(3*16, 256) f32 table: row lvl*16+t = tap-t validity, lvl*16+9 = lane validity."""
    m = np.zeros((_MASK_STRIDE * len(LVL), 256), np.float32)
    for lvl, (w, hw, l) in enumerate(LVL):
        base = _MASK_STRIDE * lvl
        p = np.arange(l)
        pi, pj = p // w, p % w
        for t in range(9):
            dy, dx = divmod(t, 3)
            ii, jj = pi + dy - 1, pj + dx - 1
            ok = (p < hw) & (ii >= 0) & (ii < w) & (jj >= 0) & (jj < w)
            m[base + t, :l] = ok
        m[base + 9, :l] = (p < hw)
    return jnp.asarray(m)


def _pool_matrix(w, l_in, l_out):
    wo = w // 2
    p = np.zeros((l_in, l_out), np.float32)
    for i in range(wo):
        for j in range(wo):
            for a in range(2):
                for b in range(2):
                    p[(2 * i + a) * w + (2 * j + b), i * wo + j] = 0.25
    return p


def _scatter_matrix(w, l_in, l_out):
    wo = 2 * w
    s = np.zeros((4, l_in, l_out), np.float32)
    for a in range(2):
        for b in range(2):
            for i in range(w):
                for j in range(w):
                    s[a * 2 + b, i * w + j, (2 * i + a) * wo + (2 * j + b)] = 1.0
    return s


def build_operators():
    (w0, _, l0), (w1, _, l1), (w2, _, l2) = LVL
    poolbuf = np.concatenate([_pool_matrix(w0, l0, l1), _pool_matrix(w1, l1, l2)], axis=0)
    scat1 = _scatter_matrix(w2, l2, l1)             # level 2 -> level 1
    scat0 = _scatter_matrix(w1, l1, l0)             # level 1 -> level 0
    return (jnp.asarray(poolbuf, jnp.bfloat16),
            jnp.asarray(scat1, jnp.bfloat16),
            jnp.asarray(scat0, jnp.bfloat16))


# ------------------------------ fused kernel ----------------------------------
def _make_kernel(plan, roll_like_jnp):
    l0 = LVL[0][2]
    pool_rows = (0, l0)                             # row offsets of pool0 / pool1

    def kernel(x_ref, w_ref, mask_ref, pool_ref, scat1_ref, scat0_ref, o_ref):
        def wmat(name):
            off, cout, k = plan[name]
            return w_ref[pl.ds(off, cout), pl.ds(0, k)]

        def mrow(lvl, r, l):
            return mask_ref[pl.ds(_MASK_STRIDE * lvl + r, 1), pl.ds(0, l)]

        def taps(x, lvl):
            w, _, l = LVL[lvl]
            parts = []
            for t in range(9):
                dy, dx = divmod(t, 3)
                s = (dy - 1) * w + (dx - 1)
                amt = ((-s) % l) if roll_like_jnp else (s % l)
                xs = x if s == 0 else pltpu.roll(x, amt, 1)
                parts.append(xs * mrow(lvl, t, l))
            return parts

        def conv(parts, lvl, name, relu=True):
            l = LVL[lvl][2]
            # last row = valid-lane mask -> folds the bias in, keeps pad lanes 0.
            xs = jnp.concatenate(parts + [mrow(lvl, 9, l)], axis=0).astype(jnp.bfloat16)
            y = jnp.dot(wmat(name), xs, preferred_element_type=jnp.float32)
            return jnp.maximum(y, 0.0) if relu else y

        def up(x, scat_ref, lvl_out, name):
            l = LVL[lvl_out][2]
            xb = x.astype(jnp.bfloat16)
            parts = [jnp.dot(xb, scat_ref[t], preferred_element_type=jnp.float32)
                     for t in range(4)]
            xs = jnp.concatenate(parts + [mrow(lvl_out, 9, l)], axis=0).astype(jnp.bfloat16)
            return jnp.dot(wmat(name), xs, preferred_element_type=jnp.float32)

        def pool(x, lvl_in):
            l_in = LVL[lvl_in][2]
            pm = pool_ref[pl.ds(pool_rows[lvl_in], l_in), :]
            return jnp.dot(x.astype(jnp.bfloat16), pm, preferred_element_type=jnp.float32)

        x = x_ref[0]                                     # (IN_PAD, 256) f32

        # -- contracting path --
        h = conv(taps(x, 0), 0, 'cb0a')
        s0 = conv(taps(h, 0), 0, 'cb0b')                 # (8, 256)
        h = pool(s0, 0)                                  # (8, 128)
        h = conv(taps(h, 1), 1, 'cb1a')
        s1 = conv(taps(h, 1), 1, 'cb1b')                 # (16, 128)
        h = pool(s1, 1)                                  # (16, 128)
        h = conv(taps(h, 2), 2, 'cb2a')
        h = conv(taps(h, 2), 2, 'cb2b')                  # (32, 128)

        # -- expanding path (skip concat folded into the stacked-K matmul) --
        u = up(h, scat1_ref, 1, 'tu1')                   # (16, 128)
        h = conv(taps(u, 1) + taps(s1, 1), 1, 'eb1a')
        h = conv(taps(h, 1), 1, 'eb1b')                  # (16, 128)
        u = up(h, scat0_ref, 0, 'tu0')                   # (8, 256)
        h = conv(taps(u, 0) + taps(s0, 0), 0, 'eb0a')
        h = conv(taps(h, 0), 0, 'eb0b')                  # (8, 256)

        # -- 1x1 output head --
        xs = jnp.concatenate([h, mrow(0, 9, l0)], axis=0).astype(jnp.bfloat16)
        y = jnp.dot(wmat('out'), xs, preferred_element_type=jnp.float32)
        o_ref[0] = y.astype(o_ref.dtype)                 # (3, 256)

    return kernel


# -------------------------------- forward -------------------------------------
def make_unet_forward(plan, roll_like_jnp):
    kernel = _make_kernel(plan, roll_like_jnp)

    @jax.jit
    def forward(x_nchw, wbuf, maskbuf, poolbuf, scat1, scat0):
        nb = x_nchw.shape[0]
        l0 = LVL[0][2]
        x_flat = x_nchw.reshape(nb, IN_CH, l0)
        x_flat = jnp.pad(x_flat, ((0, 0), (0, IN_PAD - IN_CH), (0, 0)))

        def whole(a):
            idx = (0,) * a.ndim
            return pl.BlockSpec(a.shape, lambda b, _i=idx: _i)

        consts = (wbuf, maskbuf, poolbuf, scat1, scat0)
        y = pl.pallas_call(
            kernel,
            grid=(nb,),
            in_specs=[pl.BlockSpec((1, IN_PAD, l0), lambda b: (b, 0, 0))]
                     + [whole(a) for a in consts],
            out_specs=pl.BlockSpec((1, OUT_CH, l0), lambda b: (b, 0, 0)),
            out_shape=jax.ShapeDtypeStruct((nb, OUT_CH, l0), jnp.float32),
            compiler_params=pltpu.CompilerParams(
                dimension_semantics=("parallel",),      # one image per TC on v7x
            ),
        )(x_flat, *consts)
        return y.reshape(nb, OUT_CH, H0, W0)            # NCHW like the PyTorch module

    return forward


# --------------------------- plain-XLA reference -------------------------------
_HI = jax.lax.Precision.HIGHEST


def _bf16_round(tree):
    return jax.tree_util.tree_map(
        lambda a: a.astype(jnp.bfloat16).astype(jnp.float32), tree)


def ref_forward(x_nchw, raw):
    def conv(x, p, relu=True):
        y = lax.conv_general_dilated(
            x, p['w'], window_strides=(1, 1), padding=((1, 1), (1, 1)),
            dimension_numbers=('NHWC', 'HWIO', 'NHWC'), precision=_HI)
        y = y + p['b']
        return jnp.maximum(y, 0.0) if relu else y

    def block(x, ps):
        return conv(conv(x, ps[0]), ps[1])

    def pool(x):
        n, h, w, c = x.shape
        return x.reshape(n, h // 2, 2, w // 2, 2, c).mean(axis=(2, 4))

    def conv_t(x, p):
        y = jnp.einsum('nhwi,abio->nhawbo', x, p['w'], precision=_HI)
        n, h, _, w, _, co = y.shape
        return y.reshape(n, 2 * h, 2 * w, co) + p['b']

    x = jnp.transpose(x_nchw, (0, 2, 3, 1))
    shortcuts, out = [], x
    for i in range(NTD):
        out = block(out, raw[f'cb{i}'])
        shortcuts.append(out)
        out = pool(out)
    out = block(out, raw[f'cb{NTD}'])
    for i in reversed(range(NTD)):
        out = conv_t(out, raw[f'tu{i}'])
        out = block(jnp.concatenate([out, shortcuts[i]], axis=-1), raw[f'eb{i}'])
    out = jnp.einsum('nhwc,co->nhwo', out, raw['out0']['w'], precision=_HI)
    out = out + raw['out0']['b']
    return jnp.transpose(out, (0, 3, 1, 2))


# ----------------------------------- main --------------------------------------
if __name__ == "__main__":
    key = jax.random.PRNGKey(0)
    kx, kp = jax.random.split(key)
    x = jax.random.normal(kx, (2, IN_CH, H0, W0), jnp.float32)   # NCHW like PyTorch

    raw = build_params(kp)
    wbuf, plan = pack_params(raw)
    maskbuf = build_masks()
    poolbuf, scat1, scat0 = build_operators()

    forward = make_unet_forward(plan, _roll_like_jnp())
    y = jax.block_until_ready(forward(x, wbuf, maskbuf, poolbuf, scat1, scat0))

    assert y.shape == (2, OUT_CH, H0, W0), y.shape
    assert bool(jnp.all(jnp.isfinite(y)))

    # Validate against a plain-XLA f32 reference that uses the SAME bf16-rounded
    # weights; the remaining discrepancy is bf16 activation rounding at the MXU
    # inputs (~0.1-0.2% rms per layer), so a few-percent tolerance is the right
    # scale and still cleanly catches structural errors (O(1) relative error).
    y_ref = jax.jit(ref_forward)(x, _bf16_round(raw))
    rel = float(jnp.linalg.norm(y - y_ref) / (jnp.linalg.norm(y_ref) + 1e-12))
    assert rel < 0.04, f"kernel/reference mismatch: rel_err={rel}"

    print("KERNEL_OK")
</pallas_src>

<mosaic_0001>
module attributes {stable_mosaic.version = 11 : i64} {
  func.func @k(%arg0: memref<8x128xf32, #tpu.memory_space<vmem>>, %arg1: memref<8x128xf32, #tpu.memory_space<vmem>>) attributes {dimension_semantics = [], scalar_prefetch = 0 : i64, scratch_operands = 0 : i64, tpu.core_type = #tpu.core_type<tc>} {
    %c0 = arith.constant 0 : index
    %c0_0 = arith.constant 0 : index
    %0 = vector.load %arg0[%c0, %c0_0] : memref<8x128xf32, #tpu.memory_space<vmem>>, vector<8x128xf32>
    %c1_i32 = arith.constant 1 : i32
    %1 = tpu.dynamic_rotate %0 by %c1_i32 dim 1 : vector<8x128xf32>, i32 -> vector<8x128xf32>
    %c0_1 = arith.constant 0 : index
    %c0_2 = arith.constant 0 : index
    %2 = vector.load %arg1[%c0_1, %c0_2] : memref<8x128xf32, #tpu.memory_space<vmem>>, vector<8x128xf32>
    tpu.vector_store %arg1[%c0_1, %c0_2], %1 {strides = array<i32>} : memref<8x128xf32, #tpu.memory_space<vmem>>, vector<8x128xf32>,
    return
  }
}

module attributes {stable_mosaic.version = 11 : i64} {
  func.func @kernel(%arg0: i32, %arg1: memref<1x8x256xf32, #tpu.memory_space<vmem>>, %arg2: memref<240x384xbf16, #tpu.memory_space<vmem>>, %arg3: memref<48x256xf32, #tpu.memory_space<vmem>>, %arg4: memref<384x128xbf16, #tpu.memory_space<vmem>>, %arg5: memref<4x128x128xbf16, #tpu.memory_space<vmem>>, %arg6: memref<4x128x256xbf16, #tpu.memory_space<vmem>>, %arg7: memref<1x3x256xf32, #tpu.memory_space<vmem>>) attributes {dimension_semantics = [#tpu.dimension_semantics<parallel>], iteration_bounds = array<i64: 2>, scalar_prefetch = 0 : i64, scratch_operands = 0 : i64, tpu.core_type = #tpu.core_type<tc>, window_params = [{transform_indices = @transform_0, window_bounds = array<i64: 1, 8, 256>}, {pipeline_mode = #tpu.pipeline_mode<synchronous>, transform_indices = @transform_1, window_bounds = array<i64: 240, 384>}, {pipeline_mode = #tpu.pipeline_mode<synchronous>, transform_indices = @transform_2, window_bounds = array<i64: 48, 256>}, {pipeline_mode = #tpu.pipeline_mode<synchronous>, transform_indices = @transform_3, window_bounds = array<i64: 384, 128>}, {pipeline_mode = #tpu.pipeline_mode<synchronous>, transform_indices = @transform_4, window_bounds = array<i64: 4, 128, 128>}, {pipeline_mode = #tpu.pipeline_mode<synchronous>, transform_indices = @transform_5, window_bounds = array<i64: 4, 128, 256>}, {transform_indices = @transform_6, window_bounds = array<i64: 1, 3, 256>}]} {
    %c0 = arith.constant 0 : index
    %c0_0 = arith.constant 0 : index
    %c0_1 = arith.constant 0 : index
    %0 = vector.load %arg1[%c0, %c0_0, %c0_1] : memref<1x8x256xf32, #tpu.memory_space<vmem>>, vector<1x8x256xf32>
    %1 = vector.shape_cast %0 : vector<1x8x256xf32> to vector<8x256xf32>
    %c17_i32 = arith.constant 17 : i32
    %2 = tpu.dynamic_rotate %1 by %c17_i32 dim 1 : vector<8x256xf32>, i32 -> vector<8x256xf32>
    %c0_2 = arith.constant 0 : index
    %c0_3 = arith.constant 0 : index
    %3 = vector.load %arg3[%c0_2, %c0_3] : memref<48x256xf32, #tpu.memory_space<vmem>>, vector<1x256xf32>
    %4 = vector.broadcast %3 : vector<1x256xf32> to vector<8x256xf32>
    %5 = arith.mulf %2, %4 : vector<8x256xf32>
    %c16_i32 = arith.constant 16 : i32
    %6 = tpu.dynamic_rotate %1 by %c16_i32 dim 1 : vector<8x256xf32>, i32 -> vector<8x256xf32>
    %c1 = arith.constant 1 : index
    %c0_4 = arith.constant 0 : index
    %7 = vector.load %arg3[%c1, %c0_4] : memref<48x256xf32, #tpu.memory_space<vmem>>, vector<1x256xf32>
    %8 = vector.broadcast %7 : vector<1x256xf32> to vector<8x256xf32>
    %9 = arith.mulf %6, %8 : vector<8x256xf32>
    %c15_i32 = arith.constant 15 : i32
    %10 = tpu.dynamic_rotate %1 by %c15_i32 dim 1 : vector<8x256xf32>, i32 -> vector<8x256xf32>
    %c2 = arith.constant 2 : index
    %c0_5 = arith.constant 0 : index
    %11 = vector.load %arg3[%c2, %c0_5] : memref<48x256xf32, #tpu.memory_space<vmem>>, vector<1x256xf32>
    %12 = vector.broadcast %11 : vector<1x256xf32> to vector<8x256xf32>
    %13 = arith.mulf %10, %12 : vector<8x256xf32>
    %c1_i32 = arith.constant 1 : i32
    %14 = tpu.dynamic_rotate %1 by %c1_i32 dim 1 : vector<8x256xf32>, i32 -> vector<8x256xf32>
    %c3 = arith.constant 3 : index
    %c0_6 = arith.constant 0 : index
    %15 = vector.load %arg3[%c3, %c0_6] : memref<48x256xf32, #tpu.memory_space<vmem>>, vector<1x256xf32>
    %16 = vector.broadcast %15 : vector<1x256xf32> to vector<8x256xf32>
    %17 = arith.mulf %14, %16 : vector<8x256xf32>
    %c4 = arith.constant 4 : index
    %c0_7 = arith.constant 0 : index
    %18 = vector.load %arg3[%c4, %c0_7] : memref<48x256xf32, #tpu.memory_space<vmem>>, vector<1x256xf32>
    %19 = vector.broadcast %18 : vector<1x256xf32> to vector<8x256xf32>
    %20 = arith.mulf %1, %19 : vector<8x256xf32>
    %c255_i32 = arith.constant 255 : i32
    %21 = tpu.dynamic_rotate %1 by %c255_i32 dim 1 : vector<8x256xf32>, i32 -> vector<8x256xf32>
    %c5 = arith.constant 5 : index
    %c0_8 = arith.constant 0 : index
    %22 = vector.load %arg3[%c5, %c0_8] : memref<48x256xf32, #tpu.memory_space<vmem>>, vector<1x256xf32>
    %23 = vector.broadcast %22 : vector<1x256xf32> to vector<8x256xf32>
    %24 = arith.mulf %21, %23 : vector<8x256xf32>
    %c241_i32 = arith.constant 241 : i32
    %25 = tpu.dynamic_rotate %1 by %c241_i32 dim 1 : vector<8x256xf32>, i32 -> vector<8x256xf32>
    %c6 = arith.constant 6 : index
    %c0_9 = arith.constant 0 : index
    %26 = vector.load %arg3[%c6, %c0_9] : memref<48x256xf32, #tpu.memory_space<vmem>>, vector<1x256xf32>
    %27 = vector.broadcast %26 : vector<1x256xf32> to vector<8x256xf32>
    %28 = arith.mulf %25, %27 : vector<8x256xf32>
    %c240_i32 = arith.constant 240 : i32
    %29 = tpu.dynamic_rotate %1 by %c240_i32 dim 1 : vector<8x256xf32>, i32 -> vector<8x256xf32>
    %c7 = arith.constant 7 : index
    %c0_10 = arith.constant 0 : index
    %30 = vector.load %arg3[%c7, %c0_10] : memref<48x256xf32, #tpu.memory_space<vmem>>, vector<1x256xf32>
    %31 = vector.broadcast %30 : vector<1x256xf32> to vector<8x256xf32>
    %32 = arith.mulf %29, %31 : vector<8x256xf32>
    %c239_i32 = arith.constant 239 : i32
    %33 = tpu.dynamic_rotate %1 by %c239_i32 dim 1 : vector<8x256xf32>, i32 -> vector<8x256xf32>
    %c8 = arith.constant 8 : index
    %c0_11 = arith.constant 0 : index
    %34 = vector.load %arg3[%c8, %c0_11] : memref<48x256xf32, #tpu.memory_space<vmem>>, vector<1x256xf32>
    %35 = vector.broadcast %34 : vector<1x256xf32> to vector<8x256xf32>
    %36 = arith.mulf %33, %35 : vector<8x256xf32>
    %c9 = arith.constant 9 : index
    %c0_12 = arith.constant 0 : index
    %37 = vector.load %arg3[%c9, %c0_12] : memref<48x256xf32, #tpu.memory_space<vmem>>, vector<1x256xf32>
    %38 = tpu.concatenate %5, %9, %13, %17, %20, %24, %28, %32, %36, %37 in 0 : vector<8x256xf32>, vector<8x256xf32>, vector<8x256xf32>, vector<8x256xf32>, vector<8x256xf32>, vector<8x256xf32>, vector<8x256xf32>, vector<8x256xf32>, vector<8x256xf32>, vector<1x256xf32> -> vector<73x256xf32>
    %39 = arith.truncf %38 : vector<73x256xf32> to vector<73x256xbf16>
    %c0_13 = arith.constant 0 : index
    %c0_14 = arith.constant 0 : index
    %40 = vector.load %arg2[%c0_13, %c0_14] : memref<240x384xbf16, #tpu.memory_space<vmem>>, vector<8x73xbf16>
    %cst = arith.constant dense<0.000000e+00> : vector<8x256xf32>
    %41 = tpu.matmul %40, %39, %cst {dimension_numbers = #tpu.dot_dimension_numbers<[1], [0], [0], [1], [0, 0, 1, 1], [], []>} : vector<8x73xbf16>, vector<73x256xbf16>, vector<8x256xf32> -> vector<8x256xf32>
    %cst_15 = arith.constant 0.000000e+00 : f32
    %42 = vector.broadcast %cst_15 : f32 to vector<8x256xf32>
    %43 = arith.maximumf %41, %42 : vector<8x256xf32>
    %c17_i32_16 = arith.constant 17 : i32
    %44 = tpu.dynamic_rotate %43 by %c17_i32_16 dim 1 : vector<8x256xf32>, i32 -> vector<8x256xf32>
    %c0_17 = arith.constant 0 : index
    %c0_18 = arith.constant 0 : index
    %45 = vector.load %arg3[%c0_17, %c0_18] : memref<48x256xf32, #tpu.memory_space<vmem>>, vector<1x256xf32>
    %46 = vector.broadcast %45 : vector<1x256xf32> to vector<8x256xf32>
    %47 = arith.mulf %44, %46 : vector<8x256xf32>
    %c16_i32_19 = arith.constant 16 : i32
    %48 = tpu.dynamic_rotate %43 by %c16_i32_19 dim 1 : vector<8x256xf32>, i32 -> vector<8x256xf32>
    %c1_20 = arith.constant 1 : index
    %c0_21 = arith.constant 0 : index
    %49 = vector.load %arg3[%c1_20, %c0_21] : memref<48x256xf32, #tpu.memory_space<vmem>>, vector<1x256xf32>
    %50 = vector.broadcast %49 : vector<1x256xf32> to vector<8x256xf32>
    %51 = arith.mulf %48, %50 : vector<8x256xf32>
    %c15_i32_22 = arith.constant 15 : i32
    %52 = tpu.dynamic_rotate %43 by %c15_i32_22 dim 1 : vector<8x256xf32>, i32 -> vector<8x256xf32>
    %c2_23 = arith.constant 2 : index
    %c0_24 = arith.constant 0 : index
    %53 = vector.load %arg3[%c2_23, %c0_24] : memref<48x256xf32, #tpu.memory_space<vmem>>, vector<1x256xf32>
    %54 = vector.broadcast %53 : vector<1x256xf32> to vector<8x256xf32>
    %55 = arith.mulf %52, %54 : vector<8x256xf32>
    %c1_i32_25 = arith.constant 1 : i32
    %56 = tpu.dynamic_rotate %43 by %c1_i32_25 dim 1 : vector<8x256xf32>, i32 -> vector<8x256xf32>
    %c3_26 = arith.constant 3 : index
    %c0_27 = arith.constant 0 : index
    %57 = vector.load %arg3[%c3_26, %c0_27] : memref<48x256xf32, #tpu.memory_space<vmem>>, vector<1x256xf32>
    %58 = vector.broadcast %57 : vector<1x256xf32> to vector<8x256xf32>
    %59 = arith.mulf %56, %58 : vector<8x256xf32>
    %c4_28 = arith.constant 4 : index
    %c0_29 = arith.constant 0 : index
    %60 = vector.load %arg3[%c4_28, %c0_29] : memref<48x256xf32, #tpu.memory_space<vmem>>, vector<1x256xf32>
    %61 = vector.broadcast %60 : vector<1x256xf32> to vector<8x256xf32>
    %62 = arith.mulf %43, %61 : vector<8x256xf32>
    %c255_i32_30 = arith.constant 255 : i32
    %63 = tpu.dynamic_rotate %43 by %c255_i32_30 dim 1 : vector<8x256xf32>, i32 -> vector<8x256xf32>
    %c5_31 = arith.constant 5 : index
    %c0_32 = arith.constant 0 : index
    %64 = vector.load %arg3[%c5_31, %c0_32] : memref<48x256xf32, #tpu.memory_space<vmem>>, vector<1x256xf32>
    %65 = vector.broadcast %64 : vector<1x256xf32> to vector<8x256xf32>
    %66 = arith.mulf %63, %65 : vector<8x256xf32>
    %c241_i32_33 = arith.constant 241 : i32
    %67 = tpu.dynamic_rotate %43 by %c241_i32_33 dim 1 : vector<8x256xf32>, i32 -> vector<8x256xf32>
    %c6_34 = arith.constant 6 : index
    %c0_35 = arith.constant 0 : index
    %68 = vector.load %arg3[%c6_34, %c0_35] : memref<48x256xf32, #tpu.memory_space<vmem>>, vector<1x256xf32>
    %69 = vector.broadcast %68 : vector<1x256xf32> to vector<8x256xf32>
    %70 = arith.mulf %67, %69 : vector<8x256xf32>
    %c240_i32_36 = arith.constant 240 : i32
    %71 = tpu.dynamic_rotate %43 by %c240_i32_36 dim 1 : vector<8x256xf32>, i32 -> vector<8x256xf32>
    %c7_37 = arith.constant 7 : index
    %c0_38 = arith.constant 0 : index
    %72 = vector.load %arg3[%c7_37, %c0_38] : memref<48x256xf32, #tpu.memory_space<vmem>>, vector<1x256xf32>
    %73 = vector.broadcast %72 : vector<1x256xf32> to vector<8x256xf32>
    %74 = arith.mulf %71, %73 : vector<8x256xf32>
    %c239_i32_39 = arith.constant 239 : i32
    %75 = tpu.dynamic_rotate %43 by %c239_i32_39 dim 1 : vector<8x256xf32>, i32 -> vector<8x256xf32>
    %c8_40 = arith.constant 8 : index
    %c0_41 = arith.constant 0 : index
    %76 = vector.load %arg3[%c8_40, %c0_41] : memref<48x256xf32, #tpu.memory_space<vmem>>, vector<1x256xf32>
    %77 = vector.broadcast %76 : vector<1x256xf32> to vector<8x256xf32>
    %78 = arith.mulf %75, %77 : vector<8x256xf32>
    %c9_42 = arith.constant 9 : index
    %c0_43 = arith.constant 0 : index
    %79 = vector.load %arg3[%c9_42, %c0_43] : memref<48x256xf32, #tpu.memory_space<vmem>>, vector<1x256xf32>
    %80 = tpu.concatenate %47, %51, %55, %59, %62, %66, %70, %74, %78, %79 in 0 : vector<8x256xf32>, vector<8x256xf32>, vector<8x256xf32>, vector<8x256xf32>, vector<8x256xf32>, vector<8x256xf32>, vector<8x256xf32>, vector<8x256xf32>, vector<8x256xf32>, vector<1x256xf32> -> vector<73x256xf32>
    %81 = arith.truncf %80 : vector<73x256xf32> to vector<73x256xbf16>
    %c16 = arith.constant 16 : index
    %c0_44 = arith.constant 0 : index
    %82 = vector.load %arg2[%c16, %c0_44] : memref<240x384xbf16, #tpu.memory_space<vmem>>, vector<8x73xbf16>
    %cst_45 = arith.constant dense<0.000000e+00> : vector<8x256xf32>
    %83 = tpu.matmul %82, %81, %cst_45 {dimension_numbers = #tpu.dot_dimension_numbers<[1], [0], [0], [1], [0, 0, 1, 1], [], []>} : vector<8x73xbf16>, vector<73x256xbf16>, vector<8x256xf32> -> vector<8x256xf32>
    %cst_46 = arith.constant 0.000000e+00 : f32
    %84 = vector.broadcast %cst_46 : f32 to vector<8x256xf32>
    %85 = arith.maximumf %83, %84 : vector<8x256xf32>
    %c0_47 = arith.constant 0 : index
    %c0_48 = arith.constant 0 : index
    %86 = vector.load %arg4[%c0_47, %c0_48] : memref<384x128xbf16, #tpu.memory_space<vmem>>, vector<256x128xbf16>
    %87 = arith.truncf %85 : vector<8x256xf32> to vector<8x256xbf16>
    %cst_49 = arith.constant dense<0.000000e+00> : vector<8x128xf32>
    %88 = tpu.matmul %87, %86, %cst_49 {dimension_numbers = #tpu.dot_dimension_numbers<[1], [0], [0], [1], [0, 0, 1, 1], [], []>} : vector<8x256xbf16>, vector<256x128xbf16>, vector<8x128xf32> -> vector<8x128xf32>
    %c9_i32 = arith.constant 9 : i32
    %89 = tpu.dynamic_rotate %88 by %c9_i32 dim 1 : vector<8x128xf32>, i32 -> vector<8x128xf32>
    %c16_50 = arith.constant 16 : index
    %c0_51 = arith.constant 0 : index
    %90 = vector.load %arg3[%c16_50, %c0_51] : memref<48x256xf32, #tpu.memory_space<vmem>>, vector<1x128xf32>
    %91 = vector.broadcast %90 : vector<1x128xf32> to vector<8x128xf32>
    %92 = arith.mulf %89, %91 : vector<8x128xf32>
    %c8_i32 = arith.constant 8 : i32
    %93 = tpu.dynamic_rotate %88 by %c8_i32 dim 1 : vector<8x128xf32>, i32 -> vector<8x128xf32>
    %c17 = arith.constant 17 : index
    %c0_52 = arith.constant 0 : index
    %94 = vector.load %arg3[%c17, %c0_52] : memref<48x256xf32, #tpu.memory_space<vmem>>, vector<1x128xf32>
    %95 = vector.broadcast %94 : vector<1x128xf32> to vector<8x128xf32>
    %96 = arith.mulf %93, %95 : vector<8x128xf32>
    %c7_i32 = arith.constant 7 : i32
    %97 = tpu.dynamic_rotate %88 by %c7_i32 dim 1 : vector<8x128xf32>, i32 -> vector<8x128xf32>
    %c18 = arith.constant 18 : index
    %c0_53 = arith.constant 0 : index
    %98 = vector.load %arg3[%c18, %c0_53] : memref<48x256xf32, #tpu.memory_space<vmem>>, vector<1x128xf32>
    %99 = vector.broadcast %98 : vector<1x128xf32> to vector<8x128xf32>
    %100 = arith.mulf %97, %99 : vector<8x128xf32>
    %c1_i32_54 = arith.constant 1 : i32
    %101 = tpu.dynamic_rotate %88 by %c1_i32_54 dim 1 : vector<8x128xf32>, i32 -> vector<8x128xf32>
    %c19 = arith.constant 19 : index
    %c0_55 = arith.constant 0 : index
    %102 = vector.load %arg3[%c19, %c0_55] : memref<48x256xf32, #tpu.memory_space<vmem>>, vector<1x128xf32>
    %103 = vector.broadcast %102 : vector<1x128xf32> to vector<8x128xf32>
    %104 = arith.mulf %101, %103 : vector<8x128xf32>
    %c20 = arith.constant 20 : index
    %c0_56 = arith.constant 0 : index
    %105 = vector.load %arg3[%c20, %c0_56] : memref<48x256xf32, #tpu.memory_space<vmem>>, vector<1x128xf32>
    %106 = vector.broadcast %105 : vector<1x128xf32> to vector<8x128xf32>
    %107 = arith.mulf %88, %106 : vector<8x128xf32>
    %c127_i32 = arith.constant 127 : i32
    %108 = tpu.dynamic_rotate %88 by %c127_i32 dim 1 : vector<8x128xf32>, i32 -> vector<8x128xf32>
    %c21 = arith.constant 21 : index
    %c0_57 = arith.constant 0 : index
    %109 = vector.load %arg3[%c21, %c0_57] : memref<48x256xf32, #tpu.memory_space<vmem>>, vector<1x128xf32>
    %110 = vector.broadcast %109 : vector<1x128xf32> to vector<8x128xf32>
    %111 = arith.mulf %108, %110 : vector<8x128xf32>
    %c121_i32 = arith.constant 121 : i32
    %112 = tpu.dynamic_rotate %88 by %c121_i32 dim 1 : vector<8x128xf32>, i32 -> vector<8x128xf32>
    %c22 = arith.constant 22 : index
    %c0_58 = arith.constant 0 : index
    %113 = vector.load %arg3[%c22, %c0_58] : memref<48x256xf32, #tpu.memory_space<vmem>>, vector<1x128xf32>
    %114 = vector.broadcast %113 : vector<1x128xf32> to vector<8x128xf32>
    %115 = arith.mulf %112, %114 : vector<8x128xf32>
    %c120_i32 = arith.constant 120 : i32
    %116 = tpu.dynamic_rotate %88 by %c120_i32 dim 1 : vector<8x128xf32>, i32 -> vector<8x128xf32>
    %c23 = arith.constant 23 : index
    %c0_59 = arith.constant 0 : index
    %117 = vector.load %arg3[%c23, %c0_59] : memref<48x256xf32, #tpu.memory_space<vmem>>, vector<1x128xf32>
    %118 = vector.broadcast %117 : vector<1x128xf32> to vector<8x128xf32>
    %119 = arith.mulf %116, %118 : vector<8x128xf32>
    %c119_i32 = arith.constant 119 : i32
    %120 = tpu.dynamic_rotate %88 by %c119_i32 dim 1 : vector<8x128xf32>, i32 -> vector<8x128xf32>
    %c24 = arith.constant 24 : index
    %c0_60 = arith.constant 0 : index
    %121 = vector.load %arg3[%c24, %c0_60] : memref<48x256xf32, #tpu.memory_space<vmem>>, vector<1x128xf32>
    %122 = vector.broadcast %121 : vector<1x128xf32> to vector<8x128xf32>
    %123 = arith.mulf %120, %122 : vector<8x128xf32>
    %c25 = arith.constant 25 : index
    %c0_61 = arith.constant 0 : index
    %124 = vector.load %arg3[%c25, %c0_61] : memref<48x256xf32, #tpu.memory_space<vmem>>, vector<1x128xf32>
    %125 = tpu.concatenate %92, %96, %100, %104, %107, %111, %115, %119, %123, %124 in 0 : vector<8x128xf32>, vector<8x128xf32>, vector<8x128xf32>, vector<8x128xf32>, vector<8x128xf32>, vector<8x128xf32>, vector<8x128xf32>, vector<8x128xf32>, vector<8x128xf32>, vector<1x128xf32> -> vector<73x128xf32>
    %126 = arith.truncf %125 : vector<73x128xf32> to vector<73x128xbf16>
    %c32 = arith.constant 32 : index
    %c0_62 = arith.constant 0 : index
    %127 = vector.load %arg2[%c32, %c0_62] : memref<240x384xbf16, #tpu.memory_space<vmem>>, vector<16x73xbf16>
    %cst_63 = arith.constant dense<0.000000e+00> : vector<16x128xf32>
    %128 = tpu.matmul %127, %126, %cst_63 {dimension_numbers = #tpu.dot_dimension_numbers<[1], [0], [0], [1], [0, 0, 1, 1], [], []>} : vector<16x73xbf16>, vector<73x128xbf16>, vector<16x128xf32> -> vector<16x128xf32>
    %cst_64 = arith.constant 0.000000e+00 : f32
    %129 = vector.broadcast %cst_64 : f32 to vector<16x128xf32>
    %130 = arith.maximumf %128, %129 : vector<16x128xf32>
    %c9_i32_65 = arith.constant 9 : i32
    %131 = tpu.dynamic_rotate %130 by %c9_i32_65 dim 1 : vector<16x128xf32>, i32 -> vector<16x128xf32>
    %c16_66 = arith.constant 16 : index
    %c0_67 = arith.constant 0 : index
    %132 = vector.load %arg3[%c16_66, %c0_67] : memref<48x256xf32, #tpu.memory_space<vmem>>, vector<1x128xf32>
    %133 = vector.broadcast %132 : vector<1x128xf32> to vector<16x128xf32>
    %134 = arith.mulf %131, %133 : vector<16x128xf32>
    %c8_i32_68 = arith.constant 8 : i32
    %135 = tpu.dynamic_rotate %130 by %c8_i32_68 dim 1 : vector<16x128xf32>, i32 -> vector<16x128xf32>
    %c17_69 = arith.constant 17 : index
    %c0_70 = arith.constant 0 : index
    %136 = vector.load %arg3[%c17_69, %c0_70] : memref<48x256xf32, #tpu.memory_space<vmem>>, vector<1x128xf32>
    %137 = vector.broadcast %136 : vector<1x128xf32> to vector<16x128xf32>
    %138 = arith.mulf %135, %137 : vector<16x128xf32>
    %c7_i32_71 = arith.constant 7 : i32
    %139 = tpu.dynamic_rotate %130 by %c7_i32_71 dim 1 : vector<16x128xf32>, i32 -> vector<16x128xf32>
    %c18_72 = arith.constant 18 : index
    %c0_73 = arith.constant 0 : index
    %140 = vector.load %arg3[%c18_72, %c0_73] : memref<48x256xf32, #tpu.memory_space<vmem>>, vector<1x128xf32>
    %141 = vector.broadcast %140 : vector<1x128xf32> to vector<16x128xf32>
    %142 = arith.mulf %139, %141 : vector<16x128xf32>
    %c1_i32_74 = arith.constant 1 : i32
    %143 = tpu.dynamic_rotate %130 by %c1_i32_74 dim 1 : vector<16x128xf32>, i32 -> vector<16x128xf32>
    %c19_75 = arith.constant 19 : index
    %c0_76 = arith.constant 0 : index
    %144 = vector.load %arg3[%c19_75, %c0_76] : memref<48x256xf32, #tpu.memory_space<vmem>>, vector<1x128xf32>
    %145 = vector.broadcast %144 : vector<1x128xf32> to vector<16x128xf32>
    %146 = arith.mulf %143, %145 : vector<16x128xf32>
    %c20_77 = arith.constant 20 : index
    %c0_78 = arith.constant 0 : index
    %147 = vector.load %arg3[%c20_77, %c0_78] : memref<48x256xf32, #tpu.memory_space<vmem>>, vector<1x128xf32>
    %148 = vector.broadcast %147 : vector<1x128xf32> to vector<16x128xf32>
    %149 = arith.mulf %130, %148 : vector<16x128xf32>
    %c127_i32_79 = arith.constant 127 : i32
    %150 = tpu.dynamic_rotate %130 by %c127_i32_79 dim 1 : vector<16x128xf32>, i32 -> vector<16x128xf32>
    %c21_80 = arith.constant 21 : index
    %c0_81 = arith.constant 0 : index
    %151 = vector.load %arg3[%c21_80, %c0_81] : memref<48x256xf32, #tpu.memory_space<vmem>>, vector<1x128xf32>
    %152 = vector.broadcast %151 : vector<1x128xf32> to vector<16x128xf32>
    %153 = arith.mulf %150, %152 : vector<16x128xf32>
    %c121_i32_82 = arith.constant 121 : i32
    %154 = tpu.dynamic_rotate %130 by %c121_i32_82 dim 1 : vector<16x128xf32>, i32 -> vector<16x128xf32>
    %c22_83 = arith.constant 22 : index
    %c0_84 = arith.constant 0 : index
    %155 = vector.load %arg3[%c22_83, %c0_84] : memref<48x256xf32, #tpu.memory_space<vmem>>, vector<1x128xf32>
    %156 = vector.broadcast %155 : vector<1x128xf32> to vector<16x128xf32>
    %157 = arith.mulf %154, %156 : vector<16x128xf32>
    %c120_i32_85 = arith.constant 120 : i32
    %158 = tpu.dynamic_rotate %130 by %c120_i32_85 dim 1 : vector<16x128xf32>, i32 -> vector<16x128xf32>
    %c23_86 = arith.constant 23 : index
    %c0_87 = arith.constant 0 : index
    %159 = vector.load %arg3[%c23_86, %c0_87] : memref<48x256xf32, #tpu.memory_space<vmem>>, vector<1x128xf32>
    %160 = vector.broadcast %159 : vector<1x128xf32> to vector<16x128xf32>
    %161 = arith.mulf %158, %160 : vector<16x128xf32>
    %c119_i32_88 = arith.constant 119 : i32
    %162 = tpu.dynamic_rotate %130 by %c119_i32_88 dim 1 : vector<16x128xf32>, i32 -> vector<16x128xf32>
    %c24_89 = arith.constant 24 : index
    %c0_90 = arith.constant 0 : index
    %163 = vector.load %arg3[%c24_89, %c0_90] : memref<48x256xf32, #tpu.memory_space<vmem>>, vector<1x128xf32>
    %164 = vector.broadcast %163 : vector<1x128xf32> to vector<16x128xf32>
    %165 = arith.mulf %162, %164 : vector<16x128xf32>
    %c25_91 = arith.constant 25 : index
    %c0_92 = arith.constant 0 : index
    %166 = vector.load %arg3[%c25_91, %c0_92] : memref<48x256xf32, #tpu.memory_space<vmem>>, vector<1x128xf32>
    %167 = tpu.concatenate %134, %138, %142, %146, %149, %153, %157, %161, %165, %166 in 0 : vector<16x128xf32>, vector<16x128xf32>, vector<16x128xf32>, vector<16x128xf32>, vector<16x128xf32>, vector<16x128xf32>, vector<16x128xf32>, vector<16x128xf32>, vector<16x128xf32>, vector<1x128xf32> -> vector<145x128xf32>
    %168 = arith.truncf %167 : vector<145x128xf32> to vector<145x128xbf16>
    %c48 = arith.constant 48 : index
    %c0_93 = arith.constant 0 : index
    %169 = vector.load %arg2[%c48, %c0_93] : memref<240x384xbf16, #tpu.memory_space<vmem>>, vector<16x145xbf16>
    %cst_94 = arith.constant dense<0.000000e+00> : vector<16x128xf32>
    %170 = tpu.matmul %169, %168, %cst_94 {dimension_numbers = #tpu.dot_dimension_numbers<[1], [0], [0], [1], [0, 0, 1, 1], [], []>} : vector<16x145xbf16>, vector<145x128xbf16>, vector<16x128xf32> -> vector<16x128xf32>
    %cst_95 = arith.constant 0.000000e+00 : f32
    %171 = vector.broadcast %cst_95 : f32 to vector<16x128xf32>
    %172 = arith.maximumf %170, %171 : vector<16x128xf32>
    %c256 = arith.constant 256 : index
    %c0_96 = arith.constant 0 : index
    %173 = vector.load %arg4[%c256, %c0_96] : memref<384x128xbf16, #tpu.memory_space<vmem>>, vector<128x128xbf16>
    %174 = arith.truncf %172 : vector<16x128xf32> to vector<16x128xbf16>
    %cst_97 = arith.constant dense<0.000000e+00> : vector<16x128xf32>
    %175 = tpu.matmul %174, %173, %cst_97 {dimension_numbers = #tpu.dot_dimension_numbers<[1], [0], [0], [1], [0, 0, 1, 1], [], []>} : vector<16x128xbf16>, vector<128x128xbf16>, vector<16x128xf32> -> vector<16x128xf32>
    %c5_i32 = arith.constant 5 : i32
    %176 = tpu.dynamic_rotate %175 by %c5_i32 dim 1 : vector<16x128xf32>, i32 -> vector<16x128xf32>
    %c32_98 = arith.constant 32 : index
    %c0_99 = arith.constant 0 : index
    %177 = vector.load %arg3[%c32_98, %c0_99] : memref<48x256xf32, #tpu.memory_space<vmem>>, vector<1x128xf32>
    %178 = vector.broadcast %177 : vector<1x128xf32> to vector<16x128xf32>
    %179 = arith.mulf %176, %178 : vector<16x128xf32>
    %c4_i32 = arith.constant 4 : i32
    %180 = tpu.dynamic_rotate %175 by %c4_i32 dim 1 : vector<16x128xf32>, i32 -> vector<16x128xf32>
    %c33 = arith.constant 33 : index
    %c0_100 = arith.constant 0 : index
    %181 = vector.load %arg3[%c33, %c0_100] : memref<48x256xf32, #tpu.memory_space<vmem>>, vector<1x128xf32>
    %182 = vector.broadcast %181 : vector<1x128xf32> to vector<16x128xf32>
    %183 = arith.mulf %180, %182 : vector<16x128xf32>
    %c3_i32 = arith.constant 3 : i32
    %184 = tpu.dynamic_rotate %175 by %c3_i32 dim 1 : vector<16x128xf32>, i32 -> vector<16x128xf32>
    %c34 = arith.constant 34 : index
    %c0_101 = arith.constant 0 : index
    %185 = vector.load %arg3[%c34, %c0_101] : memref<48x256xf32, #tpu.memory_space<vmem>>, vector<1x128xf32>
    %186 = vector.broadcast %185 : vector<1x128xf32> to vector<16x128xf32>
    %187 = arith.mulf %184, %186 : vector<16x128xf32>
    %c1_i32_102 = arith.constant 1 : i32
    %188 = tpu.dynamic_rotate %175 by %c1_i32_102 dim 1 : vector<16x128xf32>, i32 -> vector<16x128xf32>
    %c35 = arith.constant 35 : index
    %c0_103 = arith.constant 0 : index
    %189 = vector.load %arg3[%c35, %c0_103] : memref<48x256xf32, #tpu.memory_space<vmem>>, vector<1x128xf32>
    %190 = vector.broadcast %189 : vector<1x128xf32> to vector<16x128xf32>
    %191 = arith.mulf %188, %190 : vector<16x128xf32>
    %c36 = arith.constant 36 : index
    %c0_104 = arith.constant 0 : index
    %192 = vector.load %arg3[%c36, %c0_104] : memref<48x256xf32, #tpu.memory_space<vmem>>, vector<1x128xf32>
    %193 = vector.broadcast %192 : vector<1x128xf32> to vector<16x128xf32>
    %194 = arith.mulf %175, %193 : vector<16x128xf32>
    %c127_i32_105 = arith.constant 127 : i32
    %195 = tpu.dynamic_rotate %175 by %c127_i32_105 dim 1 : vector<16x128xf32>, i32 -> vector<16x128xf32>
    %c37 = arith.constant 37 : index
    %c0_106 = arith.constant 0 : index
    %196 = vector.load %arg3[%c37, %c0_106] : memref<48x256xf32, #tpu.memory_space<vmem>>, vector<1x128xf32>
    %197 = vector.broadcast %196 : vector<1x128xf32> to vector<16x128xf32>
    %198 = arith.mulf %195, %197 : vector<16x128xf32>
    %c125_i32 = arith.constant 125 : i32
    %199 = tpu.dynamic_rotate %175 by %c125_i32 dim 1 : vector<16x128xf32>, i32 -> vector<16x128xf32>
    %c38 = arith.constant 38 : index
    %c0_107 = arith.constant 0 : index
    %200 = vector.load %arg3[%c38, %c0_107] : memref<48x256xf32, #tpu.memory_space<vmem>>, vector<1x128xf32>
    %201 = vector.broadcast %200 : vector<1x128xf32> to vector<16x128xf32>
    %202 = arith.mulf %199, %201 : vector<16x128xf32>
    %c124_i32 = arith.constant 124 : i32
    %203 = tpu.dynamic_rotate %175 by %c124_i32 dim 1 : vector<16x128xf32>, i32 -> vector<16x128xf32>
    %c39 = arith.constant 39 : index
    %c0_108 = arith.constant 0 : index
    %204 = vector.load %arg3[%c39, %c0_108] : memref<48x256xf32, #tpu.memory_space<vmem>>, vector<1x128xf32>
    %205 = vector.broadcast %204 : vector<1x128xf32> to vector<16x128xf32>
    %206 = arith.mulf %203, %205 : vector<16x128xf32>
    %c123_i32 = arith.constant 123 : i32
    %207 = tpu.dynamic_rotate %175 by %c123_i32 dim 1 : vector<16x128xf32>, i32 -> vector<16x128xf32>
    %c40 = arith.constant 40 : index
    %c0_109 = arith.constant 0 : index
    %208 = vector.load %arg3[%c40, %c0_109] : memref<48x256xf32, #tpu.memory_space<vmem>>, vector<1x128xf32>
    %209 = vector.broadcast %208 : vector<1x128xf32> to vector<16x128xf32>
    %210 = arith.mulf %207, %209 : vector<16x128xf32>
    %c41 = arith.constant 41 : index
    %c0_110 = arith.constant 0 : index
    %211 = vector.load %arg3[%c41, %c0_110] : memref<48x256xf32, #tpu.memory_space<vmem>>, vector<1x128xf32>
    %212 = tpu.concatenate %179, %183, %187, %191, %194, %198, %202, %206, %210, %211 in 0 : vector<16x128xf32>, vector<16x128xf32>, vector<16x128xf32>, vector<16x128xf32>, vector<16x128xf32>, vector<16x128xf32>, vector<16x128xf32>, vector<16x128xf32>, vector<16x128xf32>, vector<1x128xf32> -> vector<145x128xf32>
    %213 = arith.truncf %212 : vector<145x128xf32> to vector<145x128xbf16>
    %c64 = arith.constant 64 : index
    %c0_111 = arith.constant 0 : index
    %214 = vector.load %arg2[%c64, %c0_111] : memref<240x384xbf16, #tpu.memory_space<vmem>>, vector<24x145xbf16>
    %cst_112 = arith.constant dense<0.000000e+00> : vector<24x128xf32>
    %215 = tpu.matmul %214, %213, %cst_112 {dimension_numbers = #tpu.dot_dimension_numbers<[1], [0], [0], [1], [0, 0, 1, 1], [], []>} : vector<24x145xbf16>, vector<145x128xbf16>, vector<24x128xf32> -> vector<24x128xf32>
    %cst_113 = arith.constant 0.000000e+00 : f32
    %216 = vector.broadcast %cst_113 : f32 to vector<24x128xf32>
    %217 = arith.maximumf %215, %216 : vector<24x128xf32>
    %c5_i32_114 = arith.constant 5 : i32
    %218 = tpu.dynamic_rotate %217 by %c5_i32_114 dim 1 : vector<24x128xf32>, i32 -> vector<24x128xf32>
    %c32_115 = arith.constant 32 : index
    %c0_116 = arith.constant 0 : index
    %219 = vector.load %arg3[%c32_115, %c0_116] : memref<48x256xf32, #tpu.memory_space<vmem>>, vector<1x128xf32>
    %220 = vector.broadcast %219 : vector<1x128xf32> to vector<24x128xf32>
    %221 = arith.mulf %218, %220 : vector<24x128xf32>
    %c4_i32_117 = arith.constant 4 : i32
    %222 = tpu.dynamic_rotate %217 by %c4_i32_117 dim 1 : vector<24x128xf32>, i32 -> vector<24x128xf32>
    %c33_118 = arith.constant 33 : index
    %c0_119 = arith.constant 0 : index
    %223 = vector.load %arg3[%c33_118, %c0_119] : memref<48x256xf32, #tpu.memory_space<vmem>>, vector<1x128xf32>
    %224 = vector.broadcast %223 : vector<1x128xf32> to vector<24x128xf32>
    %225 = arith.mulf %222, %224 : vector<24x128xf32>
    %c3_i32_120 = arith.constant 3 : i32
    %226 = tpu.dynamic_rotate %217 by %c3_i32_120 dim 1 : vector<24x128xf32>, i32 -> vector<24x128xf32>
    %c34_121 = arith.constant 34 : index
    %c0_122 = arith.constant 0 : index
    %227 = vector.load %arg3[%c34_121, %c0_122] : memref<48x256xf32, #tpu.memory_space<vmem>>, vector<1x128xf32>
    %228 = vector.broadcast %227 : vector<1x128xf32> to vector<24x128xf32>
    %229 = arith.mulf %226, %228 : vector<24x128xf32>
    %c1_i32_123 = arith.constant 1 : i32
    %230 = tpu.dynamic_rotate %217 by %c1_i32_123 dim 1 : vector<24x128xf32>, i32 -> vector<24x128xf32>
    %c35_124 = arith.constant 35 : index
    %c0_125 = arith.constant 0 : index
    %231 = vector.load %arg3[%c35_124, %c0_125] : memref<48x256xf32, #tpu.memory_space<vmem>>, vector<1x128xf32>
    %232 = vector.broadcast %231 : vector<1x128xf32> to vector<24x128xf32>
    %233 = arith.mulf %230, %232 : vector<24x128xf32>
    %c36_126 = arith.constant 36 : index
    %c0_127 = arith.constant 0 : index
    %234 = vector.load %arg3[%c36_126, %c0_127] : memref<48x256xf32, #tpu.memory_space<vmem>>, vector<1x128xf32>
    %235 = vector.broadcast %234 : vector<1x128xf32> to vector<24x128xf32>
    %236 = arith.mulf %217, %235 : vector<24x128xf32>
    %c127_i32_128 = arith.constant 127 : i32
    %237 = tpu.dynamic_rotate %217 by %c127_i32_128 dim 1 : vector<24x128xf32>, i32 -> vector<24x128xf32>
    %c37_129 = arith.constant 37 : index
    %c0_130 = arith.constant 0 : index
    %238 = vector.load %arg3[%c37_129, %c0_130] : memref<48x256xf32, #tpu.memory_space<vmem>>, vector<1x128xf32>
    %239 = vector.broadcast %238 : vector<1x128xf32> to vector<24x128xf32>
    %240 = arith.mulf %237, %239 : vector<24x128xf32>
    %c125_i32_131 = arith.constant 125 : i32
    %241 = tpu.dynamic_rotate %217 by %c125_i32_131 dim 1 : vector<24x128xf32>, i32 -> vector<24x128xf32>
    %c38_132 = arith.constant 38 : index
    %c0_133 = arith.constant 0 : index
    %242 = vector.load %arg3[%c38_132, %c0_133] : memref<48x256xf32, #tpu.memory_space<vmem>>, vector<1x128xf32>
    %243 = vector.broadcast %242 : vector<1x128xf32> to vector<24x128xf32>
    %244 = arith.mulf %241, %243 : vector<24x128xf32>
    %c124_i32_134 = arith.constant 124 : i32
    %245 = tpu.dynamic_rotate %217 by %c124_i32_134 dim 1 : vector<24x128xf32>, i32 -> vector<24x128xf32>
    %c39_135 = arith.constant 39 : index
    %c0_136 = arith.constant 0 : index
    %246 = vector.load %arg3[%c39_135, %c0_136] : memref<48x256xf32, #tpu.memory_space<vmem>>, vector<1x128xf32>
    %247 = vector.broadcast %246 : vector<1x128xf32> to vector<24x128xf32>
    %248 = arith.mulf %245, %247 : vector<24x128xf32>
    %c123_i32_137 = arith.constant 123 : i32
    %249 = tpu.dynamic_rotate %217 by %c123_i32_137 dim 1 : vector<24x128xf32>, i32 -> vector<24x128xf32>
    %c40_138 = arith.constant 40 : index
    %c0_139 = arith.constant 0 : index
    %250 = vector.load %arg3[%c40_138, %c0_139] : memref<48x256xf32, #tpu.memory_space<vmem>>, vector<1x128xf32>
    %251 = vector.broadcast %250 : vector<1x128xf32> to vector<24x128xf32>
    %252 = arith.mulf %249, %251 : vector<24x128xf32>
    %c41_140 = arith.constant 41 : index
    %c0_141 = arith.constant 0 : index
    %253 = vector.load %arg3[%c41_140, %c0_141] : memref<48x256xf32, #tpu.memory_space<vmem>>, vector<1x128xf32>
    %254 = tpu.concatenate %221, %225, %229, %233, %236, %240, %244, %248, %252, %253 in 0 : vector<24x128xf32>, vector<24x128xf32>, vector<24x128xf32>, vector<24x128xf32>, vector<24x128xf32>, vector<24x128xf32>, vector<24x128xf32>, vector<24x128xf32>, vector<24x128xf32>, vector<1x128xf32> -> vector<217x128xf32>
    %255 = arith.truncf %254 : vector<217x128xf32> to vector<217x128xbf16>
    %c96 = arith.constant 96 : index
    %c0_142 = arith.constant 0 : index
    %256 = vector.load %arg2[%c96, %c0_142] : memref<240x384xbf16, #tpu.memory_space<vmem>>, vector<32x217xbf16>
    %cst_143 = arith.constant dense<0.000000e+00> : vector<32x128xf32>
    %257 = tpu.matmul %256, %255, %cst_143 {dimension_numbers = #tpu.dot_dimension_numbers<[1], [0], [0], [1], [0, 0, 1, 1], [], []>} : vector<32x217xbf16>, vector<217x128xbf16>, vector<32x128xf32> -> vector<32x128xf32>
    %cst_144 = arith.constant 0.000000e+00 : f32
    %258 = vector.broadcast %cst_144 : f32 to vector<32x128xf32>
    %259 = arith.maximumf %257, %258 : vector<32x128xf32>
    %260 = arith.truncf %259 : vector<32x128xf32> to vector<32x128xbf16>
    %c0_145 = arith.constant 0 : index
    %c0_146 = arith.constant 0 : index
    %c0_147 = arith.constant 0 : index
    %261 = vector.load %arg5[%c0_145, %c0_146, %c0_147] : memref<4x128x128xbf16, #tpu.memory_space<vmem>>, vector<1x128x128xbf16>
    %262 = vector.shape_cast %261 : vector<1x128x128xbf16> to vector<128x128xbf16>
    %cst_148 = arith.constant dense<0.000000e+00> : vector<32x128xf32>
    %263 = tpu.matmul %260, %262, %cst_148 {dimension_numbers = #tpu.dot_dimension_numbers<[1], [0], [0], [1], [0, 0, 1, 1], [], []>} : vector<32x128xbf16>, vector<128x128xbf16>, vector<32x128xf32> -> vector<32x128xf32>
    %c1_149 = arith.constant 1 : index
    %c0_150 = arith.constant 0 : index
    %c0_151 = arith.constant 0 : index
    %264 = vector.load %arg5[%c1_149, %c0_150, %c0_151] : memref<4x128x128xbf16, #tpu.memory_space<vmem>>, vector<1x128x128xbf16>
    %265 = vector.shape_cast %264 : vector<1x128x128xbf16> to vector<128x128xbf16>
    %cst_152 = arith.constant dense<0.000000e+00> : vector<32x128xf32>
    %266 = tpu.matmul %260, %265, %cst_152 {dimension_numbers = #tpu.dot_dimension_numbers<[1], [0], [0], [1], [0, 0, 1, 1], [], []>} : vector<32x128xbf16>, vector<128x128xbf16>, vector<32x128xf32> -> vector<32x128xf32>
    %c2_153 = arith.constant 2 : index
    %c0_154 = arith.constant 0 : index
    %c0_155 = arith.constant 0 : index
    %267 = vector.load %arg5[%c2_153, %c0_154, %c0_155] : memref<4x128x128xbf16, #tpu.memory_space<vmem>>, vector<1x128x128xbf16>
    %268 = vector.shape_cast %267 : vector<1x128x128xbf16> to vector<128x128xbf16>
    %cst_156 = arith.constant dense<0.000000e+00> : vector<32x128xf32>
    %269 = tpu.matmul %260, %268, %cst_156 {dimension_numbers = #tpu.dot_dimension_numbers<[1], [0], [0], [1], [0, 0, 1, 1], [], []>} : vector<32x128xbf16>, vector<128x128xbf16>, vector<32x128xf32> -> vector<32x128xf32>
    %c3_157 = arith.constant 3 : index
    %c0_158 = arith.constant 0 : index
    %c0_159 = arith.constant 0 : index
    %270 = vector.load %arg5[%c3_157, %c0_158, %c0_159] : memref<4x128x128xbf16, #tpu.memory_space<vmem>>, vector<1x128x128xbf16>
    %271 = vector.shape_cast %270 : vector<1x128x128xbf16> to vector<128x128xbf16>
    %cst_160 = arith.constant dense<0.000000e+00> : vector<32x128xf32>
    %272 = tpu.matmul %260, %271, %cst_160 {dimension_numbers = #tpu.dot_dimension_numbers<[1], [0], [0], [1], [0, 0, 1, 1], [], []>} : vector<32x128xbf16>, vector<128x128xbf16>, vector<32x128xf32> -> vector<32x128xf32>
    %c25_161 = arith.constant 25 : index
    %c0_162 = arith.constant 0 : index
    %273 = vector.load %arg3[%c25_161, %c0_162] : memref<48x256xf32, #tpu.memory_space<vmem>>, vector<1x128xf32>
    %274 = tpu.concatenate %263, %266, %269, %272, %273 in 0 : vector<32x128xf32>, vector<32x128xf32>, vector<32x128xf32>, vector<32x128xf32>, vector<1x128xf32> -> vector<129x128xf32>
    %275 = arith.truncf %274 : vector<129x128xf32> to vector<129x128xbf16>
    %c128 = arith.constant 128 : index
    %c0_163 = arith.constant 0 : index
    %276 = vector.load %arg2[%c128, %c0_163] : memref<240x384xbf16, #tpu.memory_space<vmem>>, vector<16x129xbf16>
    %cst_164 = arith.constant dense<0.000000e+00> : vector<16x128xf32>
    %277 = tpu.matmul %276, %275, %cst_164 {dimension_numbers = #tpu.dot_dimension_numbers<[1], [0], [0], [1], [0, 0, 1, 1], [], []>} : vector<16x129xbf16>, vector<129x128xbf16>, vector<16x128xf32> -> vector<16x128xf32>
    %c9_i32_165 = arith.constant 9 : i32
    %278 = tpu.dynamic_rotate %277 by %c9_i32_165 dim 1 : vector<16x128xf32>, i32 -> vector<16x128xf32>
    %c16_166 = arith.constant 16 : index
    %c0_167 = arith.constant 0 : index
    %279 = vector.load %arg3[%c16_166, %c0_167] : memref<48x256xf32, #tpu.memory_space<vmem>>, vector<1x128xf32>
    %280 = vector.broadcast %279 : vector<1x128xf32> to vector<16x128xf32>
    %281 = arith.mulf %278, %280 : vector<16x128xf32>
    %c8_i32_168 = arith.constant 8 : i32
    %282 = tpu.dynamic_rotate %277 by %c8_i32_168 dim 1 : vector<16x128xf32>, i32 -> vector<16x128xf32>
    %c17_169 = arith.constant 17 : index
    %c0_170 = arith.constant 0 : index
    %283 = vector.load %arg3[%c17_169, %c0_170] : memref<48x256xf32, #tpu.memory_space<vmem>>, vector<1x128xf32>
    %284 = vector.broadcast %283 : vector<1x128xf32> to vector<16x128xf32>
    %285 = arith.mulf %282, %284 : vector<16x128xf32>
    %c7_i32_171 = arith.constant 7 : i32
    %286 = tpu.dynamic_rotate %277 by %c7_i32_171 dim 1 : vector<16x128xf32>, i32 -> vector<16x128xf32>
    %c18_172 = arith.constant 18 : index
    %c0_173 = arith.constant 0 : index
    %287 = vector.load %arg3[%c18_172, %c0_173] : memref<48x256xf32, #tpu.memory_space<vmem>>, vector<1x128xf32>
    %288 = vector.broadcast %287 : vector<1x128xf32> to vector<16x128xf32>
    %289 = arith.mulf %286, %288 : vector<16x128xf32>
    %c1_i32_174 = arith.constant 1 : i32
    %290 = tpu.dynamic_rotate %277 by %c1_i32_174 dim 1 : vector<16x128xf32>, i32 -> vector<16x128xf32>
    %c19_175 = arith.constant 19 : index
    %c0_176 = arith.constant 0 : index
    %291 = vector.load %arg3[%c19_175, %c0_176] : memref<48x256xf32, #tpu.memory_space<vmem>>, vector<1x128xf32>
    %292 = vector.broadcast %291 : vector<1x128xf32> to vector<16x128xf32>
    %293 = arith.mulf %290, %292 : vector<16x128xf32>
    %c20_177 = arith.constant 20 : index
    %c0_178 = arith.constant 0 : index
    %294 = vector.load %arg3[%c20_177, %c0_178] : memref<48x256xf32, #tpu.memory_space<vmem>>, vector<1x128xf32>
    %295 = vector.broadcast %294 : vector<1x128xf32> to vector<16x128xf32>
    %296 = arith.mulf %277, %295 : vector<16x128xf32>
    %c127_i32_179 = arith.constant 127 : i32
    %297 = tpu.dynamic_rotate %277 by %c127_i32_179 dim 1 : vector<16x128xf32>, i32 -> vector<16x128xf32>
    %c21_180 = arith.constant 21 : index
    %c0_181 = arith.constant 0 : index
    %298 = vector.load %arg3[%c21_180, %c0_181] : memref<48x256xf32, #tpu.memory_space<vmem>>, vector<1x128xf32>
    %299 = vector.broadcast %298 : vector<1x128xf32> to vector<16x128xf32>
    %300 = arith.mulf %297, %299 : vector<16x128xf32>
    %c121_i32_182 = arith.constant 121 : i32
    %301 = tpu.dynamic_rotate %277 by %c121_i32_182 dim 1 : vector<16x128xf32>, i32 -> vector<16x128xf32>
    %c22_183 = arith.constant 22 : index
    %c0_184 = arith.constant 0 : index
    %302 = vector.load %arg3[%c22_183, %c0_184] : memref<48x256xf32, #tpu.memory_space<vmem>>, vector<1x128xf32>
    %303 = vector.broadcast %302 : vector<1x128xf32> to vector<16x128xf32>
    %304 = arith.mulf %301, %303 : vector<16x128xf32>
    %c120_i32_185 = arith.constant 120 : i32
    %305 = tpu.dynamic_rotate %277 by %c120_i32_185 dim 1 : vector<16x128xf32>, i32 -> vector<16x128xf32>
    %c23_186 = arith.constant 23 : index
    %c0_187 = arith.constant 0 : index
    %306 = vector.load %arg3[%c23_186, %c0_187] : memref<48x256xf32, #tpu.memory_space<vmem>>, vector<1x128xf32>
    %307 = vector.broadcast %306 : vector<1x128xf32> to vector<16x128xf32>
    %308 = arith.mulf %305, %307 : vector<16x128xf32>
    %c119_i32_188 = arith.constant 119 : i32
    %309 = tpu.dynamic_rotate %277 by %c119_i32_188 dim 1 : vector<16x128xf32>, i32 -> vector<16x128xf32>
    %c24_189 = arith.constant 24 : index
    %c0_190 = arith.constant 0 : index
    %310 = vector.load %arg3[%c24_189, %c0_190] : memref<48x256xf32, #tpu.memory_space<vmem>>, vector<1x128xf32>
    %311 = vector.broadcast %310 : vector<1x128xf32> to vector<16x128xf32>
    %312 = arith.mulf %309, %311 : vector<16x128xf32>
    %c9_i32_191 = arith.constant 9 : i32
    %313 = tpu.dynamic_rotate %172 by %c9_i32_191 dim 1 : vector<16x128xf32>, i32 -> vector<16x128xf32>
    %c16_192 = arith.constant 16 : index
    %c0_193 = arith.constant 0 : index
    %314 = vector.load %arg3[%c16_192, %c0_193] : memref<48x256xf32, #tpu.memory_space<vmem>>, vector<1x128xf32>
    %315 = vector.broadcast %314 : vector<1x128xf32> to vector<16x128xf32>
    %316 = arith.mulf %313, %315 : vector<16x128xf32>
    %c8_i32_194 = arith.constant 8 : i32
    %317 = tpu.dynamic_rotate %172 by %c8_i32_194 dim 1 : vector<16x128xf32>, i32 -> vector<16x128xf32>
    %c17_195 = arith.constant 17 : index
    %c0_196 = arith.constant 0 : index
    %318 = vector.load %arg3[%c17_195, %c0_196] : memref<48x256xf32, #tpu.memory_space<vmem>>, vector<1x128xf32>
    %319 = vector.broadcast %318 : vector<1x128xf32> to vector<16x128xf32>
    %320 = arith.mulf %317, %319 : vector<16x128xf32>
    %c7_i32_197 = arith.constant 7 : i32
    %321 = tpu.dynamic_rotate %172 by %c7_i32_197 dim 1 : vector<16x128xf32>, i32 -> vector<16x128xf32>
    %c18_198 = arith.constant 18 : index
    %c0_199 = arith.constant 0 : index
    %322 = vector.load %arg3[%c18_198, %c0_199] : memref<48x256xf32, #tpu.memory_space<vmem>>, vector<1x128xf32>
    %323 = vector.broadcast %322 : vector<1x128xf32> to vector<16x128xf32>
    %324 = arith.mulf %321, %323 : vector<16x128xf32>
    %c1_i32_200 = arith.constant 1 : i32
    %325 = tpu.dynamic_rotate %172 by %c1_i32_200 dim 1 : vector<16x128xf32>, i32 -> vector<16x128xf32>
    %c19_201 = arith.constant 19 : index
    %c0_202 = arith.constant 0 : index
    %326 = vector.load %arg3[%c19_201, %c0_202] : memref<48x256xf32, #tpu.memory_space<vmem>>, vector<1x128xf32>
    %327 = vector.broadcast %326 : vector<1x128xf32> to vector<16x128xf32>
    %328 = arith.mulf %325, %327 : vector<16x128xf32>
    %c20_203 = arith.constant 20 : index
    %c0_204 = arith.constant 0 : index
    %329 = vector.load %arg3[%c20_203, %c0_204] : memref<48x256xf32, #tpu.memory_space<vmem>>, vector<1x128xf32>
    %330 = vector.broadcast %329 : vector<1x128xf32> to vector<16x128xf32>
    %331 = arith.mulf %172, %330 : vector<16x128xf32>
    %c127_i32_205 = arith.constant 127 : i32
    %332 = tpu.dynamic_rotate %172 by %c127_i32_205 dim 1 : vector<16x128xf32>, i32 -> vector<16x128xf32>
    %c21_206 = arith.constant 21 : index
    %c0_207 = arith.constant 0 : index
    %333 = vector.load %arg3[%c21_206, %c0_207] : memref<48x256xf32, #tpu.memory_space<vmem>>, vector<1x128xf32>
    %334 = vector.broadcast %333 : vector<1x128xf32> to vector<16x128xf32>
    %335 = arith.mulf %332, %334 : vector<16x128xf32>
    %c121_i32_208 = arith.constant 121 : i32
    %336 = tpu.dynamic_rotate %172 by %c121_i32_208 dim 1 : vector<16x128xf32>, i32 -> vector<16x128xf32>
    %c22_209 = arith.constant 22 : index
    %c0_210 = arith.constant 0 : index
    %337 = vector.load %arg3[%c22_209, %c0_210] : memref<48x256xf32, #tpu.memory_space<vmem>>, vector<1x128xf32>
    %338 = vector.broadcast %337 : vector<1x128xf32> to vector<16x128xf32>
    %339 = arith.mulf %336, %338 : vector<16x128xf32>
    %c120_i32_211 = arith.constant 120 : i32
    %340 = tpu.dynamic_rotate %172 by %c120_i32_211 dim 1 : vector<16x128xf32>, i32 -> vector<16x128xf32>
    %c23_212 = arith.constant 23 : index
    %c0_213 = arith.constant 0 : index
    %341 = vector.load %arg3[%c23_212, %c0_213] : memref<48x256xf32, #tpu.memory_space<vmem>>, vector<1x128xf32>
    %342 = vector.broadcast %341 : vector<1x128xf32> to vector<16x128xf32>
    %343 = arith.mulf %340, %342 : vector<16x128xf32>
    %c119_i32_214 = arith.constant 119 : i32
    %344 = tpu.dynamic_rotate %172 by %c119_i32_214 dim 1 : vector<16x128xf32>, i32 -> vector<16x128xf32>
    %c24_215 = arith.constant 24 : index
    %c0_216 = arith.constant 0 : index
    %345 = vector.load %arg3[%c24_215, %c0_216] : memref<48x256xf32, #tpu.memory_space<vmem>>, vector<1x128xf32>
    %346 = vector.broadcast %345 : vector<1x128xf32> to vector<16x128xf32>
    %347 = arith.mulf %344, %346 : vector<16x128xf32>
    %c25_217 = arith.constant 25 : index
    %c0_218 = arith.constant 0 : index
    %348 = vector.load %arg3[%c25_217, %c0_218] : memref<48x256xf32, #tpu.memory_space<vmem>>, vector<1x128xf32>
    %349 = tpu.concatenate %281, %285, %289, %293, %296, %300, %304, %308, %312, %316, %320, %324, %328, %331, %335, %339 in 0 : vector<16x128xf32>, vector<16x128xf32>, vector<16x128xf32>, vector<16x128xf32>, vector<16x128xf32>, vector<16x128xf32>, vector<16x128xf32>, vector<16x128xf32>, vector<16x128xf32>, vector<16x128xf32>, vector<16x128xf32>, vector<16x128xf32>, vector<16x128xf32>, vector<16x128xf32>, vector<16x128xf32>, vector<16x128xf32> -> vector<256x128xf32>
    %350 = tpu.concatenate %343, %347, %348 in 0 : vector<16x128xf32>, vector<16x128xf32>, vector<1x128xf32> -> vector<33x128xf32>
    %351 = tpu.concatenate %349, %350 in 0 : vector<256x128xf32>, vector<33x128xf32> -> vector<289x128xf32>
    %352 = arith.truncf %351 : vector<289x128xf32> to vector<289x128xbf16>
    %c144 = arith.constant 144 : index
    %c0_219 = arith.constant 0 : index
    %353 = vector.load %arg2[%c144, %c0_219] : memref<240x384xbf16, #tpu.memory_space<vmem>>, vector<16x289xbf16>
    %cst_220 = arith.constant dense<0.000000e+00> : vector<16x128xf32>
    %354 = tpu.matmul %353, %352, %cst_220 {dimension_numbers = #tpu.dot_dimension_numbers<[1], [0], [0], [1], [0, 0, 1, 1], [], []>} : vector<16x289xbf16>, vector<289x128xbf16>, vector<16x128xf32> -> vector<16x128xf32>
    %cst_221 = arith.constant 0.000000e+00 : f32
    %355 = vector.broadcast %cst_221 : f32 to vector<16x128xf32>
    %356 = arith.maximumf %354, %355 : vector<16x128xf32>
    %c9_i32_222 = arith.constant 9 : i32
    %357 = tpu.dynamic_rotate %356 by %c9_i32_222 dim 1 : vector<16x128xf32>, i32 -> vector<16x128xf32>
    %c16_223 = arith.constant 16 : index
    %c0_224 = arith.constant 0 : index
    %358 = vector.load %arg3[%c16_223, %c0_224] : memref<48x256xf32, #tpu.memory_space<vmem>>, vector<1x128xf32>
    %359 = vector.broadcast %358 : vector<1x128xf32> to vector<16x128xf32>
    %360 = arith.mulf %357, %359 : vector<16x128xf32>
    %c8_i32_225 = arith.constant 8 : i32
    %361 = tpu.dynamic_rotate %356 by %c8_i32_225 dim 1 : vector<16x128xf32>, i32 -> vector<16x128xf32>
    %c17_226 = arith.constant 17 : index
    %c0_227 = arith.constant 0 : index
    %362 = vector.load %arg3[%c17_226, %c0_227] : memref<48x256xf32, #tpu.memory_space<vmem>>, vector<1x128xf32>
    %363 = vector.broadcast %362 : vector<1x128xf32> to vector<16x128xf32>
    %364 = arith.mulf %361, %363 : vector<16x128xf32>
    %c7_i32_228 = arith.constant 7 : i32
    %365 = tpu.dynamic_rotate %356 by %c7_i32_228 dim 1 : vector<16x128xf32>, i32 -> vector<16x128xf32>
    %c18_229 = arith.constant 18 : index
    %c0_230 = arith.constant 0 : index
    %366 = vector.load %arg3[%c18_229, %c0_230] : memref<48x256xf32, #tpu.memory_space<vmem>>, vector<1x128xf32>
    %367 = vector.broadcast %366 : vector<1x128xf32> to vector<16x128xf32>
    %368 = arith.mulf %365, %367 : vector<16x128xf32>
    %c1_i32_231 = arith.constant 1 : i32
    %369 = tpu.dynamic_rotate %356 by %c1_i32_231 dim 1 : vector<16x128xf32>, i32 -> vector<16x128xf32>
    %c19_232 = arith.constant 19 : index
    %c0_233 = arith.constant 0 : index
    %370 = vector.load %arg3[%c19_232, %c0_233] : memref<48x256xf32, #tpu.memory_space<vmem>>, vector<1x128xf32>
    %371 = vector.broadcast %370 : vector<1x128xf32> to vector<16x128xf32>
    %372 = arith.mulf %369, %371 : vector<16x128xf32>
    %c20_234 = arith.constant 20 : index
    %c0_235 = arith.constant 0 : index
    %373 = vector.load %arg3[%c20_234, %c0_235] : memref<48x256xf32, #tpu.memory_space<vmem>>, vector<1x128xf32>
    %374 = vector.broadcast %373 : vector<1x128xf32> to vector<16x128xf32>
    %375 = arith.mulf %356, %374 : vector<16x128xf32>
    %c127_i32_236 = arith.constant 127 : i32
    %376 = tpu.dynamic_rotate %356 by %c127_i32_236 dim 1 : vector<16x128xf32>, i32 -> vector<16x128xf32>
    %c21_237 = arith.constant 21 : index
    %c0_238 = arith.constant 0 : index
    %377 = vector.load %arg3[%c21_237, %c0_238] : memref<48x256xf32, #tpu.memory_space<vmem>>, vector<1x128xf32>
    %378 = vector.broadcast %377 : vector<1x128xf32> to vector<16x128xf32>
    %379 = arith.mulf %376, %378 : vector<16x128xf32>
    %c121_i32_239 = arith.constant 121 : i32
    %380 = tpu.dynamic_rotate %356 by %c121_i32_239 dim 1 : vector<16x128xf32>, i32 -> vector<16x128xf32>
    %c22_240 = arith.constant 22 : index
    %c0_241 = arith.constant 0 : index
    %381 = vector.load %arg3[%c22_240, %c0_241] : memref<48x256xf32, #tpu.memory_space<vmem>>, vector<1x128xf32>
    %382 = vector.broadcast %381 : vector<1x128xf32> to vector<16x128xf32>
    %383 = arith.mulf %380, %382 : vector<16x128xf32>
    %c120_i32_242 = arith.constant 120 : i32
    %384 = tpu.dynamic_rotate %356 by %c120_i32_242 dim 1 : vector<16x128xf32>, i32 -> vector<16x128xf32>
    %c23_243 = arith.constant 23 : index
    %c0_244 = arith.constant 0 : index
    %385 = vector.load %arg3[%c23_243, %c0_244] : memref<48x256xf32, #tpu.memory_space<vmem>>, vector<1x128xf32>
    %386 = vector.broadcast %385 : vector<1x128xf32> to vector<16x128xf32>
    %387 = arith.mulf %384, %386 : vector<16x128xf32>
    %c119_i32_245 = arith.constant 119 : i32
    %388 = tpu.dynamic_rotate %356 by %c119_i32_245 dim 1 : vector<16x128xf32>, i32 -> vector<16x128xf32>
    %c24_246 = arith.constant 24 : index
    %c0_247 = arith.constant 0 : index
    %389 = vector.load %arg3[%c24_246, %c0_247] : memref<48x256xf32, #tpu.memory_space<vmem>>, vector<1x128xf32>
    %390 = vector.broadcast %389 : vector<1x128xf32> to vector<16x128xf32>
    %391 = arith.mulf %388, %390 : vector<16x128xf32>
    %c25_248 = arith.constant 25 : index
    %c0_249 = arith.constant 0 : index
    %392 = vector.load %arg3[%c25_248, %c0_249] : memref<48x256xf32, #tpu.memory_space<vmem>>, vector<1x128xf32>
    %393 = tpu.concatenate %360, %364, %368, %372, %375, %379, %383, %387, %391, %392 in 0 : vector<16x128xf32>, vector<16x128xf32>, vector<16x128xf32>, vector<16x128xf32>, vector<16x128xf32>, vector<16x128xf32>, vector<16x128xf32>, vector<16x128xf32>, vector<16x128xf32>, vector<1x128xf32> -> vector<145x128xf32>
    %394 = arith.truncf %393 : vector<145x128xf32> to vector<145x128xbf16>
    %c160 = arith.constant 160 : index
    %c0_250 = arith.constant 0 : index
    %395 = vector.load %arg2[%c160, %c0_250] : memref<240x384xbf16, #tpu.memory_space<vmem>>, vector<16x145xbf16>
    %cst_251 = arith.constant dense<0.000000e+00> : vector<16x128xf32>
    %396 = tpu.matmul %395, %394, %cst_251 {dimension_numbers = #tpu.dot_dimension_numbers<[1], [0], [0], [1], [0, 0, 1, 1], [], []>} : vector<16x145xbf16>, vector<145x128xbf16>, vector<16x128xf32> -> vector<16x128xf32>
    %cst_252 = arith.constant 0.000000e+00 : f32
    %397 = vector.broadcast %cst_252 : f32 to vector<16x128xf32>
    %398 = arith.maximumf %396, %397 : vector<16x128xf32>
    %399 = arith.truncf %398 : vector<16x128xf32> to vector<16x128xbf16>
    %c0_253 = arith.constant 0 : index
    %c0_254 = arith.constant 0 : index
    %c0_255 = arith.constant 0 : index
    %400 = vector.load %arg6[%c0_253, %c0_254, %c0_255] : memref<4x128x256xbf16, #tpu.memory_space<vmem>>, vector<1x128x256xbf16>
    %401 = vector.shape_cast %400 : vector<1x128x256xbf16> to vector<128x256xbf16>
    %cst_256 = arith.constant dense<0.000000e+00> : vector<16x256xf32>
    %402 = tpu.matmul %399, %401, %cst_256 {dimension_numbers = #tpu.dot_dimension_numbers<[1], [0], [0], [1], [0, 0, 1, 1], [], []>} : vector<16x128xbf16>, vector<128x256xbf16>, vector<16x256xf32> -> vector<16x256xf32>
    %c1_257 = arith.constant 1 : index
    %c0_258 = arith.constant 0 : index
    %c0_259 = arith.constant 0 : index
    %403 = vector.load %arg6[%c1_257, %c0_258, %c0_259] : memref<4x128x256xbf16, #tpu.memory_space<vmem>>, vector<1x128x256xbf16>
    %404 = vector.shape_cast %403 : vector<1x128x256xbf16> to vector<128x256xbf16>
    %cst_260 = arith.constant dense<0.000000e+00> : vector<16x256xf32>
    %405 = tpu.matmul %399, %404, %cst_260 {dimension_numbers = #tpu.dot_dimension_numbers<[1], [0], [0], [1], [0, 0, 1, 1], [], []>} : vector<16x128xbf16>, vector<128x256xbf16>, vector<16x256xf32> -> vector<16x256xf32>
    %c2_261 = arith.constant 2 : index
    %c0_262 = arith.constant 0 : index
    %c0_263 = arith.constant 0 : index
    %406 = vector.load %arg6[%c2_261, %c0_262, %c0_263] : memref<4x128x256xbf16, #tpu.memory_space<vmem>>, vector<1x128x256xbf16>
    %407 = vector.shape_cast %406 : vector<1x128x256xbf16> to vector<128x256xbf16>
    %cst_264 = arith.constant dense<0.000000e+00> : vector<16x256xf32>
    %408 = tpu.matmul %399, %407, %cst_264 {dimension_numbers = #tpu.dot_dimension_numbers<[1], [0], [0], [1], [0, 0, 1, 1], [], []>} : vector<16x128xbf16>, vector<128x256xbf16>, vector<16x256xf32> -> vector<16x256xf32>
    %c3_265 = arith.constant 3 : index
    %c0_266 = arith.constant 0 : index
    %c0_267 = arith.constant 0 : index
    %409 = vector.load %arg6[%c3_265, %c0_266, %c0_267] : memref<4x128x256xbf16, #tpu.memory_space<vmem>>, vector<1x128x256xbf16>
    %410 = vector.shape_cast %409 : vector<1x128x256xbf16> to vector<128x256xbf16>
    %cst_268 = arith.constant dense<0.000000e+00> : vector<16x256xf32>
    %411 = tpu.matmul %399, %410, %cst_268 {dimension_numbers = #tpu.dot_dimension_numbers<[1], [0], [0], [1], [0, 0, 1, 1], [], []>} : vector<16x128xbf16>, vector<128x256xbf16>, vector<16x256xf32> -> vector<16x256xf32>
    %c9_269 = arith.constant 9 : index
    %c0_270 = arith.constant 0 : index
    %412 = vector.load %arg3[%c9_269, %c0_270] : memref<48x256xf32, #tpu.memory_space<vmem>>, vector<1x256xf32>
    %413 = tpu.concatenate %402, %405, %408, %411, %412 in 0 : vector<16x256xf32>, vector<16x256xf32>, vector<16x256xf32>, vector<16x256xf32>, vector<1x256xf32> -> vector<65x256xf32>
    %414 = arith.truncf %413 : vector<65x256xf32> to vector<65x256xbf16>
    %c176 = arith.constant 176 : index
    %c0_271 = arith.constant 0 : index
    %415 = vector.load %arg2[%c176, %c0_271] : memref<240x384xbf16, #tpu.memory_space<vmem>>, vector<8x65xbf16>
    %cst_272 = arith.constant dense<0.000000e+00> : vector<8x256xf32>
    %416 = tpu.matmul %415, %414, %cst_272 {dimension_numbers = #tpu.dot_dimension_numbers<[1], [0], [0], [1], [0, 0, 1, 1], [], []>} : vector<8x65xbf16>, vector<65x256xbf16>, vector<8x256xf32> -> vector<8x256xf32>
    %c17_i32_273 = arith.constant 17 : i32
    %417 = tpu.dynamic_rotate %416 by %c17_i32_273 dim 1 : vector<8x256xf32>, i32 -> vector<8x256xf32>
    %c0_274 = arith.constant 0 : index
    %c0_275 = arith.constant 0 : index
    %418 = vector.load %arg3[%c0_274, %c0_275] : memref<48x256xf32, #tpu.memory_space<vmem>>, vector<1x256xf32>
    %419 = vector.broadcast %418 : vector<1x256xf32> to vector<8x256xf32>
    %420 = arith.mulf %417, %419 : vector<8x256xf32>
    %c16_i32_276 = arith.constant 16 : i32
    %421 = tpu.dynamic_rotate %416 by %c16_i32_276 dim 1 : vector<8x256xf32>, i32 -> vector<8x256xf32>
    %c1_277 = arith.constant 1 : index
    %c0_278 = arith.constant 0 : index
    %422 = vector.load %arg3[%c1_277, %c0_278] : memref<48x256xf32, #tpu.memory_space<vmem>>, vector<1x256xf32>
    %423 = vector.broadcast %422 : vector<1x256xf32> to vector<8x256xf32>
    %424 = arith.mulf %421, %423 : vector<8x256xf32>
    %c15_i32_279 = arith.constant 15 : i32
    %425 = tpu.dynamic_rotate %416 by %c15_i32_279 dim 1 : vector<8x256xf32>, i32 -> vector<8x256xf32>
    %c2_280 = arith.constant 2 : index
    %c0_281 = arith.constant 0 : index
    %426 = vector.load %arg3[%c2_280, %c0_281] : memref<48x256xf32, #tpu.memory_space<vmem>>, vector<1x256xf32>
    %427 = vector.broadcast %426 : vector<1x256xf32> to vector<8x256xf32>
    %428 = arith.mulf %425, %427 : vector<8x256xf32>
    %c1_i32_282 = arith.constant 1 : i32
    %429 = tpu.dynamic_rotate %416 by %c1_i32_282 dim 1 : vector<8x256xf32>, i32 -> vector<8x256xf32>
    %c3_283 = arith.constant 3 : index
    %c0_284 = arith.constant 0 : index
    %430 = vector.load %arg3[%c3_283, %c0_284] : memref<48x256xf32, #tpu.memory_space<vmem>>, vector<1x256xf32>
    %431 = vector.broadcast %430 : vector<1x256xf32> to vector<8x256xf32>
    %432 = arith.mulf %429, %431 : vector<8x256xf32>
    %c4_285 = arith.constant 4 : index
    %c0_286 = arith.constant 0 : index
    %433 = vector.load %arg3[%c4_285, %c0_286] : memref<48x256xf32, #tpu.memory_space<vmem>>, vector<1x256xf32>
    %434 = vector.broadcast %433 : vector<1x256xf32> to vector<8x256xf32>
    %435 = arith.mulf %416, %434 : vector<8x256xf32>
    %c255_i32_287 = arith.constant 255 : i32
    %436 = tpu.dynamic_rotate %416 by %c255_i32_287 dim 1 : vector<8x256xf32>, i32 -> vector<8x256xf32>
    %c5_288 = arith.constant 5 : index
    %c0_289 = arith.constant 0 : index
    %437 = vector.load %arg3[%c5_288, %c0_289] : memref<48x256xf32, #tpu.memory_space<vmem>>, vector<1x256xf32>
    %438 = vector.broadcast %437 : vector<1x256xf32> to vector<8x256xf32>
    %439 = arith.mulf %436, %438 : vector<8x256xf32>
    %c241_i32_290 = arith.constant 241 : i32
    %440 = tpu.dynamic_rotate %416 by %c241_i32_290 dim 1 : vector<8x256xf32>, i32 -> vector<8x256xf32>
    %c6_291 = arith.constant 6 : index
    %c0_292 = arith.constant 0 : index
    %441 = vector.load %arg3[%c6_291, %c0_292] : memref<48x256xf32, #tpu.memory_space<vmem>>, vector<1x256xf32>
    %442 = vector.broadcast %441 : vector<1x256xf32> to vector<8x256xf32>
    %443 = arith.mulf %440, %442 : vector<8x256xf32>
    %c240_i32_293 = arith.constant 240 : i32
    %444 = tpu.dynamic_rotate %416 by %c240_i32_293 dim 1 : vector<8x256xf32>, i32 -> vector<8x256xf32>
    %c7_294 = arith.constant 7 : index
    %c0_295 = arith.constant 0 : index
    %445 = vector.load %arg3[%c7_294, %c0_295] : memref<48x256xf32, #tpu.memory_space<vmem>>, vector<1x256xf32>
    %446 = vector.broadcast %445 : vector<1x256xf32> to vector<8x256xf32>
    %447 = arith.mulf %444, %446 : vector<8x256xf32>
    %c239_i32_296 = arith.constant 239 : i32
    %448 = tpu.dynamic_rotate %416 by %c239_i32_296 dim 1 : vector<8x256xf32>, i32 -> vector<8x256xf32>
    %c8_297 = arith.constant 8 : index
    %c0_298 = arith.constant 0 : index
    %449 = vector.load %arg3[%c8_297, %c0_298] : memref<48x256xf32, #tpu.memory_space<vmem>>, vector<1x256xf32>
    %450 = vector.broadcast %449 : vector<1x256xf32> to vector<8x256xf32>
    %451 = arith.mulf %448, %450 : vector<8x256xf32>
    %c17_i32_299 = arith.constant 17 : i32
    %452 = tpu.dynamic_rotate %85 by %c17_i32_299 dim 1 : vector<8x256xf32>, i32 -> vector<8x256xf32>
    %c0_300 = arith.constant 0 : index
    %c0_301 = arith.constant 0 : index
    %453 = vector.load %arg3[%c0_300, %c0_301] : memref<48x256xf32, #tpu.memory_space<vmem>>, vector<1x256xf32>
    %454 = vector.broadcast %453 : vector<1x256xf32> to vector<8x256xf32>
    %455 = arith.mulf %452, %454 : vector<8x256xf32>
    %c16_i32_302 = arith.constant 16 : i32
    %456 = tpu.dynamic_rotate %85 by %c16_i32_302 dim 1 : vector<8x256xf32>, i32 -> vector<8x256xf32>
    %c1_303 = arith.constant 1 : index
    %c0_304 = arith.constant 0 : index
    %457 = vector.load %arg3[%c1_303, %c0_304] : memref<48x256xf32, #tpu.memory_space<vmem>>, vector<1x256xf32>
    %458 = vector.broadcast %457 : vector<1x256xf32> to vector<8x256xf32>
    %459 = arith.mulf %456, %458 : vector<8x256xf32>
    %c15_i32_305 = arith.constant 15 : i32
    %460 = tpu.dynamic_rotate %85 by %c15_i32_305 dim 1 : vector<8x256xf32>, i32 -> vector<8x256xf32>
    %c2_306 = arith.constant 2 : index
    %c0_307 = arith.constant 0 : index
    %461 = vector.load %arg3[%c2_306, %c0_307] : memref<48x256xf32, #tpu.memory_space<vmem>>, vector<1x256xf32>
    %462 = vector.broadcast %461 : vector<1x256xf32> to vector<8x256xf32>
    %463 = arith.mulf %460, %462 : vector<8x256xf32>
    %c1_i32_308 = arith.constant 1 : i32
    %464 = tpu.dynamic_rotate %85 by %c1_i32_308 dim 1 : vector<8x256xf32>, i32 -> vector<8x256xf32>
    %c3_309 = arith.constant 3 : index
    %c0_310 = arith.constant 0 : index
    %465 = vector.load %arg3[%c3_309, %c0_310] : memref<48x256xf32, #tpu.memory_space<vmem>>, vector<1x256xf32>
    %466 = vector.broadcast %465 : vector<1x256xf32> to vector<8x256xf32>
    %467 = arith.mulf %464, %466 : vector<8x256xf32>
    %c4_311 = arith.constant 4 : index
    %c0_312 = arith.constant 0 : index
    %468 = vector.load %arg3[%c4_311, %c0_312] : memref<48x256xf32, #tpu.memory_space<vmem>>, vector<1x256xf32>
    %469 = vector.broadcast %468 : vector<1x256xf32> to vector<8x256xf32>
    %470 = arith.mulf %85, %469 : vector<8x256xf32>
    %c255_i32_313 = arith.constant 255 : i32
    %471 = tpu.dynamic_rotate %85 by %c255_i32_313 dim 1 : vector<8x256xf32>, i32 -> vector<8x256xf32>
    %c5_314 = arith.constant 5 : index
    %c0_315 = arith.constant 0 : index
    %472 = vector.load %arg3[%c5_314, %c0_315] : memref<48x256xf32, #tpu.memory_space<vmem>>, vector<1x256xf32>
    %473 = vector.broadcast %472 : vector<1x256xf32> to vector<8x256xf32>
    %474 = arith.mulf %471, %473 : vector<8x256xf32>
    %c241_i32_316 = arith.constant 241 : i32
    %475 = tpu.dynamic_rotate %85 by %c241_i32_316 dim 1 : vector<8x256xf32>, i32 -> vector<8x256xf32>
    %c6_317 = arith.constant 6 : index
    %c0_318 = arith.constant 0 : index
    %476 = vector.load %arg3[%c6_317, %c0_318] : memref<48x256xf32, #tpu.memory_space<vmem>>, vector<1x256xf32>
    %477 = vector.broadcast %476 : vector<1x256xf32> to vector<8x256xf32>
    %478 = arith.mulf %475, %477 : vector<8x256xf32>
    %c240_i32_319 = arith.constant 240 : i32
    %479 = tpu.dynamic_rotate %85 by %c240_i32_319 dim 1 : vector<8x256xf32>, i32 -> vector<8x256xf32>
    %c7_320 = arith.constant 7 : index
    %c0_321 = arith.constant 0 : index
    %480 = vector.load %arg3[%c7_320, %c0_321] : memref<48x256xf32, #tpu.memory_space<vmem>>, vector<1x256xf32>
    %481 = vector.broadcast %480 : vector<1x256xf32> to vector<8x256xf32>
    %482 = arith.mulf %479, %481 : vector<8x256xf32>
    %c239_i32_322 = arith.constant 239 : i32
    %483 = tpu.dynamic_rotate %85 by %c239_i32_322 dim 1 : vector<8x256xf32>, i32 -> vector<8x256xf32>
    %c8_323 = arith.constant 8 : index
    %c0_324 = arith.constant 0 : index
    %484 = vector.load %arg3[%c8_323, %c0_324] : memref<48x256xf32, #tpu.memory_space<vmem>>, vector<1x256xf32>
    %485 = vector.broadcast %484 : vector<1x256xf32> to vector<8x256xf32>
    %486 = arith.mulf %483, %485 : vector<8x256xf32>
    %c9_325 = arith.constant 9 : index
    %c0_326 = arith.constant 0 : index
    %487 = vector.load %arg3[%c9_325, %c0_326] : memref<48x256xf32, #tpu.memory_space<vmem>>, vector<1x256xf32>
    %488 = tpu.concatenate %420, %424, %428, %432, %435, %439, %443, %447, %451, %455, %459, %463, %467, %470, %474, %478 in 0 : vector<8x256xf32>, vector<8x256xf32>, vector<8x256xf32>, vector<8x256xf32>, vector<8x256xf32>, vector<8x256xf32>, vector<8x256xf32>, vector<8x256xf32>, vector<8x256xf32>, vector<8x256xf32>, vector<8x256xf32>, vector<8x256xf32>, vector<8x256xf32>, vector<8x256xf32>, vector<8x256xf32>, vector<8x256xf32> -> vector<128x256xf32>
    %489 = tpu.concatenate %482, %486, %487 in 0 : vector<8x256xf32>, vector<8x256xf32>, vector<1x256xf32> -> vector<17x256xf32>
    %490 = tpu.concatenate %488, %489 in 0 : vector<128x256xf32>, vector<17x256xf32> -> vector<145x256xf32>
    %491 = arith.truncf %490 : vector<145x256xf32> to vector<145x256xbf16>
    %c192 = arith.constant 192 : index
    %c0_327 = arith.constant 0 : index
    %492 = vector.load %arg2[%c192, %c0_327] : memref<240x384xbf16, #tpu.memory_space<vmem>>, vector<8x145xbf16>
    %cst_328 = arith.constant dense<0.000000e+00> : vector<8x256xf32>
    %493 = tpu.matmul %492, %491, %cst_328 {dimension_numbers = #tpu.dot_dimension_numbers<[1], [0], [0], [1], [0, 0, 1, 1], [], []>} : vector<8x145xbf16>, vector<145x256xbf16>, vector<8x256xf32> -> vector<8x256xf32>
    %cst_329 = arith.constant 0.000000e+00 : f32
    %494 = vector.broadcast %cst_329 : f32 to vector<8x256xf32>
    %495 = arith.maximumf %493, %494 : vector<8x256xf32>
    %c17_i32_330 = arith.constant 17 : i32
    %496 = tpu.dynamic_rotate %495 by %c17_i32_330 dim 1 : vector<8x256xf32>, i32 -> vector<8x256xf32>
    %c0_331 = arith.constant 0 : index
    %c0_332 = arith.constant 0 : index
    %497 = vector.load %arg3[%c0_331, %c0_332] : memref<48x256xf32, #tpu.memory_space<vmem>>, vector<1x256xf32>
    %498 = vector.broadcast %497 : vector<1x256xf32> to vector<8x256xf32>
    %499 = arith.mulf %496, %498 : vector<8x256xf32>
    %c16_i32_333 = arith.constant 16 : i32
    %500 = tpu.dynamic_rotate %495 by %c16_i32_333 dim 1 : vector<8x256xf32>, i32 -> vector<8x256xf32>
    %c1_334 = arith.constant 1 : index
    %c0_335 = arith.constant 0 : index
    %501 = vector.load %arg3[%c1_334, %c0_335] : memref<48x256xf32, #tpu.memory_space<vmem>>, vector<1x256xf32>
    %502 = vector.broadcast %501 : vector<1x256xf32> to vector<8x256xf32>
    %503 = arith.mulf %500, %502 : vector<8x256xf32>
    %c15_i32_336 = arith.constant 15 : i32
    %504 = tpu.dynamic_rotate %495 by %c15_i32_336 dim 1 : vector<8x256xf32>, i32 -> vector<8x256xf32>
    %c2_337 = arith.constant 2 : index
    %c0_338 = arith.constant 0 : index
    %505 = vector.load %arg3[%c2_337, %c0_338] : memref<48x256xf32, #tpu.memory_space<vmem>>, vector<1x256xf32>
    %506 = vector.broadcast %505 : vector<1x256xf32> to vector<8x256xf32>
    %507 = arith.mulf %504, %506 : vector<8x256xf32>
    %c1_i32_339 = arith.constant 1 : i32
    %508 = tpu.dynamic_rotate %495 by %c1_i32_339 dim 1 : vector<8x256xf32>, i32 -> vector<8x256xf32>
    %c3_340 = arith.constant 3 : index
    %c0_341 = arith.constant 0 : index
    %509 = vector.load %arg3[%c3_340, %c0_341] : memref<48x256xf32, #tpu.memory_space<vmem>>, vector<1x256xf32>
    %510 = vector.broadcast %509 : vector<1x256xf32> to vector<8x256xf32>
    %511 = arith.mulf %508, %510 : vector<8x256xf32>
    %c4_342 = arith.constant 4 : index
    %c0_343 = arith.constant 0 : index
    %512 = vector.load %arg3[%c4_342, %c0_343] : memref<48x256xf32, #tpu.memory_space<vmem>>, vector<1x256xf32>
    %513 = vector.broadcast %512 : vector<1x256xf32> to vector<8x256xf32>
    %514 = arith.mulf %495, %513 : vector<8x256xf32>
    %c255_i32_344 = arith.constant 255 : i32
    %515 = tpu.dynamic_rotate %495 by %c255_i32_344 dim 1 : vector<8x256xf32>, i32 -> vector<8x256xf32>
    %c5_345 = arith.constant 5 : index
    %c0_346 = arith.constant 0 : index
    %516 = vector.load %arg3[%c5_345, %c0_346] : memref<48x256xf32, #tpu.memory_space<vmem>>, vector<1x256xf32>
    %517 = vector.broadcast %516 : vector<1x256xf32> to vector<8x256xf32>
    %518 = arith.mulf %515, %517 : vector<8x256xf32>
    %c241_i32_347 = arith.constant 241 : i32
    %519 = tpu.dynamic_rotate %495 by %c241_i32_347 dim 1 : vector<8x256xf32>, i32 -> vector<8x256xf32>
    %c6_348 = arith.constant 6 : index
    %c0_349 = arith.constant 0 : index
    %520 = vector.load %arg3[%c6_348, %c0_349] : memref<48x256xf32, #tpu.memory_space<vmem>>, vector<1x256xf32>
    %521 = vector.broadcast %520 : vector<1x256xf32> to vector<8x256xf32>
    %522 = arith.mulf %519, %521 : vector<8x256xf32>
    %c240_i32_350 = arith.constant 240 : i32
    %523 = tpu.dynamic_rotate %495 by %c240_i32_350 dim 1 : vector<8x256xf32>, i32 -> vector<8x256xf32>
    %c7_351 = arith.constant 7 : index
    %c0_352 = arith.constant 0 : index
    %524 = vector.load %arg3[%c7_351, %c0_352] : memref<48x256xf32, #tpu.memory_space<vmem>>, vector<1x256xf32>
    %525 = vector.broadcast %524 : vector<1x256xf32> to vector<8x256xf32>
    %526 = arith.mulf %523, %525 : vector<8x256xf32>
    %c239_i32_353 = arith.constant 239 : i32
    %527 = tpu.dynamic_rotate %495 by %c239_i32_353 dim 1 : vector<8x256xf32>, i32 -> vector<8x256xf32>
    %c8_354 = arith.constant 8 : index
    %c0_355 = arith.constant 0 : index
    %528 = vector.load %arg3[%c8_354, %c0_355] : memref<48x256xf32, #tpu.memory_space<vmem>>, vector<1x256xf32>
    %529 = vector.broadcast %528 : vector<1x256xf32> to vector<8x256xf32>
    %530 = arith.mulf %527, %529 : vector<8x256xf32>
    %c9_356 = arith.constant 9 : index
    %c0_357 = arith.constant 0 : index
    %531 = vector.load %arg3[%c9_356, %c0_357] : memref<48x256xf32, #tpu.memory_space<vmem>>, vector<1x256xf32>
    %532 = tpu.concatenate %499, %503, %507, %511, %514, %518, %522, %526, %530, %531 in 0 : vector<8x256xf32>, vector<8x256xf32>, vector<8x256xf32>, vector<8x256xf32>, vector<8x256xf32>, vector<8x256xf32>, vector<8x256xf32>, vector<8x256xf32>, vector<8x256xf32>, vector<1x256xf32> -> vector<73x256xf32>
    %533 = arith.truncf %532 : vector<73x256xf32> to vector<73x256xbf16>
    %c208 = arith.constant 208 : index
    %c0_358 = arith.constant 0 : index
    %534 = vector.load %arg2[%c208, %c0_358] : memref<240x384xbf16, #tpu.memory_space<vmem>>, vector<8x73xbf16>
    %cst_359 = arith.constant dense<0.000000e+00> : vector<8x256xf32>
    %535 = tpu.matmul %534, %533, %cst_359 {dimension_numbers = #tpu.dot_dimension_numbers<[1], [0], [0], [1], [0, 0, 1, 1], [], []>} : vector<8x73xbf16>, vector<73x256xbf16>, vector<8x256xf32> -> vector<8x256xf32>
    %cst_360 = arith.constant 0.000000e+00 : f32
    %536 = vector.broadcast %cst_360 : f32 to vector<8x256xf32>
    %537 = arith.maximumf %535, %536 : vector<8x256xf32>
    %c9_361 = arith.constant 9 : index
    %c0_362 = arith.constant 0 : index
    %538 = vector.load %arg3[%c9_361, %c0_362] : memref<48x256xf32, #tpu.memory_space<vmem>>, vector<1x256xf32>
    %539 = tpu.concatenate %537, %538 in 0 : vector<8x256xf32>, vector<1x256xf32> -> vector<9x256xf32>
    %540 = arith.truncf %539 : vector<9x256xf32> to vector<9x256xbf16>
    %c224 = arith.constant 224 : index
    %c0_363 = arith.constant 0 : index
    %541 = vector.load %arg2[%c224, %c0_363] : memref<240x384xbf16, #tpu.memory_space<vmem>>, vector<3x9xbf16>
    %cst_364 = arith.constant dense<0.000000e+00> : vector<3x256xf32>
    %542 = tpu.matmul %541, %540, %cst_364 {dimension_numbers = #tpu.dot_dimension_numbers<[1], [0], [0], [1], [0, 0, 1, 1], [], []>} : vector<3x9xbf16>, vector<9x256xbf16>, vector<3x256xf32> -> vector<3x256xf32>
    %c0_365 = arith.constant 0 : index
    %c0_366 = arith.constant 0 : index
    %c0_367 = arith.constant 0 : index
    %543 = vector.load %arg7[%c0_365, %c0_366, %c0_367] : memref<1x3x256xf32, #tpu.memory_space<vmem>>, vector<1x3x256xf32>
    %544 = vector.shape_cast %543 : vector<1x3x256xf32> to vector<3x256xf32>
    %545 = vector.shape_cast %542 : vector<3x256xf32> to vector<1x3x256xf32>
    tpu.vector_store %arg7[%c0_365, %c0_366, %c0_367], %545 {strides = array<i32>} : memref<1x3x256xf32, #tpu.memory_space<vmem>>, vector<1x3x256xf32>,
    return
  }
  func.func @transform_0(%arg0: i32) -> (i32, i32, i32) {
    %c0_i32 = arith.constant 0 : i32
    %c0_i32_0 = arith.constant 0 : i32
    %c0_i32_1 = arith.constant 0 : i32
    return %arg0, %c0_i32, %c0_i32_0 : i32, i32, i32
  }
  func.func @transform_1(%arg0: i32) -> (i32, i32) {
    %c0_i32 = arith.constant 0 : i32
    %c0_i32_0 = arith.constant 0 : i32
    %c0_i32_1 = arith.constant 0 : i32
    return %c0_i32, %c0_i32_0 : i32, i32
  }
  func.func @transform_2(%arg0: i32) -> (i32, i32) {
    %c0_i32 = arith.constant 0 : i32
    %c0_i32_0 = arith.constant 0 : i32
    %c0_i32_1 = arith.constant 0 : i32
    return %c0_i32, %c0_i32_0 : i32, i32
  }
  func.func @transform_3(%arg0: i32) -> (i32, i32) {
    %c0_i32 = arith.constant 0 : i32
    %c0_i32_0 = arith.constant 0 : i32
    %c0_i32_1 = arith.constant 0 : i32
    return %c0_i32, %c0_i32_0 : i32, i32
  }
  func.func @transform_4(%arg0: i32) -> (i32, i32, i32) {
    %c0_i32 = arith.constant 0 : i32
    %c0_i32_0 = arith.constant 0 : i32
    %c0_i32_1 = arith.constant 0 : i32
    %c0_i32_2 = arith.constant 0 : i32
    return %c0_i32, %c0_i32_0, %c0_i32_1 : i32, i32, i32
  }
  func.func @transform_5(%arg0: i32) -> (i32, i32, i32) {
    %c0_i32 = arith.constant 0 : i32
    %c0_i32_0 = arith.constant 0 : i32
    %c0_i32_1 = arith.constant 0 : i32
    %c0_i32_2 = arith.constant 0 : i32
    return %c0_i32, %c0_i32_0, %c0_i32_1 : i32, i32, i32
  }
  func.func @transform_6(%arg0: i32) -> (i32, i32, i32) {
    %c0_i32 = arith.constant 0 : i32
    %c0_i32_0 = arith.constant 0 : i32
    %c0_i32_1 = arith.constant 0 : i32
    return %arg0, %c0_i32, %c0_i32_0 : i32, i32, i32
  }
}

</mosaic_0001>

<bundles_post_ra>
// kernel: tpu_custom_call.1
= control target key start
LH: loop header
LB: loop body
LE: loop exit
PB: predicated region body
PF: predicated region fallthrough
CT: control target
= control target key end

     0   :  { %6 = vsyncpa [#allocation3], 0  ;;  %s118_s0 = inlined_call_operand.hbm [shape: f32[8,128], index: 0, kind: input, shape index: {}]   ;;  %s119_s1 = inlined_call_operand.hbm [shape: f32[8,128], index: 1, kind: output, shape index: {}]  }
   0x1   :  { %7 = vsyncpa [#allocation4], 0  ;;  %s13_s8 = sshll.u32 %s118_s0, 4  ;;  %s99_s9 = smov [#allocation2]   ;;  %s14_s8 = int_to_ptr.hbm [resolvable:$true] %s13_s8 }
   0x2   :  { %s15_s10 = sshll.u32 %s99_s9, 4  ;;  %s16_s10 = int_to_ptr.vmem [resolvable:$true] %s15_s10 }
   0x3   :  { %18 = dma.hbm_to_vmem [thread:$0]  %s14_s8, 128, %s16_s10, [#allocation3]  }
   0x4   :  { %95 = dma.done.wait [#allocation3], 128  }
   0x5   :  { %96 = vsyncadd [#allocation3], 4294967168  ;;  %v23_v0 = vld [vmem:[#allocation2] sm:$0xff]  ;;  %s100_s11 = smov 1   ;;  %s101_s12 = smov [#allocation5]  }
   0x6   :  { %24 = vrot.lane.b32.xlu0 %v23_v0, %s100_s11  ;;  %s32_s13 = sshll.u32 %s101_s12, 4  ;;  %s34_s16 = sshll.u32 %s119_s1, 4  ;;  %s33_s13 = int_to_ptr.vmem [resolvable:$true] %s32_s13  ;;  %s35_s16 = int_to_ptr.hbm [resolvable:$true] %s34_s16 }
  0x78   :  { %v25_v1 = vpop.permute.xlu0 %24 }
  0x79   :  { %26 = vst [vmem:[#allocation5] sm:$0xff] %v25_v1 }
  0x7a   :  { %37 = dma.vmem_to_hbm [thread:$0]  %s33_s13, 128, %s35_s16, [#allocation4]  }
  0x7b   :  { %97 = dma.done.wait [#allocation4], 128  }
  0x7c   :  { %98 = vsyncadd [#allocation4], 4294967168 }
  0x7d   :  { %42 = vsyncpa [#allocation3], 1 }
  0x7e   :  { %43 = vsyncpa [#allocation4], 1 }

// kernel: forward.1
= control target key start
LH: loop header
LB: loop body
LE: loop exit
PB: predicated region body
PF: predicated region fallthrough
CT: control target
= control target key end

     0   :  { %11 = vsyncpa [#allocation3], 0  ;;  %s5092_s0 = inlined_call_operand.vmem [shape: f32[2,8,256], index: 0, kind: input, shape index: {}]   ;;  %s5093_s1 = inlined_call_operand.hbm [shape: bf16[240,384], index: 1, kind: input, shape index: {}]   ;;  %s5094_s2 = inlined_call_operand.hbm [shape: f32[48,256], index: 2, kind: input, shape index: {}]   ;;  %s5095_s3 = inlined_call_operand.vmem [shape: bf16[384,128], index: 3, kind: input, shape index: {}]   ;;  %s5096_s4 = inlined_call_operand.hbm [shape: bf16[4,128,128], index: 4, kind: input, shape index: {}]   ;;  %s5097_s5 = inlined_call_operand.hbm [shape: bf16[4,128,256], index: 5, kind: input, shape index: {}]   ;;  %s5098_s6 = inlined_call_operand.vmem [shape: f32[2,3,256], index: 6, kind: output, shape index: {}]  }
   0x1   :  { %12 = vsyncpa [#allocation5], 0 }
   0x2   :  { %13 = vsyncpa [#allocation8], 0  ;;  %s4059_s21 = smov 0  }
   0x3 LB: > { %s206_s24 = sshll.u32 %s5094_s2, 4  ;;  %s4068_s25 = sadd.s32 4294967295, %s3988_s21   ;;  %s3988_s21 = sphi %s4059_s21, %s19_s21   ;;  %s207_s24 = int_to_ptr.hbm [resolvable:$true] %s206_s24 }
   0x4   : > { %p3042_p0 = scmp.ge.s32.totalorder %s3988_s21, 1  ;;  %p181_p1 = scmp.lt.s32.totalorder %s3988_s21, 3 }
   0x5   : > { %p3791_p2 = scmp.eq.s32.totalorder %s4068_s25, 0  ;;  %s3990_s27 = smov [#allocation4]  }
   0x6   : > { %p4073_p3 = pnand %p3042_p0, %p181_p1  ;;  %s208_s28 = sshll.u32 %s3990_s27, 4  ;;  %s209_s28 = int_to_ptr.vmem [resolvable:$true] %s208_s28 }
   0x7   : > { %s192_s7 = sshll.u32 %s5093_s1, 4  ;;  %s3991_s9 = smov [#allocation2]   ;;  %s193_s7 = int_to_ptr.hbm [resolvable:$true] %s192_s7 }
   0x8   : > { %p3778_p4 = pneg %p4073_p3  ;;  %s194_s10 = sshll.u32 %s3991_s9, 4  ;;  %s195_s10 = int_to_ptr.vmem [resolvable:$true] %s194_s10 }
   0x9   : > { %s3992_s11 = smov 256   ;;  %s3993_s12 = smov 16  }
   0xa   : > { %p4084_p5 = pnand %p3791_p2, %p3778_p4  ;;  %s223_s15 = sshll.u32 %s5096_s4, 4  ;;  %s224_s15 = int_to_ptr.hbm [resolvable:$true] %s223_s15 }
   0xb   : > { %s3994_s16 = smov 192   ;;  %s3995_s17 = smov 12  }
   0xc   : > { %3784 = dma.hbm_to_vmem [thread:$0]  (!%p4084_p5), %s207_s24, 1536, %s209_s28, [#allocation5], %s3992_s11, %s3992_s11, %s3993_s12  }
   0xd   : > { %3781 = dma.hbm_to_vmem [thread:$0]  (!%p4084_p5), %s193_s7, 5760, %s195_s10, [#allocation3], %s3994_s16, %s3994_s16, %s3995_s17  }
   0xe   : > { %s3996_s18 = smov [#allocation6]   ;;  %s3997_s20 = smov 64  }
   0xf   : > { %s225_s19 = sshll.u32 %s3996_s18, 4  ;;  %s3998_s22 = smov 4   ;;  %s226_s19 = int_to_ptr.vmem [resolvable:$true] %s225_s19 }
  0x10   : > { %3787 = dma.hbm_to_vmem [thread:$0]  (!%p4084_p5), %s224_s15, 4096, %s226_s19, [#allocation5], %s3997_s20, %s3997_s20, %s3998_s22  }
  0x11   : > { %s237_s24 = sshll.u32 %s5097_s5, 4  ;;  %s3999_s28 = smov [#allocation7]   ;;  %s238_s24 = int_to_ptr.hbm [resolvable:$true] %s237_s24 }
  0x12   : > { %s239_s29 = sshll.u32 %s3999_s28, 4  ;;  %s4000_s30 = smov 128   ;;  %s240_s29 = int_to_ptr.vmem [resolvable:$true] %s239_s29 }
  0x13   : > { %s4001_s9 = smov 8   ;;  %263 = sbr.rel (%p4073_p3) target bundleno = 4036 (0xfc4), region = 44 }
  0x14   : > { %3790 = dma.hbm_to_vmem [thread:$0]  (!%p4084_p5), %s238_s24, 8192, %s240_s29, [#allocation8], %s4000_s30, %s4000_s30, %s4001_s9  }
  0x18   : > { %3975 = dma.done.wait (%p3791_p2), [#allocation3], 5760  }
  0x19   : > { %3977 = vsyncadd (%p3791_p2), [#allocation3], 4294961536 }
  0x1a   : > { %3979 = dma.done.wait (%p3791_p2), [#allocation5], 5632  }
  0x1b   : > { %3981 = vsyncadd (%p3791_p2), [#allocation5], 4294961664 }
  0x1c   : > { %3983 = dma.done.wait (%p3791_p2), [#allocation8], 8192  }
  0x1d   : > { %3985 = vsyncadd (%p3791_p2), [#allocation8], 4294959104  ;;  %p309_p6 = scmp.lt.s32.totalorder %s4068_s25, 1  ;;  %s4002_s11 = smov 113   ;;  %v326_v3 = vlaneseq  ;;  %vm482_vm1 = vcmask 1043456   ;;  %vm483_vm4 = vcmask 1044480  }
  0x1e   : > { %s4003_s12 = smov 111   ;;  %s4004_s13 = smov 112   ;;  %v452_v8 = vld [vmem:[#allocation4 + $0x10] ss:$8 sm:$0x3]  ;;  %v4010_v20 = vmov 65535  }
  0x1f   : > { %s5114_s25 = smov (!%p309_p6, %s4068_s25), 1  ;;  %s4005_s14 = smov 127   ;;  %v4160_v6 = vand.u32 127, %v326_v3  ;;  %v420_v9 = vld [vmem:[#allocation4 + $0x6] ss:$8 sm:$0x3] }
  0x20   : > { %s3624_s26 = sshll.u32 %s5114_s25, 4  ;;  %s4006_s15 = smov 15   ;;  %v461_v10 = vld [vmem:[#allocation4 + $0x11] ss:$8 sm:$0x3]  ;;  %v4165_v12 = vperm.slane %v452_v8, 0 }
  0x21   : > { %s313_s10 = scalar_lea.vmem %s5092_s0, %s3624_s26  ;;  %s4007_s16 = smov 1   ;;  %v436_v11 = vld [vmem:[#allocation4 + $0x7] ss:$8 sm:$0x3]  ;;  %vm432_vm0 = vcmp.lt.s32.totalorder %v4160_v6, 112  ;;  %vm416_vm2 = vcmp.lt.s32.totalorder %v4160_v6, 113 }
  0x22   : > { %v4124_v0 = vld [vmem:[%s313_s10] sm:$0xff]  ;;  %v4132_v1 = vld [vmem:[%s313_s10 + $0x8] sm:$0xff]  ;;  %s4008_s17 = smov 17   ;;  %s4009_s18 = smov 16   ;;  %vm448_vm3 = vcmp.lt.s32.totalorder %v4160_v6, 111  ;;  %v4167_v13 = vperm.slane %v452_v8, 1 }
  0x23   : > { %412 = vrot.lane.b32.xlu1 %v4124_v0, %s4002_s11  ;;  %444 = vrot.lane.b32.xlu0 %v4124_v0, %s4003_s12  ;;  %v4169_v14 = vperm.slane %v461_v10, 0  ;;  %v4171_v15 = vperm.slane %v461_v10, 1  ;;  %v4173_v16 = vperm.slane %v420_v9, 0  ;;  %v4175_v17 = vperm.slane %v436_v11, 0  ;;  %s4011_s27 = smov 120   ;;  %s4012_s24 = smov 121  }
  0x24   : > { %428 = vrot.lane.b32.xlu2 %v4124_v0, %s4004_s13  ;;  %5107 = vst [vmem:[#allocation12_spill] sm:$0xff] %v4167_v13  ;;  %v484_v21 = vsel %vm482_vm1, 4294967295, %v4010_v20  ;;  %v4178_v22 = vperm.slane %v420_v9, 1  ;;  %v4180_v23 = vperm.slane %v436_v11, 1  ;;  %vm400_vm5 = vcmp.lt.s32.totalorder %v4160_v6, 127  ;;  %s4013_s28 = smov 119  }
  0x25   : > { %5108 = vst [vmem:[#allocation13_spill] sm:$0xff] %v4175_v17  ;;  %v388_v26 = vld [vmem:[#allocation4 + $0x4] ss:$8 sm:$0x3]  ;;  %v4196_v34 = vsel %vm483_vm4, %v484_v21, 0  ;;  %vm375_vm6 = vcmp.lt.s32.totalorder %v4160_v6, 1 }
  0x26   : > { %5109 = vst [vmem:[#allocation14_spill] sm:$0xff] %v4180_v23  ;;  %v404_v27 = vld [vmem:[#allocation4 + $0x5] ss:$8 sm:$0x3]  ;;  %v4201_v38 = vperm.slane %v388_v26, 1  ;;  %v4207_v42 = vperm.slane %v388_v26, 0 }
  0x27   : > { %v4203_v39 = vperm.slane %v404_v27, 1  ;;  %v4209_v43 = vperm.slane %v404_v27, 0  ;;  %v363_v58 = vld [vmem:[#allocation4 + $0x2] ss:$8 sm:$0x3]  ;;  %vm359_vm7 = vcmp.lt.s32.totalorder %v4160_v6, 15 }
  0x28   : > { %v395_v52 = vmul.f32 %v4201_v38, %v4132_v1  ;;  %v394_v53 = vmul.f32 %v4207_v42, %v4124_v0  ;;  %v379_v59 = vld [vmem:[#allocation4 + $0x3] ss:$8 sm:$0x3]  ;;  %v4227_v60 = vperm.slane %v363_v58, 0  ;;  %vm328_vm8 = vcmp.lt.s32.totalorder %v4160_v6, 17  ;;  %s4014_s29 = smov 7  }
  0x29   : > { %v4229_v61 = vperm.slane %v379_v59, 0  ;;  %v347_v26 = vld [vmem:[#allocation4 + $0x1] ss:$8 sm:$0x3]  ;;  %vm343_vm9 = vcmp.lt.s32.totalorder %v4160_v6, 16  ;;  %vm478_vm10 = vcmask 596992  }
  0x2a   : > { %s4015_s30 = smov 8   ;;  %s4016_s9 = smov 9   ;;  %vm934_vm11 = vcmask 1040384   ;;  %vm930_vm12 = vcmask 138240   ;;  %vm1296_vm13 = vcmask 728064   ;;  %vm1704_vm14 = vcmask 7168  }
  0x2b   : > { %414 = vrot.lane.b32.xlu1 %v4132_v1, %s4002_s11  ;;  %446 = vrot.lane.b32.xlu0 %v4132_v1, %s4003_s12  ;;  %s4018_s26 = smov 125   ;;  %s4019_s7 = smov 124   ;;  %vm1873_vm15 = vcmask 269312   ;;  %vm2535_vm4 = vcmask 531456  }
  0x2c   : > { %430 = vrot.lane.b32.xlu2 %v4132_v1, %s4004_s13  ;;  %s4020_s8 = smov 3   ;;  %s4021_s10 = smov 123  }
  0x2d   : > { %s4022_s19 = smov 4   ;;  %s4023_s20 = smov 5  }
  0x33   : > { %398 = vrot.lane.b32.xlu1 %v4132_v1, %s4005_s14  ;;  %396 = vrot.lane.b32.xlu0 %v4124_v0, %s4005_s14 }
  0x34   : > { %355 = vrot.lane.b32.xlu2 %v4124_v0, %s4006_s15 }
  0x3b   : > { %371 = vrot.lane.b32.xlu1 %v4124_v0, %s4007_s16  ;;  %357 = vrot.lane.b32.xlu0 %v4132_v1, %s4006_s15 }
  0x3c   : > { %373 = vrot.lane.b32.xlu2 %v4132_v1, %s4007_s16 }
  0x43   : > { %324 = vrot.lane.b32.xlu1 %v4132_v1, %s4008_s17  ;;  %322 = vrot.lane.b32.xlu0 %v4124_v0, %s4008_s17 }
  0x44   : > { %339 = vrot.lane.b32.xlu2 %v4124_v0, %s4009_s18 }
  0x4b   : > { %341 = vrot.lane.b32.xlu0 %v4132_v1, %s4009_s18  ;;  %v4231_v1 = vperm.slane %v363_v58, 1 }
  0x7e   : > { %v429_v2 = vpop.permute.xlu2 %428 }
  0x86   : > { %v431_v7 = vpop.permute.xlu2 %430 }
  0x87   : > { %v433_v28 = vsel %vm432_vm0, %v429_v2, %v431_v7  ;;  %v434_v29 = vsel %vm432_vm0, %v431_v7, %v429_v2  ;;  %v4233_v2 = vperm.slane %v379_v59, 1 }
  0x88   : > { %v442_v40 = vmul.f32 %v4175_v17, %v433_v28  ;;  %v443_v41 = vmul.f32 %v4180_v23, %v434_v29 }
  0x8e   : > { %v356_v35 = vpop.permute.xlu2 %355 }
  0x95   : > { %v413_v4 = vpop.permute.xlu1 %412  ;;  %v445_v5 = vpop.permute.xlu0 %444 }
  0x96   : > { %v374_v62 = vpop.permute.xlu2 %373 }
  0x9d   : > { %v415_v18 = vpop.permute.xlu1 %414  ;;  %v447_v19 = vpop.permute.xlu0 %446 }
  0x9e   : > { %v449_v24 = vsel %vm448_vm3, %v445_v5, %v447_v19  ;;  %v450_v25 = vsel %vm448_vm3, %v447_v19, %v445_v5  ;;  %v417_v32 = vsel %vm416_vm2, %v413_v4, %v415_v18  ;;  %v418_v33 = vsel %vm416_vm2, %v415_v18, %v413_v4  ;;  %v340_v29 = vpop.permute.xlu2 %339 }
  0x9f   : > { %v458_v30 = vmul.f32 %v4165_v12, %v449_v24  ;;  %v459_v31 = vmul.f32 %v4167_v13, %v450_v25  ;;  %v426_v46 = vmul.f32 %v4173_v16, %v417_v32  ;;  %v427_v47 = vmul.f32 %v4178_v22, %v418_v33  ;;  %v331_v25 = vld [vmem:[#allocation4] ss:$8 sm:$0x3] }
  0xa0   : > { %v4248_v28 = vperm.slane %v331_v25, 0  ;;  %v4255_v32 = vperm.slane %v347_v26, 1 }
  0xa1   : > { %v475_v36 = vpack.c.bf16 %v4169_v14, %v458_v30  ;;  %v476_v37 = vpack.c.bf16 %v4171_v15, %v459_v31  ;;  %v473_v54 = vpack.c.bf16 %v442_v40, %v426_v46  ;;  %v474_v55 = vpack.c.bf16 %v443_v41, %v427_v47 }
  0xa2   : > { %v4251_v30 = vperm.slane %v347_v26, 0  ;;  %v4253_v31 = vperm.slane %v331_v25, 1 }
  0xa3   : > { %v487_v44 = vand.u32 %v4196_v34, %v475_v36  ;;  %v490_v45 = vand.u32 %v4196_v34, %v476_v37 }
  0xa5   : > { %v399_v48 = vpop.permute.xlu1 %398  ;;  %495 = vmatpush.bf16.msra.mxu0 %v487_v44  ;;  %508 = vmatpush.bf16.msra.mxu1 %v490_v45  ;;  %v397_v49 = vpop.permute.xlu0 %396 }
  0xa6   : > { %v401_v50 = vsel %vm400_vm5, %v397_v49, %v399_v48  ;;  %v402_v51 = vsel %vm400_vm5, %v399_v48, %v397_v49  ;;  %v477_v49 = vld [vmem:[#allocation2] sm:$0xf] }
  0xa7   : > { %v411_v56 = vmul.f32 %v4203_v39, %v402_v51  ;;  %v410_v57 = vmul.f32 %v4209_v43, %v401_v50 }
  0xa9   : > { %496 = vmatpush.bf16.msra.mxu0 %v473_v54  ;;  %509 = vmatpush.bf16.msra.mxu1 %v474_v55  ;;  %v472_v63 = vpack.c.bf16 %v411_v56, %v395_v52  ;;  %v471_v0 = vpack.c.bf16 %v410_v57, %v394_v53 }
  0xad   : > { %v372_v3 = vpop.permute.xlu1 %371  ;;  %510 = vmatpush.bf16.msra.mxu1 %v472_v63  ;;  %v358_v4 = vpop.permute.xlu0 %357  ;;  %497 = vmatpush.bf16.msra.mxu0 %v471_v0 }
  0xae   : > { %v376_v5 = vsel %vm375_vm6, %v372_v3, %v374_v62  ;;  %v377_v7 = vsel %vm375_vm6, %v374_v62, %v372_v3  ;;  %v360_v8 = vsel %vm359_vm7, %v356_v35, %v358_v4  ;;  %v361_v9 = vsel %vm359_vm7, %v358_v4, %v356_v35 }
  0xaf   : > { %v369_v10 = vmul.f32 %v4227_v60, %v361_v9  ;;  %v385_v11 = vmul.f32 %v4229_v61, %v377_v7  ;;  %v370_v18 = vmul.f32 %v4231_v1, %v360_v8  ;;  %v386_v19 = vmul.f32 %v4233_v2, %v376_v5 }
  0xb1   : > { %v469_v20 = vpack.c.bf16 %v385_v11, %v369_v10  ;;  %v470_v21 = vpack.c.bf16 %v386_v19, %v370_v18 }
  0xb3   : > { %498 = vmatpush.bf16.msra.mxu0 %v469_v20  ;;  %511 = vmatpush.bf16.msra.mxu1 %v470_v21 }
  0xb5   : > { %v323_v24 = vpop.permute.xlu0 %322  ;;  %v325_v27 = vpop.permute.xlu1 %324 }
  0xb6   : > { %v329_v33 = vsel %vm328_vm8, %v323_v24, %v325_v27  ;;  %v330_v35 = vsel %vm328_vm8, %v325_v27, %v323_v24 }
  0xb7   : > { %v337_v41 = vmul.f32 %v4248_v28, %v330_v35  ;;  %v338_v45 = vmul.f32 %v4253_v31, %v329_v33 }
  0xbd   : > { %v342_v36 = vpop.permute.xlu0 %341 }
  0xbe   : > { %v344_v37 = vsel %vm343_vm9, %v340_v29, %v342_v36  ;;  %v345_v40 = vsel %vm343_vm9, %v342_v36, %v340_v29 }
  0xbf   : > { %v353_v44 = vmul.f32 %v4251_v30, %v345_v40  ;;  %v354_v46 = vmul.f32 %v4255_v32, %v344_v37 }
  0xc1   : > { %v467_v47 = vpack.c.bf16 %v353_v44, %v337_v41  ;;  %v468_v48 = vpack.c.bf16 %v354_v46, %v338_v45  ;;  %v3633_v41 = vld [vmem:[%s5095_s3 + $0x38] sm:$0xff] }
  0xc2   : > { %v3641_v44 = vld [vmem:[%s5095_s3 + $0x78] sm:$0xff] }
  0xc3   : > { %499 = vmatpush.bf16.msra.mxu0 %v467_v47  ;;  %512 = vmatpush.bf16.msra.mxu1 %v468_v48 }
  0xc6   : > { %3057 = vmatmul.msk.bf16.vlgmr.msra.gmra.mxu0 %vm478_vm10, %v477_v49  ;;  %3058 = vmatmul.msk.bf16.vlgmr.msra.gmra.mxu1 %vm478_vm10, %v477_v49  ;;  %v3632_v49 = vld [vmem:[%s5095_s3 + $0x30] sm:$0xff] }
  0xc7   : > { %764 = vmatpush.bf16.msrb.mxu0 %v3633_v41  ;;  %777 = vmatpush.bf16.msrb.mxu1 %v3641_v44 }
  0xcb   : > { %765 = vmatpush.bf16.msrb.mxu0 %v3632_v49  ;;  %v3626_v49 = vld [vmem:[%s5095_s3] sm:$0xff] }
 0x143   : > { %v501_v50 = vpop.f32.mrf.mxu0  ;;  %v514_v51 = vpop.f32.mrf.mxu1 }
 0x144   : > { %v518_v52 = vmax.f32 %v501_v50, 0.0  ;;  %v519_v53 = vmax.f32 %v514_v51, 0.0  ;;  %v3640_v50 = vld [vmem:[%s5095_s3 + $0x70] sm:$0xff] }
 0x145   : > { %778 = vmatpush.bf16.msrb.mxu1 %v3640_v50  ;;  %v3634_v50 = vld [vmem:[%s5095_s3 + $0x40] sm:$0xff] }
 0x146   : > { %580 = vrot.lane.b32.xlu2 %v519_v53, %s4003_s12  ;;  %562 = vrot.lane.b32.xlu0 %v518_v52, %s4002_s11  ;;  %v552_v45 = vmul.f32 %v518_v52, %v4207_v42  ;;  %v553_v47 = vmul.f32 %v519_v53, %v4201_v38 }
 0x147   : > { %578 = vrot.lane.b32.xlu1 %v518_v52, %s4003_s12 }
 0x14b   : > { %v503_v54 = vpop.f32.mrf.mxu0  ;;  %v516_v55 = vpop.f32.mrf.mxu1 }
 0x14e   : > { %570 = vrot.lane.b32.xlu2 %v518_v52, %s4004_s13  ;;  %572 = vrot.lane.b32.xlu0 %v519_v53, %s4004_s13 }
 0x14f   : > { %564 = vrot.lane.b32.xlu1 %v519_v53, %s4002_s11 }
 0x156   : > { %556 = vrot.lane.b32.xlu2 %v519_v53, %s4005_s14  ;;  %536 = vrot.lane.b32.xlu0 %v518_v52, %s4006_s15 }
 0x157   : > { %554 = vrot.lane.b32.xlu1 %v518_v52, %s4005_s14 }
 0x15e   : > { %544 = vrot.lane.b32.xlu2 %v518_v52, %s4007_s16  ;;  %546 = vrot.lane.b32.xlu0 %v519_v53, %s4007_s16 }
 0x15f   : > { %538 = vrot.lane.b32.xlu1 %v519_v53, %s4006_s15 }
 0x166   : > { %522 = vrot.lane.b32.xlu2 %v519_v53, %s4008_s17  ;;  %528 = vrot.lane.b32.xlu0 %v518_v52, %s4009_s18 }
 0x167   : > { %520 = vrot.lane.b32.xlu1 %v518_v52, %s4008_s17 }
 0x16f   : > { %530 = vrot.lane.b32.xlu1 %v519_v53, %s4009_s18  ;;  %v3631_v53 = vld [vmem:[%s5095_s3 + $0x28] sm:$0xff] }
 0x170   : > { %766 = vmatpush.bf16.msrb.mxu0 %v3631_v53 }
 0x1a0   : > { %v581_v56 = vpop.permute.xlu2 %580 }
 0x1a8   : > { %v571_v3 = vpop.permute.xlu2 %570 }
 0x1b0   : > { %v557_v33 = vpop.permute.xlu2 %556 }
 0x1b8   : > { %v563_v57 = vpop.permute.xlu0 %562  ;;  %v545_v52 = vpop.permute.xlu2 %544 }
 0x1b9   : > { %v579_v58 = vpop.permute.xlu1 %578 }
 0x1ba   : > { %v582_v59 = vsel %vm448_vm3, %v579_v58, %v581_v56  ;;  %v583_v62 = vsel %vm448_vm3, %v581_v56, %v579_v58  ;;  %v3639_v56 = vld [vmem:[%s5095_s3 + $0x68] sm:$0xff] }
 0x1bb   : > { %v584_v63 = vmul.f32 %v582_v59, %v4165_v12  ;;  %v585_v0 = vmul.f32 %v583_v62, %v4167_v13  ;;  %779 = vmatpush.bf16.msrb.mxu1 %v3639_v56 }
 0x1bd   : > { %v594_v4 = vpack.c.bf16 %v4169_v14, %v584_v63  ;;  %v595_v5 = vpack.c.bf16 %v4171_v15, %v585_v0 }
 0x1bf   : > { %v601_v7 = vand.u32 %v594_v4, %v4196_v34  ;;  %v604_v8 = vand.u32 %v595_v5, %v4196_v34 }
 0x1c0   : > { %v573_v9 = vpop.permute.xlu0 %572 }
 0x1c1   : > { %v574_v10 = vsel %vm432_vm0, %v571_v3, %v573_v9  ;;  %v575_v11 = vsel %vm432_vm0, %v573_v9, %v571_v3  ;;  %609 = vmatpush.bf16.msra.mxu2 %v601_v7  ;;  %622 = vmatpush.bf16.msra.mxu3 %v604_v8  ;;  %v565_v18 = vpop.permute.xlu1 %564  ;;  %v3630_v7 = vld [vmem:[%s5095_s3 + $0x20] sm:$0xff] }
 0x1c2   : > { %v566_v19 = vsel %vm416_vm2, %v563_v57, %v565_v18  ;;  %v567_v20 = vsel %vm416_vm2, %v565_v18, %v563_v57  ;;  %v576_v21 = vmul.f32 %v574_v10, %v4175_v17  ;;  %v577_v24 = vmul.f32 %v575_v11, %v4180_v23  ;;  %v3638_v8 = vld [vmem:[%s5095_s3 + $0x60] sm:$0xff]  ;;  %767 = vmatpush.bf16.msrb.mxu0 %v3630_v7  ;;  %v3629_v11 = vld [vmem:[%s5095_s3 + $0x18] sm:$0xff] }
 0x1c3   : > { %v568_v25 = vmul.f32 %v566_v19, %v4173_v16  ;;  %v569_v26 = vmul.f32 %v567_v20, %v4178_v22  ;;  %780 = vmatpush.bf16.msrb.mxu1 %v3638_v8  ;;  %v3637_v18 = vld [vmem:[%s5095_s3 + $0x58] sm:$0xff]  ;;  %v3628_v20 = vld [vmem:[%s5095_s3 + $0x10] sm:$0xff] }
 0x1c4   : > { %v4409_v7 = vld [vmem:[#allocation4 + $0x31] ss:$0 sm:$0xff] }
 0x1c5   : > { %v592_v27 = vpack.c.bf16 %v576_v21, %v568_v25  ;;  %v593_v29 = vpack.c.bf16 %v577_v24, %v569_v26  ;;  %v3636_v21 = vld [vmem:[%s5095_s3 + $0x50] sm:$0xff]  ;;  %v523_v24 = vpop.permute.xlu2 %522 }
 0x1c6   : > { %768 = vmatpush.bf16.msrb.mxu0 %v3629_v11  ;;  %v818_v11 = vld [vmem:[#allocation4 + $0x27] ss:$0 sm:$0xff] }
 0x1c7   : > { %610 = vmatpush.bf16.msra.mxu2 %v592_v27  ;;  %623 = vmatpush.bf16.msra.mxu3 %v593_v29  ;;  %v3627_v27 = vld [vmem:[%s5095_s3 + $0x8] sm:$0xff] }
 0x1c8   : > { %v537_v35 = vpop.permute.xlu0 %536  ;;  %781 = vmatpush.bf16.msrb.mxu1 %v3637_v18  ;;  %v3635_v29 = vld [vmem:[%s5095_s3 + $0x48] sm:$0xff] }
 0x1c9   : > { %v555_v36 = vpop.permute.xlu1 %554  ;;  %v4414_v18 = vld [vmem:[#allocation4 + $0x26] ss:$0 sm:$0xff] }
 0x1ca   : > { %v558_v37 = vsel %vm400_vm5, %v555_v36, %v557_v33  ;;  %v559_v40 = vsel %vm400_vm5, %v557_v33, %v555_v36  ;;  %769 = vmatpush.bf16.msrb.mxu0 %v3628_v20  ;;  %v4416_v20 = vld [vmem:[#allocation4 + $0x25] ss:$0 sm:$0xff] }
 0x1cb   : > { %v560_v46 = vmul.f32 %v558_v37, %v4209_v43  ;;  %v561_v48 = vmul.f32 %v559_v40, %v4203_v39 }
 0x1cc   : > { %782 = vmatpush.bf16.msrb.mxu1 %v3636_v21 }
 0x1cd   : > { %v590_v51 = vpack.c.bf16 %v560_v46, %v552_v45  ;;  %v591_v54 = vpack.c.bf16 %v561_v48, %v553_v47  ;;  %v596_v48 = vld [vmem:[#allocation2 + $0x18] sm:$0xf] }
 0x1ce   : > { %770 = vmatpush.bf16.msrb.mxu0 %v3627_v27  ;;  %v4419_v27 = vld [vmem:[#allocation4 + $0x24] ss:$0 sm:$0xff] }
 0x1cf   : > { %611 = vmatpush.bf16.msra.mxu2 %v590_v51  ;;  %624 = vmatpush.bf16.msra.mxu3 %v591_v54 }
 0x1d0   : > { %v547_v55 = vpop.permute.xlu0 %546  ;;  %783 = vmatpush.bf16.msrb.mxu1 %v3635_v29 }
 0x1d1   : > { %v548_v57 = vsel %vm375_vm6, %v545_v52, %v547_v55  ;;  %v549_v58 = vsel %vm375_vm6, %v547_v55, %v545_v52  ;;  %v539_v59 = vpop.permute.xlu1 %538 }
 0x1d2   : > { %v540_v62 = vsel %vm359_vm7, %v537_v35, %v539_v59  ;;  %v541_v63 = vsel %vm359_vm7, %v539_v59, %v537_v35  ;;  %v550_v0 = vmul.f32 %v549_v58, %v4229_v61  ;;  %v551_v3 = vmul.f32 %v548_v57, %v4233_v2  ;;  %771 = vmatpush.bf16.msrb.mxu0 %v3626_v49 }
 0x1d3   : > { %v542_v4 = vmul.f32 %v541_v63, %v4227_v60  ;;  %v543_v5 = vmul.f32 %v540_v62, %v4231_v1 }
 0x1d4   : > { %784 = vmatpush.bf16.msrb.mxu1 %v3634_v50  ;;  %v4431_v50 = vld [vmem:[#allocation4 + $0x21] ss:$0 sm:$0xff] }
 0x1d5   : > { %v588_v9 = vpack.c.bf16 %v550_v0, %v542_v4  ;;  %v589_v10 = vpack.c.bf16 %v551_v3, %v543_v5  ;;  %v4407_v4 = vld [vmem:[#allocation4 + $0x30] ss:$0 sm:$0xff] }
 0x1d7   : > { %612 = vmatpush.bf16.msra.mxu2 %v588_v9  ;;  %625 = vmatpush.bf16.msra.mxu3 %v589_v10 }
 0x1d8   : > { %v529_v33 = vpop.permute.xlu0 %528 }
 0x1d9   : > { %v521_v19 = vpop.permute.xlu1 %520 }
 0x1da   : > { %v524_v25 = vsel %vm328_vm8, %v521_v19, %v523_v24  ;;  %v525_v26 = vsel %vm328_vm8, %v523_v24, %v521_v19 }
 0x1db   : > { %v526_v40 = vmul.f32 %v525_v26, %v4248_v28  ;;  %v527_v44 = vmul.f32 %v524_v25, %v4253_v31 }
 0x1e1   : > { %v531_v35 = vpop.permute.xlu1 %530 }
 0x1e2   : > { %v532_v36 = vsel %vm343_vm9, %v529_v33, %v531_v35  ;;  %v533_v37 = vsel %vm343_vm9, %v531_v35, %v529_v33 }
 0x1e3   : > { %v534_v41 = vmul.f32 %v533_v37, %v4251_v30  ;;  %v535_v45 = vmul.f32 %v532_v36, %v4255_v32  ;;  %v4423_v36 = vld [vmem:[#allocation4 + $0x23] ss:$0 sm:$0xff]  ;;  %v4425_v37 = vld [vmem:[#allocation4 + $0x22] ss:$0 sm:$0xff] }
 0x1e5   : > { %v586_v46 = vpack.c.bf16 %v534_v41, %v526_v40  ;;  %v587_v47 = vpack.c.bf16 %v535_v45, %v527_v44 }
 0x1e7   : > { %613 = vmatpush.bf16.msra.mxu2 %v586_v46  ;;  %626 = vmatpush.bf16.msra.mxu3 %v587_v47 }
 0x1ea   : > { %3059 = vmatmul.msk.bf16.vlgmr.msra.gmra.mxu2 %vm478_vm10, %v596_v48  ;;  %3060 = vmatmul.msk.bf16.vlgmr.msra.gmra.mxu3 %vm478_vm10, %v596_v48  ;;  %v4429_v48 = vld [vmem:[#allocation4 + $0x20] ss:$0 sm:$0xff] }
 0x26d   : > { %v615_v51 = vpop.f32.mrf.mxu2  ;;  %v628_v54 = vpop.f32.mrf.mxu3 }
 0x26e   : > { %v4391_v52 = vmax.f32 %v615_v51, 0.0  ;;  %v4393_v55 = vmax.f32 %v628_v54, 0.0 }
 0x270   : > { %v666_v53 = vpack.c.bf16 %v4391_v52, %v4391_v52  ;;  %v667_v56 = vpack.c.bf16 %v4393_v55, %v4393_v55 }
 0x272   : > { %772 = vmatmul.bf16.vlgmr.msrb.gmra.mxu0 %v666_v53  ;;  %785 = vmatmul.bf16.vlgmr.msrb.gmra.mxu1 %v667_v56  ;;  %v3127_v56 = vld [vmem:[#allocation2 + $0x30] sm:$0xf] }
 0x275   : > { %v617_v57 = vpop.f32.mrf.mxu2  ;;  %v630_v58 = vpop.f32.mrf.mxu3 }
 0x276   : > { %v3642_v57 = vld [vmem:[#allocation2 + $0x38] sm:$0xf0] }
 0x2ef   : > { %v773_v59 = vpop.f32.mrf.mxu0  ;;  %v786_v62 = vpop.f32.mrf.mxu1 }
 0x2f0   : > { %v787_v63 = vadd.f32 %v786_v62, %v773_v59  ;;  %v3128_v59 = vor.u32 %v3642_v57, %v3127_v56 }
 0x2f2   : > { %816 = vrot.lane.b32.xlu1 %v787_v63, %s4011_s27  ;;  %812 = vrot.lane.b32.xlu0 %v787_v63, %s4012_s24  ;;  %v807_v35 = vmul.f32 %v4419_v27, %v787_v63 }
 0x2f3   : > { %820 = vrot.lane.b32.xlu2 %v787_v63, %s4013_s28 }
 0x2f7   : > { %v775_v0 = vpop.f32.mrf.mxu0  ;;  %v788_v3 = vpop.f32.mrf.mxu1 }
 0x2fa   : > { %802 = vrot.lane.b32.xlu1 %v787_v63, %s4007_s16  ;;  %798 = vrot.lane.b32.xlu0 %v787_v63, %s4014_s29 }
 0x2fb   : > { %808 = vrot.lane.b32.xlu2 %v787_v63, %s4005_s14 }
 0x302   : > { %794 = vrot.lane.b32.xlu0 %v787_v63, %s4015_s30 }
 0x303   : > { %790 = vrot.lane.b32.xlu2 %v787_v63, %s4016_s9 }
 0x34d   : > { %v821_v5 = vpop.permute.xlu2 %820 }
 0x34e   : > { %v823_v8 = vmul.f32 %v4407_v4, %v821_v5 }
 0x350   : > { %v829_v9 = vpack.c.bf16 %v4409_v7, %v823_v8 }
 0x352   : > { %v841_v10 = vand.u32 %v829_v9, %v4196_v34 }
 0x354   : > { %846 = vmatpush.bf16.msrb.mxu2 %v841_v10 }
 0x355   : > { %v809_v19 = vpop.permute.xlu2 %808 }
 0x356   : > { %v811_v29 = vmul.f32 %v4416_v20, %v809_v19 }
 0x358   : > { %v827_v40 = vpack.c.bf16 %v811_v29, %v807_v35  ;;  %v918_v29 = vpack.c.bf16 %v4409_v7, %v4409_v7  ;;  %v4017_v35 = vmov 0  }
 0x35d   : > { %v791_v49 = vpop.permute.xlu2 %790 }
 0x35e   : > { %v793_v54 = vmul.f32 %v4429_v48, %v791_v49 }
 0x364   : > { %v817_v21 = vpop.permute.xlu1 %816  ;;  %v813_v24 = vpop.permute.xlu0 %812 }
 0x365   : > { %v819_v25 = vmul.f32 %v818_v11, %v817_v21  ;;  %v815_v26 = vmul.f32 %v4414_v18, %v813_v24 }
 0x367   : > { %v828_v33 = vpack.c.bf16 %v819_v25, %v815_v26 }
 0x369   : > { %847 = vmatpush.bf16.msrb.mxu2 %v828_v33 }
 0x36c   : > { %v803_v41 = vpop.permute.xlu1 %802  ;;  %v799_v44 = vpop.permute.xlu0 %798 }
 0x36d   : > { %v805_v45 = vmul.f32 %v4423_v36, %v803_v41  ;;  %v801_v46 = vmul.f32 %v4425_v37, %v799_v44  ;;  %848 = vmatpush.bf16.msrb.mxu2 %v827_v40  ;;  %v4456_v40 = vsel %vm934_vm11, 65535, %v4017_v35 }
 0x36f   : > { %v826_v47 = vpack.c.bf16 %v805_v45, %v801_v46  ;;  %v4459_v45 = vand.u32 %v4456_v40, %v918_v29 }
 0x371   : > { %849 = vmatpush.bf16.msrb.mxu2 %v826_v47 }
 0x374   : > { %v795_v51 = vpop.permute.xlu0 %794 }
 0x375   : > { %v797_v53 = vmul.f32 %v4431_v50, %v795_v51 }
 0x377   : > { %v825_v58 = vpack.c.bf16 %v797_v53, %v793_v54  ;;  %v3651_v54 = vld [vmem:[%s5095_s3 + $0xb0] sm:$0xff] }
 0x379   : > { %850 = vmatpush.bf16.msrb.mxu2 %v825_v58  ;;  %v3650_v58 = vld [vmem:[%s5095_s3 + $0xa8] sm:$0xff] }
 0x37c   : > { %3129 = vmatmul.msk.bf16.vlgmr.msrb.gmra.mxu2 %vm478_vm10, %v3128_v59 }
 0x37d   : > { %960 = vmatpush.bf16.msra.mxu2 %v4459_v45 }
 0x3ff   : > { %v852_v62 = vpop.f32.mrf.mxu2 }
 0x400   : > { %v857_v63 = vmax.f32 %v852_v62, 0.0 }
 0x402   : > { %891 = vrot.lane.b32.xlu0 %v857_v63, %s4012_s24  ;;  %897 = vrot.lane.b32.xlu1 %v857_v63, %s4011_s27  ;;  %v883_v5 = vmul.f32 %v857_v63, %v4419_v27 }
 0x407   : > { %v854_v0 = vpop.f32.mrf.mxu2 }
 0x408   : > { %v858_v3 = vmax.f32 %v854_v0, 0.0 }
 0x40a   : > { %877 = vrot.lane.b32.xlu1 %v857_v63, %s4007_s16  ;;  %887 = vrot.lane.b32.xlu0 %v858_v3, %s4005_s14  ;;  %v884_v8 = vmul.f32 %v858_v3, %v4419_v27 }
 0x40b   : > { %899 = vrot.lane.b32.xlu2 %v858_v3, %s4011_s27 }
 0x40c   : > { %v913_v9 = vpack.c.bf16 %v884_v8, %v883_v5 }
 0x412   : > { %871 = vrot.lane.b32.xlu0 %v857_v63, %s4014_s29  ;;  %893 = vrot.lane.b32.xlu1 %v858_v3, %s4012_s24 }
 0x413   : > { %885 = vrot.lane.b32.xlu2 %v857_v63, %s4005_s14 }
 0x41a   : > { %867 = vrot.lane.b32.xlu0 %v858_v3, %s4015_s30  ;;  %859 = vrot.lane.b32.xlu1 %v857_v63, %s4016_s9 }
 0x41b   : > { %879 = vrot.lane.b32.xlu2 %v858_v3, %s4007_s16 }
 0x422   : > { %903 = vrot.lane.b32.xlu0 %v857_v63, %s4013_s28  ;;  %873 = vrot.lane.b32.xlu1 %v858_v3, %s4014_s29 }
 0x423   : > { %865 = vrot.lane.b32.xlu2 %v857_v63, %s4015_s30  ;;  %v3649_v63 = vld [vmem:[%s5095_s3 + $0xa0] sm:$0xff] }
 0x42a   : > { %905 = vrot.lane.b32.xlu1 %v858_v3, %s4013_s28 }
 0x42b   : > { %861 = vrot.lane.b32.xlu2 %v858_v3, %s4016_s9 }
 0x465   : > { %v900_v10 = vpop.permute.xlu2 %899 }
 0x466   : > { %v902_v24 = vmul.f32 %v900_v10, %v818_v11 }
 0x46d   : > { %v886_v33 = vpop.permute.xlu2 %885 }
 0x46e   : > { %v889_v57 = vmul.f32 %v886_v33, %v4416_v20 }
 0x474   : > { %v892_v19 = vpop.permute.xlu0 %891  ;;  %v898_v21 = vpop.permute.xlu1 %897 }
 0x475   : > { %v901_v25 = vmul.f32 %v898_v21, %v818_v11  ;;  %v3652_v11 = vld [vmem:[%s5095_s3 + $0xb8] sm:$0xff]  ;;  %v895_v7 = vmul.f32 %v892_v19, %v4414_v18  ;;  %v880_v49 = vpop.permute.xlu2 %879 }
 0x476   : > { %1035 = vmatpush.bf16.msra.mxu0 %v3652_v11  ;;  %v882_v8 = vmul.f32 %v880_v49, %v4423_v36  ;;  %v3644_v49 = vld [vmem:[#allocation2 + $0x50] sm:$0xf0] }
 0x477   : > { %v916_v26 = vpack.c.bf16 %v902_v24, %v901_v25 }
 0x479   : > { %940 = vmatpush.bf16.msrb.mxu3 %v916_v26 }
 0x47a   : > { %1036 = vmatpush.bf16.msra.mxu0 %v3651_v54  ;;  %v3134_v54 = vld [vmem:[#allocation2 + $0x54] sm:$0xf0] }
 0x47c   : > { %v878_v41 = vpop.permute.xlu1 %877  ;;  %v888_v44 = vpop.permute.xlu0 %887 }
 0x47d   : > { %v890_v53 = vmul.f32 %v888_v44, %v4416_v20  ;;  %v881_v0 = vmul.f32 %v878_v41, %v4423_v36  ;;  %v866_v3 = vpop.permute.xlu2 %865 }
 0x47e   : > { %1037 = vmatpush.bf16.msra.mxu0 %v3650_v58  ;;  %v869_v29 = vmul.f32 %v866_v3, %v4431_v50 }
 0x47f   : > { %v914_v59 = vpack.c.bf16 %v890_v53, %v889_v57  ;;  %v912_v10 = vpack.c.bf16 %v882_v8, %v881_v0 }
 0x482   : > { %1038 = vmatpush.bf16.msra.mxu0 %v3649_v63 }
 0x484   : > { %v894_v46 = vpop.permute.xlu1 %893  ;;  %v872_v51 = vpop.permute.xlu0 %871 }
 0x485   : > { %v896_v47 = vmul.f32 %v894_v46, %v4414_v18  ;;  %v875_v21 = vmul.f32 %v872_v51, %v4425_v37  ;;  %v862_v33 = vpop.permute.xlu2 %861  ;;  %v3132_v46 = vld [vmem:[#allocation2 + $0x48] sm:$0xf]  ;;  %v3643_v51 = vld [vmem:[#allocation2 + $0x4c] sm:$0xf] }
 0x486   : > { %v864_v11 = vmul.f32 %v862_v33, %v4429_v48  ;;  %v3133_v57 = vor.u32 %v3644_v49, %v3132_v46  ;;  %v3137_v58 = vor.u32 %v3643_v51, %v3134_v54  ;;  %v4523_v33 = vld [vmem:[#allocation4 + $0x51] ss:$0 sm:$0xff] }
 0x487   : > { %v915_v56 = vpack.c.bf16 %v896_v47, %v895_v7 }
 0x489   : > { %941 = vmatpush.bf16.msrb.mxu3 %v915_v56 }
 0x48c   : > { %v860_v62 = vpop.permute.xlu1 %859  ;;  %v868_v5 = vpop.permute.xlu0 %867 }
 0x48d   : > { %942 = vmatpush.bf16.msrb.mxu3 %v914_v59  ;;  %v870_v25 = vmul.f32 %v868_v5, %v4431_v50  ;;  %v863_v41 = vmul.f32 %v860_v62, %v4429_v48  ;;  %v3648_v48 = vld [vmem:[%s5095_s3 + $0x98] sm:$0xff]  ;;  %v3646_v59 = vld [vmem:[%s5095_s3 + $0x88] sm:$0xff]  ;;  %v3645_v62 = vld [vmem:[%s5095_s3 + $0x80] sm:$0xff] }
 0x48e   : > { %1039 = vmatpush.bf16.msra.mxu0 %v3648_v48 }
 0x48f   : > { %v910_v44 = vpack.c.bf16 %v870_v25, %v869_v29  ;;  %v909_v56 = vpack.c.bf16 %v864_v11, %v863_v41 }
 0x491   : > { %943 = vmatpush.bf16.msrb.mxu3 %v913_v9 }
 0x494   : > { %v874_v19 = vpop.permute.xlu1 %873  ;;  %v904_v35 = vpop.permute.xlu0 %903 }
 0x495   : > { %v876_v24 = vmul.f32 %v874_v19, %v4425_v37  ;;  %944 = vmatpush.bf16.msrb.mxu3 %v912_v10  ;;  %v907_v7 = vmul.f32 %v904_v35, %v4407_v4  ;;  %v1118_v35 = vpack.c.bf16 %v4523_v33, %v4523_v33 }
 0x497   : > { %v911_v26 = vpack.c.bf16 %v876_v24, %v875_v21  ;;  %v1144_v41 = vand.u32 %v1118_v35, %v4456_v40  ;;  %v4546_v35 = vld [vmem:[#allocation4 + $0x50] ss:$0 sm:$0xff] }
 0x499   : > { %945 = vmatpush.bf16.msrb.mxu3 %v911_v26 }
 0x49c   : > { %v906_v9 = vpop.permute.xlu1 %905 }
 0x49d   : > { %v908_v47 = vmul.f32 %v906_v9, %v4407_v4  ;;  %946 = vmatpush.bf16.msrb.mxu3 %v910_v44  ;;  %v3647_v4 = vld [vmem:[%s5095_s3 + $0x90] sm:$0xff] }
 0x49e   : > { %1040 = vmatpush.bf16.msra.mxu0 %v3647_v4  ;;  %v4536_v4 = vld [vmem:[#allocation4 + $0x45] ss:$0 sm:$0xff] }
 0x49f   : > { %v917_v53 = vpack.c.bf16 %v908_v47, %v907_v7  ;;  %v4528_v7 = vld [vmem:[#allocation4 + $0x47] ss:$0 sm:$0xff] }
 0x4a1   : > { %947 = vmatpush.bf16.msrb.mxu3 %v909_v56  ;;  %961 = vmatpush.bf16.msra.mxu2 %v917_v53  ;;  %v4532_v53 = vld [vmem:[#allocation4 + $0x46] ss:$0 sm:$0xff] }
 0x4a2   : > { %1041 = vmatpush.bf16.msra.mxu0 %v3646_v59 }
 0x4a4   : > { %948 = vmatmul.bf16.vlgmr.msrb.gmra.mxu3 %v3133_v57  ;;  %3138 = vmatmul.msk.bf16.vlgmr.msra.gmra.mxu2 %vm930_vm12, %v3137_v58 }
 0x4a5   : > { %1170 = vmatpush.bf16.msra.mxu3 %v1144_v41 }
 0x4a6   : > { %1042 = vmatpush.bf16.msra.mxu0 %v3645_v62 }
 0x527   : > { %v949_v63 = vpop.f32.mrf.mxu3  ;;  %v963_v0 = vpop.f32.mrf.mxu2 }
 0x528   : > { %v964_v3 = vadd.f32 %v963_v0, %v949_v63 }
 0x52a   : > { %v4501_v19 = vmax.f32 %v964_v3, 0.0 }
 0x52f   : > { %v951_v5 = vpop.f32.mrf.mxu3  ;;  %v965_v8 = vpop.f32.mrf.mxu2 }
 0x530   : > { %v966_v10 = vadd.f32 %v965_v8, %v951_v5  ;;  %v4540_v5 = vld [vmem:[#allocation4 + $0x44] ss:$0 sm:$0xff] }
 0x532   : > { %v4503_v21 = vmax.f32 %v966_v10, 0.0 }
 0x534   : > { %v986_v24 = vpack.c.bf16 %v4503_v21, %v4501_v19 }
 0x536   : > { %1043 = vmatmul.bf16.vlgmr.msra.gmra.mxu0 %v986_v24 }
 0x5b3   : > { %v1044_v25 = vpop.f32.mrf.mxu0 }
 0x5b4   : > { %1080 = vrot.lane.b32.xlu0 %v1044_v25, %s4005_s14  ;;  %1087 = vrot.lane.b32.xlu1 %v1044_v25, %s4018_s26  ;;  %v1078_v24 = vmul.f32 %v4540_v5, %v1044_v25 }
 0x5b5   : > { %1094 = vrot.lane.b32.xlu2 %v1044_v25, %s4019_s7 }
 0x5bb   : > { %v1046_v26 = vpop.f32.mrf.mxu0 }
 0x5bc   : > { %1082 = vrot.lane.b32.xlu1 %v1046_v26, %s4005_s14  ;;  %1096 = vrot.lane.b32.xlu0 %v1046_v26, %s4019_s7  ;;  %v1079_v10 = vmul.f32 %v4540_v5, %v1046_v26 }
 0x5bd   : > { %1070 = vrot.lane.b32.xlu2 %v1044_v25, %s4007_s16 }
 0x5c4   : > { %1063 = vrot.lane.b32.xlu1 %v1044_v25, %s4020_s8  ;;  %1101 = vrot.lane.b32.xlu0 %v1044_v25, %s4021_s10 }
 0x5c5   : > { %1089 = vrot.lane.b32.xlu2 %v1046_v26, %s4018_s26 }
 0x5cc   : > { %1103 = vrot.lane.b32.xlu1 %v1046_v26, %s4021_s10  ;;  %1072 = vrot.lane.b32.xlu0 %v1046_v26, %s4007_s16 }
 0x5cd   : > { %1056 = vrot.lane.b32.xlu2 %v1044_v25, %s4022_s19 }
 0x5d4   : > { %1049 = vrot.lane.b32.xlu1 %v1044_v25, %s4023_s20  ;;  %1058 = vrot.lane.b32.xlu0 %v1046_v26, %s4022_s19  ;;  %v4552_v25 = vld [vmem:[#allocation4 + $0x42] ss:$0 sm:$0xff] }
 0x5d5   : > { %1065 = vrot.lane.b32.xlu2 %v1046_v26, %s4020_s8 }
 0x5dd   : > { %1051 = vrot.lane.b32.xlu2 %v1046_v26, %s4023_s20  ;;  %v3653_v26 = vld [vmem:[#allocation2 + $0x64] sm:$0xf] }
 0x60f   : > { %v1095_v29 = vpop.permute.xlu2 %1094 }
 0x610   : > { %v1099_v51 = vmul.f32 %v4528_v7, %v1095_v29  ;;  %v4544_v29 = vld [vmem:[#allocation4 + $0x43] ss:$0 sm:$0xff] }
 0x617   : > { %v1071_v44 = vpop.permute.xlu2 %1070 }
 0x61f   : > { %v1090_v11 = vpop.permute.xlu2 %1089 }
 0x620   : > { %v1093_v58 = vmul.f32 %v4532_v53, %v1090_v11 }
 0x626   : > { %v1081_v9 = vpop.permute.xlu0 %1080  ;;  %v1088_v46 = vpop.permute.xlu1 %1087 }
 0x627   : > { %v1092_v56 = vmul.f32 %v4532_v53, %v1088_v46  ;;  %v1057_v48 = vpop.permute.xlu2 %1056  ;;  %v1085_v3 = vmul.f32 %v4536_v4, %v1081_v9  ;;  %v1113_v46 = vpack.c.bf16 %v1079_v10, %v1078_v24 }
 0x629   : > { %v1115_v59 = vpack.c.bf16 %v1093_v58, %v1092_v56  ;;  %v3175_v56 = vld [vmem:[#allocation2 + $0x6c] sm:$0xf0] }
 0x62e   : > { %v1083_v47 = vpop.permute.xlu1 %1082  ;;  %v1097_v49 = vpop.permute.xlu0 %1096 }
 0x62f   : > { %v1100_v54 = vmul.f32 %v4528_v7, %v1097_v49  ;;  %v1086_v62 = vmul.f32 %v4536_v4, %v1083_v47  ;;  %v1066_v41 = vpop.permute.xlu2 %1065  ;;  %v1075_v49 = vmul.f32 %v4544_v29, %v1071_v44  ;;  %v4556_v44 = vld [vmem:[#allocation4 + $0x41] ss:$0 sm:$0xff] }
 0x630   : > { %v1061_v24 = vmul.f32 %v4556_v44, %v1057_v48 }
 0x631   : > { %v1116_v57 = vpack.c.bf16 %v1100_v54, %v1099_v51  ;;  %v1114_v8 = vpack.c.bf16 %v1086_v62, %v1085_v3  ;;  %v3178_v62 = vor.u32 %v3653_v26, %v3175_v56  ;;  %v1069_v3 = vmul.f32 %v4552_v25, %v1066_v41 }
 0x633   : > { %1146 = vmatpush.bf16.msra.mxu1 %v1116_v57 }
 0x636   : > { %v1064_v63 = vpop.permute.xlu1 %1063  ;;  %v1102_v0 = vpop.permute.xlu0 %1101 }
 0x637   : > { %1147 = vmatpush.bf16.msra.mxu1 %v1115_v59  ;;  %v1106_v9 = vmul.f32 %v4546_v35, %v1102_v0  ;;  %v1068_v57 = vmul.f32 %v4552_v25, %v1064_v63  ;;  %v4561_v63 = vld [vmem:[#allocation4 + $0x40] ss:$0 sm:$0xff] }
 0x639   : > { %v1111_v0 = vpack.c.bf16 %v1069_v3, %v1068_v57 }
 0x63b   : > { %1148 = vmatpush.bf16.msra.mxu1 %v1114_v8 }
 0x63e   : > { %v1104_v11 = vpop.permute.xlu1 %1103  ;;  %v1073_v47 = vpop.permute.xlu0 %1072 }
 0x63f   : > { %v1107_v51 = vmul.f32 %v4546_v35, %v1104_v11  ;;  %v1076_v54 = vmul.f32 %v4544_v29, %v1073_v47  ;;  %1149 = vmatpush.bf16.msra.mxu1 %v1113_v46  ;;  %v1052_v11 = vpop.permute.xlu2 %1051 }
 0x641   : > { %v1117_v58 = vpack.c.bf16 %v1107_v51, %v1106_v9  ;;  %v1112_v59 = vpack.c.bf16 %v1076_v54, %v1075_v49  ;;  %v1055_v49 = vmul.f32 %v4561_v63, %v1052_v11  ;;  %v3173_v9 = vld [vmem:[#allocation2 + $0x60] sm:$0xf]  ;;  %v3654_v51 = vld [vmem:[#allocation2 + $0x68] sm:$0xf0]  ;;  %v1121_v54 = vld [vmem:[#allocation2 + $0x78] sm:$0xff] }
 0x642   : > { %v3174_v56 = vor.u32 %v3654_v51, %v3173_v9  ;;  %v1130_v57 = vunpack.c.h.b16 %v1121_v54 }
 0x643   : > { %1150 = vmatpush.bf16.msra.mxu1 %v1112_v59  ;;  %1171 = vmatpush.bf16.msra.mxu3 %v1117_v58  ;;  %v1129_v58 = vunpack.c.l.b16 %v1121_v54 }
 0x644   : > { %v1134_v48 = vpack.c.b16 %v1130_v57, %v1130_v57 }
 0x645   : > { %v1133_v59 = vpack.c.b16 %v1129_v58, %v1129_v58 }
 0x646   : > { %v1050_v8 = vpop.permute.xlu1 %1049  ;;  %3179 = vmatmul.msk.bf16.vlgmr.msra.gmra.mxu3 %vm930_vm12, %v3178_v62  ;;  %v1059_v10 = vpop.permute.xlu0 %1058 }
 0x647   : > { %v1062_v46 = vmul.f32 %v4556_v44, %v1059_v10  ;;  %1151 = vmatpush.bf16.msra.mxu1 %v1111_v0  ;;  %v1054_v47 = vmul.f32 %v4561_v63, %v1050_v8 }
 0x649   : > { %v1110_v41 = vpack.c.bf16 %v1062_v46, %v1061_v24  ;;  %v1109_v26 = vpack.c.bf16 %v1055_v49, %v1054_v47 }
 0x64b   : > { %1152 = vmatpush.bf16.msra.mxu1 %v1110_v41 }
 0x64f   : > { %1153 = vmatpush.bf16.msra.mxu1 %v1109_v26 }
 0x652   : > { %1154 = vmatmul.bf16.vlgmr.msra.gmra.mxu1 %v3174_v56 }
 0x656   : > { %3180 = vmatmul.msk.bf16.gmra.mxu3 %vm930_vm12, %v1134_v48 }
 0x662   : > { %1159 = vmatmul.bf16.gmra.mxu1 %v1133_v59 }
 0x6c9   : > { %v1173_v62 = vpop.f32.mrf.mxu3 }
 0x6cf   : > { %v1155_v3 = vpop.f32.mrf.mxu1 }
 0x6d0   : > { %v1174_v0 = vadd.f32 %v1173_v62, %v1155_v3 }
 0x6d1   : > { %v1175_v8 = vpop.f32.mrf.mxu3 }
 0x6d2   : > { %v1182_v10 = vmax.f32 %v1174_v0, 0.0 }
 0x6d4   : > { %1212 = vrot.lane.b32.xlu2 %v1182_v10, %s4007_s16  ;;  %1224 = vrot.lane.b32.xlu0 %v1182_v10, %s4005_s14  ;;  %v1221_v41 = vmul.f32 %v1182_v10, %v4540_v5 }
 0x6d7   : > { %v1157_v24 = vpop.f32.mrf.mxu1 }
 0x6d8   : > { %v1176_v46 = vadd.f32 %v1175_v8, %v1157_v24 }
 0x6d9   : > { %v1178_v11 = vpop.f32.mrf.mxu3 }
 0x6da   : > { %v1183_v47 = vmax.f32 %v1176_v46, 0.0 }
 0x6dc   : > { %1203 = vrot.lane.b32.xlu2 %v1182_v10, %s4020_s8  ;;  %1251 = vrot.lane.b32.xlu0 %v1182_v10, %s4021_s10  ;;  %v1222_v49 = vmul.f32 %v1183_v47, %v4540_v5 }
 0x6dd   : > { %1253 = vrot.lane.b32.xlu1 %v1183_v47, %s4021_s10 }
 0x6de   : > { %v1266_v9 = vpack.c.bf16 %v1222_v49, %v1221_v41 }
 0x6df   : > { %v1160_v51 = vpop.f32.mrf.mxu1 }
 0x6e0   : > { %v1179_v26 = vadd.f32 %v1178_v11, %v1160_v51 }
 0x6e1   : > { %v1180_v54 = vpop.f32.mrf.mxu3 }
 0x6e2   : > { %v1184_v57 = vmax.f32 %v1179_v26, 0.0 }
 0x6e4   : > { %1205 = vrot.lane.b32.xlu0 %v1183_v47, %s4020_s8  ;;  %1214 = vrot.lane.b32.xlu2 %v1183_v47, %s4007_s16  ;;  %v1223_v3 = vmul.f32 %v1184_v57, %v4540_v5 }
 0x6e5   : > { %1244 = vrot.lane.b32.xlu1 %v1183_v47, %s4019_s7 }
 0x6e7   : > { %v1162_v56 = vpop.f32.mrf.mxu1 }
 0x6ec   : > { %1196 = vrot.lane.b32.xlu0 %v1183_v47, %s4022_s19  ;;  %1194 = vrot.lane.b32.xlu2 %v1182_v10, %s4022_s19 }
 0x6ed   : > { %1255 = vrot.lane.b32.xlu1 %v1184_v57, %s4021_s10 }
 0x6f4   : > { %1185 = vrot.lane.b32.xlu2 %v1182_v10, %s4023_s20  ;;  %1216 = vrot.lane.b32.xlu0 %v1184_v57, %s4007_s16 }
 0x6f5   : > { %1235 = vrot.lane.b32.xlu1 %v1183_v47, %s4018_s26 }
 0x6fc   : > { %1246 = vrot.lane.b32.xlu2 %v1184_v57, %s4019_s7  ;;  %1242 = vrot.lane.b32.xlu0 %v1182_v10, %s4019_s7 }
 0x6fd   : > { %1207 = vrot.lane.b32.xlu1 %v1184_v57, %s4020_s8 }
 0x704   : > { %1237 = vrot.lane.b32.xlu2 %v1184_v57, %s4018_s26  ;;  %1233 = vrot.lane.b32.xlu0 %v1182_v10, %s4018_s26 }
 0x705   : > { %1198 = vrot.lane.b32.xlu1 %v1184_v57, %s4022_s19 }
 0x70c   : > { %1228 = vrot.lane.b32.xlu2 %v1184_v57, %s4005_s14  ;;  %1187 = vrot.lane.b32.xlu0 %v1183_v47, %s4023_s20 }
 0x70d   : > { %1189 = vrot.lane.b32.xlu1 %v1184_v57, %s4023_s20 }
 0x714   : > { %1818 = vrot.lane.b32.xlu2 %v4501_v19, %s4012_s24  ;;  %1820 = vrot.lane.b32.xlu0 %v4503_v21, %s4012_s24 }
 0x715   : > { %1226 = vrot.lane.b32.xlu1 %v1183_v47, %s4005_s14 }
 0x71c   : > { %1806 = vrot.lane.b32.xlu2 %v4503_v21, %s4007_s16  ;;  %1812 = vrot.lane.b32.xlu0 %v4501_v19, %s4005_s14 }
 0x71d   : > { %1814 = vrot.lane.b32.xlu1 %v4503_v21, %s4005_s14 }
 0x724   : > { %1798 = vrot.lane.b32.xlu2 %v4501_v19, %s4014_s29  ;;  %1800 = vrot.lane.b32.xlu0 %v4503_v21, %s4014_s29 }
 0x725   : > { %1804 = vrot.lane.b32.xlu1 %v4501_v19, %s4007_s16 }
 0x72c   : > { %1792 = vrot.lane.b32.xlu0 %v4501_v19, %s4015_s30 }
 0x72d   : > { %1794 = vrot.lane.b32.xlu1 %v4503_v21, %s4015_s30 }
 0x72e   : > { %v1213_v48 = vpop.permute.xlu2 %1212 }
 0x736   : > { %v1204_v58 = vpop.permute.xlu2 %1203 }
 0x73e   : > { %v1215_v59 = vpop.permute.xlu2 %1214 }
 0x746   : > { %v1225_v62 = vpop.permute.xlu0 %1224  ;;  %v1195_v10 = vpop.permute.xlu2 %1194 }
 0x747   : > { %v1230_v0 = vmul.f32 %v1225_v62, %v4536_v4 }
 0x749   : > { %v1267_v8 = vpack.c.bf16 %v1230_v0, %v1223_v3 }
 0x74b   : > { %1306 = vmatpush.bf16.msrb.mxu2 %v1267_v8 }
 0x74e   : > { %v1252_v24 = vpop.permute.xlu0 %1251  ;;  %v1186_v41 = vpop.permute.xlu2 %1185 }
 0x74f   : > { %v1254_v46 = vpop.permute.xlu1 %1253  ;;  %1307 = vmatpush.bf16.msrb.mxu2 %v1266_v9  ;;  %v1257_v5 = vmul.f32 %v1252_v24, %v4546_v35  ;;  %v1219_v9 = vmul.f32 %v1215_v59, %v4544_v29 }
 0x750   : > { %v1258_v57 = vmul.f32 %v1254_v46, %v4546_v35 }
 0x752   : > { %v1272_v23 = vpack.c.bf16 %v1258_v57, %v1257_v5 }
 0x756   : > { %v1206_v11 = vpop.permute.xlu0 %1205  ;;  %v1247_v26 = vpop.permute.xlu2 %1246 }
 0x757   : > { %v1245_v47 = vpop.permute.xlu1 %1244 }
 0x758   : > { %v1249_v17 = vmul.f32 %v1245_v47, %v4528_v7  ;;  %v1210_v47 = vmul.f32 %v1206_v11, %v4552_v25 }
 0x75e   : > { %v1197_v49 = vpop.permute.xlu0 %1196  ;;  %v1238_v24 = vpop.permute.xlu2 %1237 }
 0x75f   : > { %v1256_v51 = vpop.permute.xlu1 %1255  ;;  %v1241_v46 = vmul.f32 %v1238_v24, %v4532_v53  ;;  %v3656_v24 = vld [vmem:[#allocation2 + $0x98] sm:$0xf0] }
 0x760   : > { %v1259_v54 = vmul.f32 %v1256_v51, %v4546_v35  ;;  %v1250_v51 = vmul.f32 %v1247_v26, %v4528_v7 }
 0x762   : > { %v1273_v56 = vpack.c.bf16 %v4523_v33, %v1259_v54  ;;  %v1271_v33 = vpack.c.bf16 %v1250_v51, %v1249_v17 }
 0x764   : > { %v1304_v62 = vand.u32 %v1273_v56, %v4196_v34  ;;  %v1218_v56 = vmul.f32 %v1213_v48, %v4544_v29 }
 0x766   : > { %1327 = vmatpush.bf16.msrb.mxu3 %v1304_v62  ;;  %v1217_v3 = vpop.permute.xlu0 %1216 }
 0x767   : > { %v1220_v0 = vmul.f32 %v1217_v3, %v4544_v29  ;;  %v1236_v8 = vpop.permute.xlu1 %1235 }
 0x768   : > { %v1240_v62 = vmul.f32 %v1236_v8, %v4532_v53 }
 0x769   : > { %v1265_v13 = vpack.c.bf16 %v1220_v0, %v1219_v9  ;;  %v1201_v9 = vmul.f32 %v1197_v49, %v4556_v44  ;;  %v3183_v49 = vld [vmem:[#allocation2 + $0x90] sm:$0xf] }
 0x76a   : > { %1328 = vmatpush.bf16.msrb.mxu3 %v1272_v23 }
 0x76b   : > { %1308 = vmatpush.bf16.msrb.mxu2 %v1265_v13  ;;  %v1209_v13 = vmul.f32 %v1204_v58, %v4552_v25 }
 0x76d   : > { %v1263_v17 = vpack.c.bf16 %v1210_v47, %v1209_v13  ;;  %v3191_v13 = vld [vmem:[#allocation2 + $0xa8] sm:$0xf] }
 0x76e   : > { %1329 = vmatpush.bf16.msrb.mxu3 %v1271_v33  ;;  %v1243_v35 = vpop.permute.xlu0 %1242 }
 0x76f   : > { %v1248_v54 = vmul.f32 %v1243_v35, %v4528_v7  ;;  %v1208_v59 = vpop.permute.xlu1 %1207  ;;  %v1229_v35 = vpop.permute.xlu2 %1228 }
 0x770   : > { %v1211_v5 = vmul.f32 %v1208_v59, %v4552_v25  ;;  %v1200_v25 = vmul.f32 %v1195_v10, %v4556_v44  ;;  %v3184_v59 = vor.u32 %v3656_v24, %v3183_v49  ;;  %v3185_v10 = vld [vmem:[#allocation2 + $0x9c] sm:$0xf0]  ;;  %v3684_v49 = vld [vmem:[#allocation6 + $0xc8] sm:$0xff]  ;;  %v3681_v24 = vld [vmem:[#allocation6 + $0xb0] sm:$0xff] }
 0x771   : > { %v1270_v57 = vpack.c.bf16 %v1248_v54, %v1241_v46 }
 0x772   : > { %v1264_v26 = vpack.c.bf16 %v1218_v56, %v1211_v5  ;;  %v1232_v56 = vmul.f32 %v1229_v35, %v4536_v4 }
 0x773   : > { %1330 = vmatpush.bf16.msrb.mxu3 %v1270_v57  ;;  %v3690_v57 = vld [vmem:[#allocation6 + $0xf8] sm:$0xff] }
 0x774   : > { %1309 = vmatpush.bf16.msrb.mxu2 %v1264_v26 }
 0x776   : > { %v1234_v23 = vpop.permute.xlu0 %1233 }
 0x777   : > { %v1239_v3 = vmul.f32 %v1234_v23, %v4532_v53  ;;  %v1199_v7 = vpop.permute.xlu1 %1198  ;;  %v1191_v53 = vmul.f32 %v1186_v41, %v4561_v63  ;;  %v3688_v41 = vld [vmem:[#allocation6 + $0xe8] sm:$0xff]  ;;  %v3687_v23 = vld [vmem:[#allocation6 + $0xe0] sm:$0xff] }
 0x778   : > { %v1202_v29 = vmul.f32 %v1199_v7, %v4556_v44  ;;  %1310 = vmatpush.bf16.msrb.mxu2 %v1263_v17  ;;  %v3655_v44 = vld [vmem:[#allocation2 + $0x94] sm:$0xf]  ;;  %v3193_v7 = vld [vmem:[#allocation2 + $0xb4] sm:$0xf0] }
 0x779   : > { %v1269_v48 = vpack.c.bf16 %v1240_v62, %v1239_v3  ;;  %v3188_v26 = vor.u32 %v3655_v44, %v3185_v10  ;;  %v3658_v17 = vld [vmem:[#allocation2 + $0xb0] sm:$0xf0]  ;;  %v3657_v3 = vld [vmem:[#allocation2 + $0xac] sm:$0xf] }
 0x77a   : > { %v1262_v0 = vpack.c.bf16 %v1202_v29, %v1201_v9  ;;  %v3192_v62 = vor.u32 %v3658_v17, %v3191_v13  ;;  %v3686_v9 = vld [vmem:[#allocation6 + $0xd8] sm:$0xff]  ;;  %v3196_v29 = vor.u32 %v3657_v3, %v3193_v7  ;;  %v1811_v13 = vmul.f32 %v4503_v21, %v4419_v27 }
 0x77b   : > { %1331 = vmatpush.bf16.msrb.mxu3 %v1269_v48  ;;  %v3685_v48 = vld [vmem:[#allocation6 + $0xd0] sm:$0xff] }
 0x77c   : > { %1311 = vmatpush.bf16.msrb.mxu2 %v1262_v0  ;;  %v3666_v0 = vld [vmem:[#allocation6 + $0x38] sm:$0xff] }
 0x77d   : > { %1414 = vmatpush.bf16.msrb.mxu0 %v3666_v0 }
 0x77e   : > { %v1188_v11 = vpop.permute.xlu0 %1187 }
 0x77f   : > { %v1190_v51 = vpop.permute.xlu1 %1189  ;;  %v1192_v8 = vmul.f32 %v1188_v11, %v4561_v63  ;;  %v3674_v11 = vld [vmem:[#allocation6 + $0x78] sm:$0xff] }
 0x780   : > { %v1193_v58 = vmul.f32 %v1190_v51, %v4561_v63  ;;  %v3689_v63 = vld [vmem:[#allocation6 + $0xf0] sm:$0xff]  ;;  %v3682_v51 = vld [vmem:[#allocation6 + $0xb8] sm:$0xff]  ;;  %1498 = vmatpush.bf16.msrb.mxu1 %v3674_v11 }
 0x781   : > { %v1260_v46 = vpack.c.bf16 %v1192_v8, %v1191_v53  ;;  %v3673_v8 = vld [vmem:[#allocation6 + $0x70] sm:$0xff] }
 0x782   : > { %v1261_v33 = vpack.c.bf16 %v1200_v25, %v1193_v58  ;;  %v1819_v25 = vpop.permute.xlu2 %1818  ;;  %v3665_v58 = vld [vmem:[#allocation6 + $0x30] sm:$0xff] }
 0x783   : > { %1415 = vmatpush.bf16.msrb.mxu0 %v3665_v58  ;;  %v3662_v58 = vld [vmem:[#allocation6 + $0x18] sm:$0xff] }
 0x784   : > { %1312 = vmatpush.bf16.msrb.mxu2 %v1261_v33  ;;  %1499 = vmatpush.bf16.msrb.mxu1 %v3673_v8  ;;  %v3670_v8 = vld [vmem:[#allocation6 + $0x58] sm:$0xff] }
 0x787   : > { %v1227_v54 = vpop.permute.xlu1 %1226 }
 0x788   : > { %v1231_v5 = vmul.f32 %v1227_v54, %v4536_v4  ;;  %1313 = vmatpush.bf16.msrb.mxu2 %v1260_v46  ;;  %v1821_v4 = vpop.permute.xlu0 %1820  ;;  %v3664_v46 = vld [vmem:[#allocation6 + $0x28] sm:$0xff] }
 0x789   : > { %v1823_v35 = vmul.f32 %v1821_v4, %v4414_v18  ;;  %v3672_v54 = vld [vmem:[#allocation6 + $0x68] sm:$0xff]  ;;  %1416 = vmatpush.bf16.msrb.mxu0 %v3664_v46  ;;  %v3659_v46 = vld [vmem:[#allocation6] sm:$0xff] }
 0x78a   : > { %v1268_v47 = vpack.c.bf16 %v1232_v56, %v1231_v5  ;;  %v3680_v56 = vld [vmem:[#allocation6 + $0xa8] sm:$0xff]  ;;  %v1822_v5 = vmul.f32 %v1819_v25, %v4414_v18  ;;  %1500 = vmatpush.bf16.msrb.mxu1 %v3672_v54  ;;  %v1810_v18 = vmul.f32 %v4501_v19, %v4419_v27  ;;  %v3679_v25 = vld [vmem:[#allocation6 + $0xa0] sm:$0xff] }
 0x78b   : > { %1314 = vmatmul.bf16.vlgmr.msrb.gmra.mxu2 %v3184_v59  ;;  %v3683_v59 = vld [vmem:[#allocation6 + $0xc0] sm:$0xff] }
 0x78c   : > { %1332 = vmatpush.bf16.msrb.mxu3 %v1268_v47  ;;  %1582 = vmatpush.bf16.msra.mxu2 %v3682_v51  ;;  %v1851_v44 = vpack.c.bf16 %v1823_v35, %v1822_v5  ;;  %v1807_v47 = vpop.permute.xlu2 %1806  ;;  %v3663_v51 = vld [vmem:[#allocation6 + $0x20] sm:$0xff]  ;;  %v3676_v35 = vld [vmem:[#allocation6 + $0x88] sm:$0xff] }
 0x78d   : > { %1417 = vmatpush.bf16.msrb.mxu0 %v3663_v51  ;;  %v3667_v54 = vld [vmem:[#allocation6 + $0x40] sm:$0xff]  ;;  %v3331_v51 = vld [vmem:[#allocation2 + $0xcc] sm:$0xf0] }
 0x78f   : > { %3197 = vmatmul.msk.bf16.vlgmr.msrb.gmra.mxu3 %vm1296_vm13, %v3188_v26  ;;  %v1815_v53 = vpop.permute.xlu1 %1814 }
 0x790   : > { %1666 = vmatpush.bf16.msra.mxu3 %v3690_v57  ;;  %v1813_v33 = vpop.permute.xlu0 %1812  ;;  %1583 = vmatpush.bf16.msra.mxu2 %v3681_v24  ;;  %v1817_v57 = vmul.f32 %v1815_v53, %v4416_v20  ;;  %v3669_v53 = vld [vmem:[#allocation6 + $0x50] sm:$0xff]  ;;  %v3668_v24 = vld [vmem:[#allocation6 + $0x48] sm:$0xff] }
 0x791   : > { %v1816_v10 = vmul.f32 %v1813_v33, %v4416_v20  ;;  %v1809_v20 = vmul.f32 %v1807_v47, %v4423_v36  ;;  %v3678_v33 = vld [vmem:[#allocation6 + $0x98] sm:$0xff]  ;;  %1418 = vmatpush.bf16.msrb.mxu0 %v3662_v58 }
 0x794   : > { %1667 = vmatpush.bf16.msra.mxu3 %v3689_v63  ;;  %1584 = vmatpush.bf16.msra.mxu2 %v3680_v56  ;;  %v1799_v4 = vpop.permute.xlu2 %1798 }
 0x797   : > { %v1805_v63 = vpop.permute.xlu1 %1804 }
 0x798   : > { %1668 = vmatpush.bf16.msra.mxu3 %v3688_v41  ;;  %v1801_v26 = vpop.permute.xlu0 %1800  ;;  %v1850_v41 = vpack.c.bf16 %v1817_v57, %v1816_v10  ;;  %v1808_v17 = vmul.f32 %v1805_v63, %v4423_v36  ;;  %v3671_v36 = vld [vmem:[#allocation6 + $0x60] sm:$0xff]  ;;  %1585 = vmatpush.bf16.msra.mxu2 %v3679_v25 }
 0x799   : > { %1501 = vmatpush.bf16.msrb.mxu1 %v3671_v36 }
 0x79a   : > { %v1848_v3 = vpack.c.bf16 %v1809_v20, %v1808_v17 }
 0x79b   : > { %1319 = vmatmul.bf16.gmra.mxu2 %v3192_v62  ;;  %v1803_v62 = vmul.f32 %v1801_v26, %v4425_v37 }
 0x79c   : > { %1669 = vmatpush.bf16.msra.mxu3 %v3687_v23  ;;  %v1849_v23 = vpack.c.bf16 %v1811_v13, %v1810_v18  ;;  %1586 = vmatpush.bf16.msra.mxu2 %v3678_v33 }
 0x79d   : > { %1502 = vmatpush.bf16.msrb.mxu1 %v3670_v8 }
 0x79f   : > { %3198 = vmatmul.msk.bf16.gmra.mxu3 %vm1296_vm13, %v3196_v29  ;;  %v1802_v29 = vmul.f32 %v1799_v4, %v4425_v37  ;;  %v3661_v37 = vld [vmem:[#allocation6 + $0x10] sm:$0xff] }
 0x7a0   : > { %1670 = vmatpush.bf16.msra.mxu3 %v3686_v9  ;;  %v1793_v7 = vpop.permute.xlu0 %1792  ;;  %v1795_v9 = vpop.permute.xlu1 %1794  ;;  %1419 = vmatpush.bf16.msrb.mxu0 %v3661_v37 }
 0x7a1   : > { %v1796_v0 = vmul.f32 %v1793_v7, %v4431_v50  ;;  %v1797_v27 = vmul.f32 %v1795_v9, %v4431_v50  ;;  %1503 = vmatpush.bf16.msrb.mxu1 %v3669_v53  ;;  %v3660_v50 = vld [vmem:[#allocation6 + $0x8] sm:$0xff] }
 0x7a3   : > { %v1846_v11 = vpack.c.bf16 %v1797_v27, %v1796_v0 }
 0x7a4   : > { %1671 = vmatpush.bf16.msra.mxu3 %v3685_v48  ;;  %v1847_v48 = vpack.c.bf16 %v1803_v62, %v1802_v29  ;;  %1420 = vmatpush.bf16.msrb.mxu0 %v3660_v50 }
 0x7a5   : > { %1504 = vmatpush.bf16.msrb.mxu1 %v3668_v24 }
 0x7a8   : > { %1672 = vmatpush.bf16.msra.mxu3 %v3684_v49  ;;  %v3677_v49 = vld [vmem:[#allocation6 + $0x90] sm:$0xff]  ;;  %1421 = vmatpush.bf16.msrb.mxu0 %v3659_v46 }
 0x7a9   : > { %1587 = vmatpush.bf16.msra.mxu2 %v3677_v49  ;;  %1505 = vmatpush.bf16.msrb.mxu1 %v3667_v54 }
 0x7ac   : > { %1673 = vmatpush.bf16.msra.mxu3 %v3683_v59  ;;  %v3675_v59 = vld [vmem:[#allocation6 + $0x80] sm:$0xff] }
 0x7ad   : > { %1588 = vmatpush.bf16.msra.mxu2 %v3676_v35  ;;  %1729 = vmatpush.bf16.msra.mxu1 %v4459_v45 }
 0x7b0   : > { %1891 = vmatpush.bf16.msrb.mxu3 %v1851_v44 }
 0x7b1   : > { %1589 = vmatpush.bf16.msra.mxu2 %v3675_v59 }
 0x7b4   : > { %1892 = vmatpush.bf16.msrb.mxu3 %v1850_v41 }
 0x7b8   : > { %1893 = vmatpush.bf16.msrb.mxu3 %v1849_v23 }
 0x7bc   : > { %1894 = vmatpush.bf16.msrb.mxu3 %v1848_v3 }
 0x7c0   : > { %1895 = vmatpush.bf16.msrb.mxu3 %v1847_v48 }
 0x7c4   : > { %1896 = vmatpush.bf16.msrb.mxu3 %v1846_v11  ;;  %v3691_v11 = vld [vmem:[#allocation2 + $0xc4] sm:$0xf] }
 0x7c5   : > { %v3334_v58 = vor.u32 %v3691_v11, %v3331_v51 }
 0x80e   : > { %v1315_v56 = vpop.f32.mrf.mxu2 }
 0x812   : > { %v1334_v5 = vpop.f32.mrf.mxu3 }
 0x813   : > { %v1335_v10 = vadd.f32 %v1334_v5, %v1315_v56 }
 0x815   : > { %v1344_v26 = vmax.f32 %v1335_v10, 0.0 }
 0x816   : > { %v1317_v44 = vpop.f32.mrf.mxu2 }
 0x81a   : > { %v1336_v57 = vpop.f32.mrf.mxu3 }
 0x81b   : > { %v1337_v47 = vadd.f32 %v1336_v57, %v1317_v44 }
 0x81d   : > { %v1345_v63 = vmax.f32 %v1337_v47, 0.0  ;;  %v3329_v47 = vld [vmem:[#allocation2 + $0xc0] sm:$0xf] }
 0x81e   : > { %v1320_v13 = vpop.f32.mrf.mxu2 }
 0x81f   : > { %v1348_v41 = vpack.c.bf16 %v1345_v63, %v1344_v26  ;;  %v3692_v26 = vld [vmem:[#allocation2 + $0xc8] sm:$0xf0] }
 0x821   : > { %1422 = vmatmul.bf16.vlgmr.msrb.gmra.mxu0 %v1348_v41  ;;  %1506 = vmatmul.bf16.vlgmr.msrb.gmra.mxu1 %v1348_v41 }
 0x822   : > { %1590 = vmatmul.bf16.vlgmr.msra.gmra.mxu2 %v1348_v41  ;;  %1674 = vmatmul.bf16.vlgmr.msra.gmra.mxu3 %v1348_v41  ;;  %v1339_v18 = vpop.f32.mrf.mxu3  ;;  %v3330_v41 = vor.u32 %v3692_v26, %v3329_v47 }
 0x823   : > { %v1340_v17 = vadd.f32 %v1339_v18, %v1320_v13 }
 0x825   : > { %v1346_v62 = vmax.f32 %v1340_v17, 0.0 }
 0x826   : > { %v1322_v23 = vpop.f32.mrf.mxu2 }
 0x82a   : > { %v1341_v20 = vpop.f32.mrf.mxu3 }
 0x82b   : > { %v1342_v4 = vadd.f32 %v1341_v20, %v1322_v23 }
 0x82d   : > { %v1347_v3 = vmax.f32 %v1342_v4, 0.0 }
 0x82f   : > { %v1349_v7 = vpack.c.bf16 %v1347_v3, %v1346_v62  ;;  %v4662_v62 = vld [vmem:[#allocation4 + $0x24] ss:$0 sm:$0xff] }
 0x831   : > { %1427 = vmatmul.bf16.gmra.mxu0 %v1349_v7  ;;  %1511 = vmatmul.bf16.gmra.mxu1 %v1349_v7 }
 0x832   : > { %1595 = vmatmul.bf16.gmra.mxu2 %v1349_v7  ;;  %1679 = vmatmul.bf16.gmra.mxu3 %v1349_v7 }
 0x841   : > { %3335 = vmatmul.msk.bf16.vlgmr.msra.gmra.mxu1 %vm1704_vm14, %v3334_v58 }
 0x89e   : > { %v1507_v48 = vpop.f32.mrf.mxu1  ;;  %v1423_v36 = vpop.f32.mrf.mxu0 }
 0x8a5   : > { %v1591_v9 = vpop.f32.mrf.mxu2  ;;  %v1675_v29 = vpop.f32.mrf.mxu3 }
 0x8a6   : > { %v1509_v8 = vpop.f32.mrf.mxu1  ;;  %v1425_v49 = vpop.f32.mrf.mxu0 }
 0x8a7   : > { %v1687_v44 = vpack.c.bf16 %v1509_v8, %v1507_v48  ;;  %v1685_v63 = vpack.c.bf16 %v1425_v49, %v1423_v36  ;;  %v4689_v8 = vld [vmem:[#allocation4 + $0x27] ss:$0 sm:$0xff]  ;;  %v4693_v49 = vld [vmem:[#allocation4 + $0x26] ss:$0 sm:$0xff] }
 0x8ad   : > { %v1677_v0 = vpop.f32.mrf.mxu3  ;;  %v1593_v27 = vpop.f32.mrf.mxu2 }
 0x8ae   : > { %v1512_v50 = vpop.f32.mrf.mxu1  ;;  %v1691_v24 = vpack.c.bf16 %v1677_v0, %v1675_v29  ;;  %v1428_v54 = vpop.f32.mrf.mxu0  ;;  %v1689_v59 = vpack.c.bf16 %v1593_v27, %v1591_v9 }
 0x8b5   : > { %v1680_v25 = vpop.f32.mrf.mxu3  ;;  %v1596_v33 = vpop.f32.mrf.mxu2 }
 0x8b6   : > { %v1514_v56 = vpop.f32.mrf.mxu1  ;;  %v1430_v10 = vpop.f32.mrf.mxu0 }
 0x8b7   : > { %v1688_v5 = vpack.c.bf16 %v1514_v56, %v1512_v50  ;;  %v1686_v57 = vpack.c.bf16 %v1430_v10, %v1428_v54 }
 0x8bd   : > { %v1682_v37 = vpop.f32.mrf.mxu3  ;;  %v1598_v35 = vpop.f32.mrf.mxu2 }
 0x8be   : > { %v1692_v53 = vpack.c.bf16 %v1682_v37, %v1680_v25  ;;  %v1690_v46 = vpack.c.bf16 %v1598_v35, %v1596_v33  ;;  %v1731_v13 = vpop.f32.mrf.mxu1 }
 0x8c0   : > { %1708 = vmatpush.bf16.msra.mxu0 %v1692_v53 }
 0x8c4   : > { %1709 = vmatpush.bf16.msra.mxu0 %v1691_v24 }
 0x8c6   : > { %v1733_v23 = vpop.f32.mrf.mxu1 }
 0x8c8   : > { %1710 = vmatpush.bf16.msra.mxu0 %v1690_v46  ;;  %v4697_v46 = vld [vmem:[#allocation4 + $0x25] ss:$0 sm:$0xff] }
 0x8cc   : > { %1711 = vmatpush.bf16.msra.mxu0 %v1689_v59 }
 0x8d0   : > { %1712 = vmatpush.bf16.msra.mxu0 %v1688_v5  ;;  %v4701_v5 = vld [vmem:[#allocation4 + $0x20] ss:$0 sm:$0xff] }
 0x8d4   : > { %1713 = vmatpush.bf16.msra.mxu0 %v1687_v44 }
 0x8d8   : > { %1714 = vmatpush.bf16.msra.mxu0 %v1686_v57 }
 0x8dc   : > { %1715 = vmatpush.bf16.msra.mxu0 %v1685_v63 }
 0x8df   : > { %1716 = vmatmul.bf16.vlgmr.msra.gmra.mxu0 %v3330_v41 }
 0x8e0   : > { %1910 = vmatpush.bf16.msrb.mxu0 %v4459_v45 }
 0x95c   : > { %v1717_v18 = vpop.f32.mrf.mxu0 }
 0x95d   : > { %v1732_v17 = vadd.f32 %v1731_v13, %v1717_v18  ;;  %v4705_v13 = vld [vmem:[#allocation4 + $0x23] ss:$0 sm:$0xff] }
 0x95f   : > { %1762 = vrot.lane.b32.xlu2 %v1732_v17, %s4005_s14  ;;  %1768 = vrot.lane.b32.xlu1 %v1732_v17, %s4012_s24  ;;  %v1760_v3 = vmul.f32 %v4662_v62, %v1732_v17 }
 0x960   : > { %1774 = vrot.lane.b32.xlu0 %v1732_v17, %s4011_s27 }
 0x964   : > { %v1719_v20 = vpop.f32.mrf.mxu0 }
 0x965   : > { %v1734_v4 = vadd.f32 %v1733_v23, %v1719_v20  ;;  %v4709_v20 = vld [vmem:[#allocation4 + $0x22] ss:$0 sm:$0xff] }
 0x967   : > { %1742 = vrot.lane.b32.xlu2 %v1732_v17, %s4015_s30  ;;  %1748 = vrot.lane.b32.xlu1 %v1732_v17, %s4014_s29  ;;  %v1761_v7 = vmul.f32 %v4662_v62, %v1734_v4 }
 0x968   : > { %1754 = vrot.lane.b32.xlu0 %v1732_v17, %s4007_s16 }
 0x969   : > { %v1840_v9 = vpack.c.bf16 %v1761_v7, %v1760_v3 }
 0x96f   : > { %1770 = vrot.lane.b32.xlu2 %v1734_v4, %s4012_s24  ;;  %1776 = vrot.lane.b32.xlu1 %v1734_v4, %s4011_s27 }
 0x970   : > { %1764 = vrot.lane.b32.xlu0 %v1734_v4, %s4005_s14 }
 0x977   : > { %1788 = vrot.lane.b32.xlu2 %v4503_v21, %s4016_s9  ;;  %1786 = vrot.lane.b32.xlu1 %v4501_v19, %s4016_s9 }
 0x978   : > { %1736 = vrot.lane.b32.xlu0 %v1732_v17, %s4016_s9 }
 0x97f   : > { %1750 = vrot.lane.b32.xlu2 %v1734_v4, %s4014_s29  ;;  %1756 = vrot.lane.b32.xlu1 %v1734_v4, %s4007_s16 }
 0x980   : > { %1744 = vrot.lane.b32.xlu0 %v1734_v4, %s4015_s30 }
 0x987   : > { %1780 = vrot.lane.b32.xlu2 %v1732_v17, %s4013_s28  ;;  %1830 = vrot.lane.b32.xlu1 %v4501_v19, %s4013_s28 }
 0x988   : > { %1782 = vrot.lane.b32.xlu0 %v1734_v4, %s4013_s28 }
 0x98f   : > { %1832 = vrot.lane.b32.xlu2 %v4503_v21, %s4013_s28  ;;  %1738 = vrot.lane.b32.xlu1 %v1734_v4, %s4016_s9 }
 0x990   : > { %1824 = vrot.lane.b32.xlu0 %v4501_v19, %s4011_s27 }
 0x997   : > { %1826 = vrot.lane.b32.xlu1 %v4503_v21, %s4011_s27 }
 0x9b9   : > { %v1763_v29 = vpop.permute.xlu2 %1762 }
 0x9ba   : > { %v1766_v56 = vmul.f32 %v4697_v46, %v1763_v29 }
 0x9c1   : > { %v1743_v48 = vpop.permute.xlu2 %1742 }
 0x9c9   : > { %v1771_v0 = vpop.permute.xlu2 %1770 }
 0x9ca   : > { %v1773_v24 = vmul.f32 %v4693_v49, %v1771_v0 }
 0x9d1   : > { %v1769_v27 = vpop.permute.xlu1 %1768  ;;  %v1789_v51 = vpop.permute.xlu2 %1788 }
 0x9d2   : > { %v1775_v11 = vpop.permute.xlu0 %1774  ;;  %v1772_v21 = vmul.f32 %v4693_v49, %v1769_v27  ;;  %v1791_v44 = vmul.f32 %v4701_v5, %v1789_v51  ;;  %v4713_v27 = vld [vmem:[#allocation4 + $0x21] ss:$0 sm:$0xff] }
 0x9d3   : > { %v1778_v33 = vmul.f32 %v4689_v8, %v1775_v11 }
 0x9d4   : > { %v1842_v35 = vpack.c.bf16 %v1773_v24, %v1772_v21  ;;  %v3340_v21 = vld [vmem:[#allocation2 + $0xe4] sm:$0xf0] }
 0x9d9   : > { %v1749_v36 = vpop.permute.xlu1 %1748  ;;  %v1751_v19 = vpop.permute.xlu2 %1750 }
 0x9da   : > { %v1755_v25 = vpop.permute.xlu0 %1754  ;;  %v1752_v4 = vmul.f32 %v4709_v20, %v1749_v36  ;;  %v1753_v3 = vmul.f32 %v4709_v20, %v1751_v19  ;;  %v3693_v19 = vld [vmem:[#allocation2 + $0xdc] sm:$0xf] }
 0x9db   : > { %v1758_v18 = vmul.f32 %v4705_v13, %v1755_v25  ;;  %v1746_v25 = vmul.f32 %v4713_v27, %v1743_v48  ;;  %v3343_v48 = vor.u32 %v3693_v19, %v3340_v21 }
 0x9dc   : > { %v1838_v0 = vpack.c.bf16 %v1753_v3, %v1752_v4  ;;  %v3695_v4 = vld [vmem:[#allocation2 + $0xe8] sm:$0xf0] }
 0x9e1   : > { %v1777_v58 = vpop.permute.xlu1 %1776  ;;  %v1781_v63 = vpop.permute.xlu2 %1780 }
 0x9e2   : > { %v1765_v37 = vpop.permute.xlu0 %1764  ;;  %v1779_v53 = vmul.f32 %v4689_v8, %v1777_v58  ;;  %v4717_v58 = vld [vmem:[#allocation4 + $0x30] ss:$0 sm:$0xff] }
 0x9e3   : > { %v1767_v54 = vmul.f32 %v4697_v46, %v1765_v37  ;;  %v1784_v37 = vmul.f32 %v4717_v58, %v1781_v63 }
 0x9e4   : > { %v1843_v50 = vpack.c.bf16 %v1779_v53, %v1778_v33 }
 0x9e5   : > { %v1841_v47 = vpack.c.bf16 %v1767_v54, %v1766_v56 }
 0x9e6   : > { %1877 = vmatpush.bf16.msrb.mxu2 %v1843_v50 }
 0x9e9   : > { %v1787_v59 = vpop.permute.xlu1 %1786  ;;  %v1833_v29 = vpop.permute.xlu2 %1832 }
 0x9ea   : > { %v1737_v10 = vpop.permute.xlu0 %1736  ;;  %v1790_v57 = vmul.f32 %v4701_v5, %v1787_v59  ;;  %1878 = vmatpush.bf16.msrb.mxu2 %v1842_v35 }
 0x9eb   : > { %v1740_v59 = vmul.f32 %v4701_v5, %v1737_v10 }
 0x9ec   : > { %v1845_v26 = vpack.c.bf16 %v1791_v44, %v1790_v57  ;;  %v3338_v44 = vld [vmem:[#allocation2 + $0xd8] sm:$0xf]  ;;  %v3694_v57 = vld [vmem:[#allocation2 + $0xe0] sm:$0xf0] }
 0x9ee   : > { %1879 = vmatpush.bf16.msrb.mxu2 %v1841_v47  ;;  %1897 = vmatpush.bf16.msrb.mxu3 %v1845_v26  ;;  %v3339_v26 = vor.u32 %v3694_v57, %v3338_v44 }
 0x9f1   : > { %v1757_v41 = vpop.permute.xlu1 %1756 }
 0x9f2   : > { %v1745_v17 = vpop.permute.xlu0 %1744  ;;  %v1759_v23 = vmul.f32 %v4705_v13, %v1757_v41  ;;  %1880 = vmatpush.bf16.msrb.mxu2 %v1840_v9  ;;  %v1835_v9 = vmul.f32 %v4717_v58, %v1833_v29 }
 0x9f3   : > { %v1747_v11 = vmul.f32 %v4713_v27, %v1745_v17 }
 0x9f4   : > { %v1839_v7 = vpack.c.bf16 %v1759_v23, %v1758_v18  ;;  %v3346_v23 = vld [vmem:[#allocation2 + $0xe0] sm:$0xf] }
 0x9f5   : > { %v1837_v50 = vpack.c.bf16 %v1747_v11, %v1746_v25  ;;  %v3347_v3 = vor.u32 %v3695_v4, %v3346_v23 }
 0x9f6   : > { %1881 = vmatpush.bf16.msrb.mxu2 %v1839_v7 }
 0x9f9   : > { %v1831_v51 = vpop.permute.xlu1 %1830 }
 0x9fa   : > { %v1783_v33 = vpop.permute.xlu0 %1782  ;;  %v1834_v36 = vmul.f32 %v4717_v58, %v1831_v51  ;;  %1882 = vmatpush.bf16.msrb.mxu2 %v1838_v0 }
 0x9fb   : > { %v1785_v53 = vmul.f32 %v4717_v58, %v1783_v33 }
 0x9fc   : > { %v1853_v24 = vpack.c.bf16 %v1835_v9, %v1834_v36 }
 0x9fd   : > { %v1844_v35 = vpack.c.bf16 %v1785_v53, %v1784_v37 }
 0x9fe   : > { %1883 = vmatpush.bf16.msrb.mxu2 %v1837_v50  ;;  %1911 = vmatpush.bf16.msrb.mxu0 %v1853_v24 }
 0x9ff   : > { %1898 = vmatpush.bf16.msrb.mxu3 %v1844_v35 }
 0xa01   : > { %v1739_v54 = vpop.permute.xlu1 %1738 }
 0xa02   : > { %1899 = vmatmul.bf16.vlgmr.msrb.gmra.mxu3 %v3343_v48  ;;  %v1741_v56 = vmul.f32 %v4701_v5, %v1739_v54  ;;  %v1825_v63 = vpop.permute.xlu0 %1824 }
 0xa03   : > { %v1828_v18 = vmul.f32 %v4689_v8, %v1825_v63 }
 0xa04   : > { %v1836_v47 = vpack.c.bf16 %v1741_v56, %v1740_v59 }
 0xa06   : > { %1884 = vmatpush.bf16.msrb.mxu2 %v1836_v47 }
 0xa09   : > { %v1827_v41 = vpop.permute.xlu1 %1826  ;;  %1885 = vmatmul.bf16.vlgmr.msrb.gmra.mxu2 %v3339_v26 }
 0xa0a   : > { %2014 = vmatpush.bf16.msra.mxu2 %v4459_v45  ;;  %v1829_v17 = vmul.f32 %v4689_v8, %v1827_v41 }
 0xa0c   : > { %v1852_v10 = vpack.c.bf16 %v1829_v17, %v1828_v18 }
 0xa0e   : > { %1912 = vmatpush.bf16.msrb.mxu0 %v1852_v10 }
 0xa11   : > { %3348 = vmatmul.msk.bf16.vlgmr.msrb.gmra.mxu0 %vm1873_vm15, %v3347_v3 }
 0xa85   : > { %v1900_v7 = vpop.f32.mrf.mxu3 }
 0xa8c   : > { %v1886_v29 = vpop.f32.mrf.mxu2 }
 0xa8d   : > { %v1901_v0 = vadd.f32 %v1900_v7, %v1886_v29  ;;  %v1902_v45 = vpop.f32.mrf.mxu3 }
 0xa8e   : > { %v1914_v11 = vpop.f32.mrf.mxu0 }
 0xa8f   : > { %v1915_v51 = vadd.f32 %v1914_v11, %v1901_v0 }
 0xa91   : > { %v1919_v25 = vmax.f32 %v1915_v51, 0.0 }
 0xa93   : > { %1947 = vrot.lane.b32.xlu0 %v1919_v25, %s4005_s14  ;;  %1953 = vrot.lane.b32.xlu1 %v1919_v25, %s4012_s24  ;;  %v1945_v19 = vmul.f32 %v4662_v62, %v1919_v25 }
 0xa94   : > { %1959 = vrot.lane.b32.xlu2 %v1919_v25, %s4011_s27  ;;  %v1888_v9 = vpop.f32.mrf.mxu2 }
 0xa95   : > { %v1903_v33 = vadd.f32 %v1902_v45, %v1888_v9  ;;  %v3353_v45 = vld [vmem:[#allocation2 + $0xfc] sm:$0xf0] }
 0xa96   : > { %v1916_v36 = vpop.f32.mrf.mxu0 }
 0xa97   : > { %v1917_v37 = vadd.f32 %v1916_v36, %v1903_v33 }
 0xa99   : > { %v1920_v53 = vmax.f32 %v1917_v37, 0.0 }
 0xa9b   : > { %1949 = vrot.lane.b32.xlu1 %v1920_v53, %s4005_s14  ;;  %1961 = vrot.lane.b32.xlu0 %v1920_v53, %s4011_s27  ;;  %v1946_v21 = vmul.f32 %v4662_v62, %v1920_v53 }
 0xa9c   : > { %1939 = vrot.lane.b32.xlu2 %v1919_v25, %s4007_s16 }
 0xa9d   : > { %v1975_v50 = vpack.c.bf16 %v1946_v21, %v1945_v19 }
 0xaa3   : > { %1933 = vrot.lane.b32.xlu1 %v1919_v25, %s4014_s29  ;;  %1965 = vrot.lane.b32.xlu0 %v1919_v25, %s4013_s28 }
 0xaa4   : > { %1955 = vrot.lane.b32.xlu2 %v1920_v53, %s4012_s24 }
 0xaab   : > { %1967 = vrot.lane.b32.xlu1 %v1920_v53, %s4013_s28  ;;  %1941 = vrot.lane.b32.xlu0 %v1920_v53, %s4007_s16 }
 0xaac   : > { %1927 = vrot.lane.b32.xlu2 %v1919_v25, %s4015_s30 }
 0xab3   : > { %1921 = vrot.lane.b32.xlu1 %v1919_v25, %s4016_s9  ;;  %1929 = vrot.lane.b32.xlu0 %v1920_v53, %s4015_s30  ;;  %v3696_v25 = vld [vmem:[#allocation2 + $0xf4] sm:$0xf] }
 0xab4   : > { %1935 = vrot.lane.b32.xlu2 %v1920_v53, %s4014_s29  ;;  %v3356_v37 = vor.u32 %v3696_v25, %v3353_v45  ;;  %v3408_v25 = vld [vmem:[#allocation7 + $0x60] sm:$0xf]  ;;  %v3711_v45 = vld [vmem:[#allocation7 + $0x64] sm:$0xf0] }
 0xabb   : > { %2673 = vrot.lane.b32.xlu1 %v4393_v55, %s4005_s14  ;;  %2671 = vrot.lane.b32.xlu0 %v4391_v52, %s4005_s14 }
 0xabc   : > { %1923 = vrot.lane.b32.xlu2 %v1920_v53, %s4016_s9 }
 0xac3   : > { %2661 = vrot.lane.b32.xlu1 %v4391_v52, %s4007_s16  ;;  %2681 = vrot.lane.b32.xlu0 %v4393_v55, %s4002_s11 }
 0xac4   : > { %2679 = vrot.lane.b32.xlu2 %v4391_v52, %s4002_s11 }
 0xacb   : > { %2647 = vrot.lane.b32.xlu1 %v4393_v55, %s4009_s18  ;;  %2645 = vrot.lane.b32.xlu0 %v4391_v52, %s4009_s18 }
 0xacc   : > { %2663 = vrot.lane.b32.xlu2 %v4393_v55, %s4007_s16 }
 0xad3   : > { %2639 = vrot.lane.b32.xlu1 %v4393_v55, %s4008_s17  ;;  %2655 = vrot.lane.b32.xlu0 %v4393_v55, %s4006_s15 }
 0xad4   : > { %2653 = vrot.lane.b32.xlu2 %v4391_v52, %s4006_s15 }
 0xadb   : > { %2687 = vrot.lane.b32.xlu1 %v4391_v52, %s4004_s13  ;;  %2637 = vrot.lane.b32.xlu0 %v4391_v52, %s4008_s17 }
 0xaee   : > { %v1960_v62 = vpop.permute.xlu2 %1959 }
 0xaef   : > { %v1963_v57 = vmul.f32 %v4689_v8, %v1960_v62 }
 0xaf6   : > { %v1940_v24 = vpop.permute.xlu2 %1939 }
 0xafe   : > { %v1956_v35 = vpop.permute.xlu2 %1955 }
 0xaff   : > { %v1958_v41 = vmul.f32 %v4693_v49, %v1956_v35 }
 0xb05   : > { %v1948_v48 = vpop.permute.xlu0 %1947  ;;  %v1954_v54 = vpop.permute.xlu1 %1953 }
 0xb06   : > { %v1928_v59 = vpop.permute.xlu2 %1927  ;;  %v1957_v26 = vmul.f32 %v4693_v49, %v1954_v54  ;;  %v1951_v10 = vmul.f32 %v4697_v46, %v1948_v48  ;;  %v3697_v54 = vld [vmem:[#allocation2 + $0xf8] sm:$0xf0] }
 0xb08   : > { %v1977_v18 = vpack.c.bf16 %v1958_v41, %v1957_v26  ;;  %v3729_v26 = vld [vmem:[#allocation7 + $0xf4] sm:$0xf0]  ;;  %v3727_v41 = vld [vmem:[#allocation7 + $0xe4] sm:$0xf0] }
 0xb0d   : > { %v1950_v56 = vpop.permute.xlu1 %1949  ;;  %v1962_v44 = vpop.permute.xlu0 %1961 }
 0xb0e   : > { %v1964_v47 = vmul.f32 %v4689_v8, %v1962_v44  ;;  %v1952_v17 = vmul.f32 %v4697_v46, %v1950_v56  ;;  %v1936_v3 = vpop.permute.xlu2 %1935  ;;  %v1943_v8 = vmul.f32 %v4705_v13, %v1940_v24 }
 0xb0f   : > { %v1938_v53 = vmul.f32 %v4709_v20, %v1936_v3  ;;  %v3418_v3 = vld [vmem:[#allocation7 + $0x78] sm:$0xf0] }
 0xb10   : > { %v1978_v63 = vpack.c.bf16 %v1964_v47, %v1963_v57  ;;  %v1976_v7 = vpack.c.bf16 %v1952_v17, %v1951_v10  ;;  %v3416_v17 = vld [vmem:[#allocation7 + $0x70] sm:$0xf]  ;;  %v3712_v10 = vld [vmem:[#allocation7 + $0x74] sm:$0xf] }
 0xb12   : > { %1994 = vmatpush.bf16.msrb.mxu1 %v1978_v63 }
 0xb15   : > { %v1934_v23 = vpop.permute.xlu1 %1933  ;;  %v1966_v4 = vpop.permute.xlu0 %1965 }
 0xb16   : > { %1995 = vmatpush.bf16.msrb.mxu1 %v1977_v18  ;;  %v1969_v11 = vmul.f32 %v4717_v58, %v1966_v4  ;;  %v1937_v9 = vmul.f32 %v4709_v20, %v1934_v23  ;;  %v1924_v46 = vpop.permute.xlu2 %1923  ;;  %v3351_v20 = vld [vmem:[#allocation2 + $0xf0] sm:$0xf]  ;;  %v3464_v18 = vld [vmem:[#allocation7 + $0xd0] sm:$0xf]  ;;  %v3713_v4 = vld [vmem:[#allocation7 + $0x74] sm:$0xf0] }
 0xb17   : > { %v1926_v35 = vmul.f32 %v4701_v5, %v1924_v46  ;;  %v3352_v47 = vor.u32 %v3697_v54, %v3351_v20  ;;  %v3400_v20 = vld [vmem:[#allocation7 + $0x50] sm:$0xf]  ;;  %v3709_v54 = vld [vmem:[#allocation7 + $0x54] sm:$0xf0] }
 0xb18   : > { %v1973_v19 = vpack.c.bf16 %v1938_v53, %v1937_v9  ;;  %v3726_v53 = vld [vmem:[#allocation7 + $0xe4] sm:$0xf] }
 0xb1a   : > { %1996 = vmatpush.bf16.msrb.mxu1 %v1976_v7  ;;  %v3725_v7 = vld [vmem:[#allocation7 + $0xd4] sm:$0xf0] }
 0xb1d   : > { %v1968_v29 = vpop.permute.xlu1 %1967  ;;  %v1942_v0 = vpop.permute.xlu0 %1941 }
 0xb1e   : > { %v1970_v49 = vmul.f32 %v4717_v58, %v1968_v29  ;;  %v1944_v51 = vmul.f32 %v4705_v13, %v1942_v0  ;;  %1997 = vmatpush.bf16.msrb.mxu1 %v1975_v50  ;;  %v1931_v13 = vmul.f32 %v4713_v27, %v1928_v59  ;;  %v4789_v48 = vpop.permute.xlu2 %2679  ;;  %v3480_v59 = vld [vmem:[#allocation7 + $0xf0] sm:$0xf]  ;;  %v3417_v29 = vor.u32 %v3713_v4, %v3416_v17  ;;  %v3392_v4 = vld [vmem:[#allocation7 + $0x40] sm:$0xf] }
 0xb1f   : > { %v3481_v63 = vor.u32 %v3729_v26, %v3480_v59  ;;  %v3421_v0 = vor.u32 %v3712_v10, %v3418_v3  ;;  %v3402_v26 = vld [vmem:[#allocation7 + $0x58] sm:$0xf0]  ;;  %v3448_v17 = vld [vmem:[#allocation7 + $0xb0] sm:$0xf]  ;;  %v3707_v10 = vld [vmem:[#allocation7 + $0x44] sm:$0xf0] }
 0xb20   : > { %v1979_v33 = vpack.c.bf16 %v1970_v49, %v1969_v11  ;;  %v1974_v36 = vpack.c.bf16 %v1944_v51, %v1943_v8  ;;  %v3728_v8 = vld [vmem:[#allocation7 + $0xf4] sm:$0xf]  ;;  %v3482_v11 = vld [vmem:[#allocation7 + $0xf8] sm:$0xf0]  ;;  %2121 = vmatpush.bf16.msra.mxu0 %v3417_v29  ;;  %v3721_v3 = vld [vmem:[#allocation7 + $0xb4] sm:$0xf0] }
 0xb21   : > { %v3485_v51 = vor.u32 %v3728_v8, %v3482_v11  ;;  %2135 = vmatpush.bf16.msra.mxu3 %v3421_v0  ;;  %v3706_v29 = vld [vmem:[#allocation7 + $0x44] sm:$0xf]  ;;  %v3394_v0 = vld [vmem:[#allocation7 + $0x48] sm:$0xf0] }
 0xb22   : > { %1998 = vmatpush.bf16.msrb.mxu1 %v1974_v36  ;;  %2015 = vmatpush.bf16.msra.mxu2 %v1979_v33  ;;  %v3409_v33 = vor.u32 %v3711_v45, %v3408_v25  ;;  %v3710_v36 = vld [vmem:[#allocation7 + $0x64] sm:$0xf]  ;;  %v3458_v11 = vld [vmem:[#allocation7 + $0xc8] sm:$0xf0]  ;;  %v3393_v45 = vor.u32 %v3707_v10, %v3392_v4 }
 0xb23   : > { %v3722_v8 = vld [vmem:[#allocation7 + $0xc4] sm:$0xf]  ;;  %v3378_v4 = vld [vmem:[#allocation7 + $0x28] sm:$0xf0] }
 0xb24   : > { %2122 = vmatpush.bf16.msra.mxu0 %v3409_v33  ;;  %v3718_v10 = vld [vmem:[#allocation7 + $0xa4] sm:$0xf] }
 0xb25   : > { %v1922_v21 = vpop.permute.xlu1 %1921  ;;  %3357 = vmatmul.msk.bf16.vlgmr.msra.gmra.mxu2 %vm930_vm12, %v3356_v37  ;;  %v1930_v58 = vpop.permute.xlu0 %1929  ;;  %v3410_v37 = vld [vmem:[#allocation7 + $0x68] sm:$0xf0] }
 0xb26   : > { %v1932_v50 = vmul.f32 %v4713_v27, %v1930_v58  ;;  %1999 = vmatpush.bf16.msrb.mxu1 %v1973_v19  ;;  %v1925_v62 = vmul.f32 %v4701_v5, %v1922_v21  ;;  %v3472_v5 = vld [vmem:[#allocation7 + $0xe0] sm:$0xf]  ;;  %2246 = vmatpush.bf16.msrb.mxu2 %v3481_v63  ;;  %v4799_v49 = vpop.permute.xlu2 %2663  ;;  %v3465_v58 = vor.u32 %v3725_v7, %v3464_v18  ;;  %v3466_v63 = vld [vmem:[#allocation7 + $0xd8] sm:$0xf0] }
 0xb27   : > { %v3473_v23 = vor.u32 %v3727_v41, %v3472_v5  ;;  %v3724_v5 = vld [vmem:[#allocation7 + $0xd4] sm:$0xf]  ;;  %v3401_v18 = vor.u32 %v3709_v54, %v3400_v20  ;;  %v3386_v20 = vld [vmem:[#allocation7 + $0x38] sm:$0xf0] }
 0xb28   : > { %v1972_v24 = vpack.c.bf16 %v1932_v50, %v1931_v13  ;;  %v1971_v56 = vpack.c.bf16 %v1926_v35, %v1925_v62  ;;  %v3456_v13 = vld [vmem:[#allocation7 + $0xc0] sm:$0xf]  ;;  %v3723_v50 = vld [vmem:[#allocation7 + $0xc4] sm:$0xf0]  ;;  %v3474_v62 = vld [vmem:[#allocation7 + $0xe8] sm:$0xf0]  ;;  %v3469_v7 = vor.u32 %v3724_v5, %v3466_v63 }
 0xb29   : > { %v3477_v59 = vor.u32 %v3726_v53, %v3474_v62  ;;  %2123 = vmatpush.bf16.msra.mxu0 %v3401_v18  ;;  %v3397_v53 = vor.u32 %v3706_v29, %v3394_v0  ;;  %v3704_v62 = vld [vmem:[#allocation7 + $0x34] sm:$0xf]  ;;  %v3376_v63 = vld [vmem:[#allocation7 + $0x20] sm:$0xf]  ;;  %v3703_v18 = vld [vmem:[#allocation7 + $0x24] sm:$0xf0] }
 0xb2a   : > { %2000 = vmatpush.bf16.msrb.mxu1 %v1972_v24  ;;  %2247 = vmatpush.bf16.msrb.mxu2 %v3473_v23  ;;  %v3720_v54 = vld [vmem:[#allocation7 + $0xb4] sm:$0xf]  ;;  %v3389_v5 = vor.u32 %v3704_v62, %v3386_v20  ;;  %v3377_v0 = vor.u32 %v3703_v18, %v3376_v63  ;;  %v3368_v63 = vld [vmem:[#allocation7 + $0x10] sm:$0xf]  ;;  %v3701_v18 = vld [vmem:[#allocation7 + $0x14] sm:$0xf0] }
 0xb2d   : > { %v4791_v44 = vpop.permute.xlu1 %2673  ;;  %v4793_v57 = vpop.permute.xlu0 %2671  ;;  %2124 = vmatpush.bf16.msra.mxu0 %v3393_v45 }
 0xb2e   : > { %v2676_v27 = vsel %vm400_vm5, %v4791_v44, %v4793_v57  ;;  %2001 = vmatpush.bf16.msrb.mxu1 %v1971_v56  ;;  %v3708_v56 = vld [vmem:[#allocation7 + $0x54] sm:$0xf]  ;;  %2248 = vmatpush.bf16.msrb.mxu2 %v3465_v58  ;;  %v3705_v58 = vld [vmem:[#allocation7 + $0x34] sm:$0xf0] }
 0xb2f   : > { %v4816_v24 = vmul.f32 %v2676_v27, %v4203_v39  ;;  %v3457_v27 = vor.u32 %v3723_v50, %v3456_v13  ;;  %v3405_v23 = vor.u32 %v3708_v56, %v3402_v26  ;;  %v3719_v13 = vld [vmem:[#allocation7 + $0xa4] sm:$0xf0]  ;;  %v3461_v50 = vor.u32 %v3722_v8, %v3458_v11  ;;  %v3450_v56 = vld [vmem:[#allocation7 + $0xb8] sm:$0xf0]  ;;  %v3432_v26 = vld [vmem:[#allocation7 + $0x90] sm:$0xf] }
 0xb31   : > { %2002 = vmatmul.bf16.vlgmr.msrb.gmra.mxu1 %v3352_v47  ;;  %v3413_v47 = vor.u32 %v3710_v36, %v3410_v37  ;;  %v3449_v36 = vor.u32 %v3721_v3, %v3448_v17  ;;  %v3440_v37 = vld [vmem:[#allocation7 + $0xa0] sm:$0xf]  ;;  %v3453_v17 = vor.u32 %v3720_v54, %v3450_v56  ;;  %v3442_v3 = vld [vmem:[#allocation7 + $0xa8] sm:$0xf0]  ;;  %v3759_v56 = vld [vmem:[#allocation7 + $0x1e4] sm:$0xf0] }
 0xb32   : > { %2260 = vmatpush.bf16.msra.mxu1 %v3485_v51  ;;  %2249 = vmatpush.bf16.msrb.mxu2 %v3457_v27  ;;  %v3717_v27 = vld [vmem:[#allocation7 + $0x94] sm:$0xf0] }
 0xb33   : > { %2136 = vmatpush.bf16.msra.mxu3 %v3413_v47  ;;  %v3433_v11 = vor.u32 %v3717_v27, %v3432_v26  ;;  %v3757_v26 = vld [vmem:[#allocation7 + $0x1d4] sm:$0xf0]  ;;  %v3700_v27 = vld [vmem:[#allocation7 + $0x14] sm:$0xf] }
 0xb35   : > { %v4801_v9 = vpop.permute.xlu1 %2661  ;;  %v4803_v46 = vpop.permute.xlu0 %2681 }
 0xb36   : > { %v4809_v19 = vsel %vm375_vm6, %v4801_v9, %v4799_v49  ;;  %v2684_v21 = vsel %vm416_vm2, %v4803_v46, %v4789_v48  ;;  %2261 = vmatpush.bf16.msra.mxu1 %v3477_v59  ;;  %2250 = vmatpush.bf16.msrb.mxu2 %v3449_v36  ;;  %v3441_v59 = vor.u32 %v3719_v13, %v3440_v37  ;;  %v3608_v13 = vld [vmem:[#allocation7 + $0x1f0] sm:$0xf] }
 0xb37   : > { %v4819_v35 = vmul.f32 %v2684_v21, %v4178_v22  ;;  %2137 = vmatpush.bf16.msra.mxu3 %v3405_v23  ;;  %v3384_v21 = vld [vmem:[#allocation7 + $0x30] sm:$0xf]  ;;  %v3702_v23 = vld [vmem:[#allocation7 + $0x24] sm:$0xf] }
 0xb38   : > { %v3385_v47 = vor.u32 %v3705_v58, %v3384_v21  ;;  %v3381_v45 = vor.u32 %v3702_v23, %v3378_v4  ;;  %v3715_v21 = vld [vmem:[#allocation7 + $0x84] sm:$0xf0]  ;;  %v3445_v58 = vor.u32 %v3718_v10, %v3442_v3  ;;  %v3370_v23 = vld [vmem:[#allocation7 + $0x18] sm:$0xf0]  ;;  %v3716_v4 = vld [vmem:[#allocation7 + $0x94] sm:$0xf] }
 0xb39   : > { %v2718_v41 = vpack.c.bf16 %v4819_v35, %v4816_v24  ;;  %v3434_v10 = vld [vmem:[#allocation7 + $0x98] sm:$0xf0]  ;;  %v3373_v3 = vor.u32 %v3700_v27, %v3370_v23 }
 0xb3a   : > { %2262 = vmatpush.bf16.msra.mxu1 %v3469_v7  ;;  %v4831_v7 = vpop.permute.xlu2 %2653  ;;  %2125 = vmatpush.bf16.msra.mxu0 %v3385_v47  ;;  %v3610_v27 = vld [vmem:[#allocation7 + $0x1f8] sm:$0xf0] }
 0xb3b   : > { %2138 = vmatpush.bf16.msra.mxu3 %v3397_v53  ;;  %2251 = vmatpush.bf16.msrb.mxu2 %v3441_v59  ;;  %v3424_v53 = vld [vmem:[#allocation7 + $0x80] sm:$0xf]  ;;  %v3592_v59 = vld [vmem:[#allocation7 + $0x1d0] sm:$0xf] }
 0xb3c   : > { %v3425_v20 = vor.u32 %v3715_v21, %v3424_v53  ;;  %v3699_v21 = vld [vmem:[#allocation7 + $0x4] sm:$0xf0] }
 0xb3d   : > { %v4823_v51 = vpop.permute.xlu1 %2647  ;;  %v4825_v25 = vpop.permute.xlu0 %2645 }
 0xb3e   : > { %v2649_v33 = vsel %vm343_vm9, %v4825_v25, %v4823_v51  ;;  %2263 = vmatpush.bf16.msra.mxu1 %v3461_v50  ;;  %v3761_v50 = vld [vmem:[#allocation7 + $0x1f4] sm:$0xf0]  ;;  %2126 = vmatpush.bf16.msra.mxu0 %v3377_v0  ;;  %v3437_v0 = vor.u32 %v3716_v4, %v3434_v10  ;;  %v3576_v4 = vld [vmem:[#allocation7 + $0x1b0] sm:$0xf] }
 0xb3f   : > { %2139 = vmatpush.bf16.msra.mxu3 %v3389_v5  ;;  %v4840_v36 = vmul.f32 %v2649_v33, %v4255_v32  ;;  %2252 = vmatpush.bf16.msrb.mxu2 %v3433_v11  ;;  %v3609_v54 = vor.u32 %v3761_v50, %v3608_v13  ;;  %v3600_v33 = vld [vmem:[#allocation7 + $0x1e0] sm:$0xf]  ;;  %v3593_v5 = vor.u32 %v3757_v26, %v3592_v59  ;;  %v3755_v11 = vld [vmem:[#allocation7 + $0x1c4] sm:$0xf0]  ;;  %v3362_v13 = vld [vmem:[#allocation7 + $0x8] sm:$0xf0] }
 0xb40   : > { %v3601_v47 = vor.u32 %v3759_v56, %v3600_v33  ;;  %v3426_v33 = vld [vmem:[#allocation7 + $0x88] sm:$0xf0]  ;;  %v3745_v59 = vld [vmem:[#allocation7 + $0x174] sm:$0xf0]  ;;  %v3744_v26 = vld [vmem:[#allocation7 + $0x174] sm:$0xf] }
 0xb41   : > { %v3753_v10 = vld [vmem:[#allocation7 + $0x1b4] sm:$0xf0] }
 0xb42   : > { %2264 = vmatpush.bf16.msra.mxu1 %v3453_v17  ;;  %v3369_v17 = vor.u32 %v3701_v18, %v3368_v63  ;;  %v3546_v63 = vld [vmem:[#allocation7 + $0x178] sm:$0xf0]  ;;  %v3760_v18 = vld [vmem:[#allocation7 + $0x1f4] sm:$0xf] }
 0xb43   : > { %2140 = vmatpush.bf16.msra.mxu3 %v3381_v45  ;;  %2253 = vmatpush.bf16.msrb.mxu2 %v3425_v20  ;;  %v3360_v45 = vld [vmem:[#allocation7] sm:$0xf]  ;;  %v3613_v23 = vor.u32 %v3760_v18, %v3610_v27  ;;  %v3594_v18 = vld [vmem:[#allocation7 + $0x1d8] sm:$0xf0] }
 0xb44   : > { %2127 = vmatpush.bf16.msra.mxu0 %v3369_v17  ;;  %v3361_v50 = vor.u32 %v3699_v21, %v3360_v45  ;;  %v3549_v17 = vor.u32 %v3744_v26, %v3546_v63  ;;  %v3758_v21 = vld [vmem:[#allocation7 + $0x1e4] sm:$0xf]  ;;  %v3756_v63 = vld [vmem:[#allocation7 + $0x1d4] sm:$0xf] }
 0xb45   : > { %v4833_v29 = vpop.permute.xlu0 %2655 }
 0xb46   : > { %v2657_v8 = vsel %vm359_vm7, %v4831_v7, %v4833_v29  ;;  %2265 = vmatpush.bf16.msra.mxu1 %v3445_v58  ;;  %v3698_v58 = vld [vmem:[#allocation7 + $0x4] sm:$0xf] }
 0xb47   : > { %v4843_v37 = vmul.f32 %v2657_v8, %v4231_v1  ;;  %2496 = vmatpush.bf16.msra.mxu2 %v3609_v54  ;;  %v3584_v8 = vld [vmem:[#allocation7 + $0x1c0] sm:$0xf]  ;;  %2141 = vmatpush.bf16.msra.mxu3 %v3373_v3  ;;  %v3365_v20 = vor.u32 %v3698_v58, %v3362_v13  ;;  %v3714_v54 = vld [vmem:[#allocation7 + $0x84] sm:$0xf]  ;;  %v3577_v3 = vor.u32 %v3753_v10, %v3576_v4  ;;  %v3602_v58 = vld [vmem:[#allocation7 + $0x1e8] sm:$0xf0] }
 0xb48   : > { %v3585_v53 = vor.u32 %v3755_v11, %v3584_v8  ;;  %v3429_v56 = vor.u32 %v3714_v54, %v3426_v33  ;;  %2128 = vmatpush.bf16.msra.mxu0 %v3361_v50  ;;  %v3743_v8 = vld [vmem:[#allocation7 + $0x164] sm:$0xf0]  ;;  %v3742_v11 = vld [vmem:[#allocation7 + $0x164] sm:$0xf]  ;;  %v3605_v50 = vor.u32 %v3758_v21, %v3602_v58  ;;  %v3568_v54 = vld [vmem:[#allocation7 + $0x1a0] sm:$0xf] }
 0xb49   : > { %v2714_v62 = vpack.c.bf16 %v4843_v37, %v4840_v36  ;;  %v3751_v33 = vld [vmem:[#allocation7 + $0x1a4] sm:$0xf0]  ;;  %v3749_v4 = vld [vmem:[#allocation7 + $0x194] sm:$0xf0]  ;;  %v3586_v21 = vld [vmem:[#allocation7 + $0x1c8] sm:$0xf0]  ;;  %v2640_v36 = vpop.permute.xlu1 %2639 }
 0xb4a   : > { %2266 = vmatpush.bf16.msra.mxu1 %v3437_v0  ;;  %v3536_v0 = vld [vmem:[#allocation7 + $0x160] sm:$0xf] }
 0xb4b   : > { %2497 = vmatpush.bf16.msra.mxu2 %v3601_v47  ;;  %v3544_v47 = vld [vmem:[#allocation7 + $0x170] sm:$0xf]  ;;  %2142 = vmatpush.bf16.msra.mxu3 %v3365_v20  ;;  %v3537_v45 = vor.u32 %v3743_v8, %v3536_v0  ;;  %v3739_v0 = vld [vmem:[#allocation7 + $0x144] sm:$0xf0]  ;;  %v3738_v8 = vld [vmem:[#allocation7 + $0x144] sm:$0xf] }
 0xb4c   : > { %v3528_v20 = vld [vmem:[#allocation7 + $0x150] sm:$0xf] }
 0xb4e   : > { %2267 = vmatpush.bf16.msra.mxu1 %v3429_v56  ;;  %v3741_v56 = vld [vmem:[#allocation7 + $0x154] sm:$0xf0] }
 0xb4f   : > { %2498 = vmatpush.bf16.msra.mxu2 %v3593_v5  ;;  %v3545_v5 = vor.u32 %v3745_v59, %v3544_v47  ;;  %2385 = vmatpush.bf16.msrb.mxu3 %v3549_v17  ;;  %v3569_v47 = vor.u32 %v3751_v33, %v3568_v54  ;;  %v3740_v59 = vld [vmem:[#allocation7 + $0x154] sm:$0xf]  ;;  %v3529_v26 = vor.u32 %v3741_v56, %v3528_v20  ;;  %v3747_v54 = vld [vmem:[#allocation7 + $0x184] sm:$0xf0]  ;;  %v3737_v20 = vld [vmem:[#allocation7 + $0x134] sm:$0xf0] }
 0xb50   : > { %v3597_v17 = vor.u32 %v3756_v63, %v3594_v18  ;;  %v3736_v56 = vld [vmem:[#allocation7 + $0x134] sm:$0xf]  ;;  %v3578_v63 = vld [vmem:[#allocation7 + $0x1b8] sm:$0xf0] }
 0xb51   : > { %2371 = vmatpush.bf16.msrb.mxu0 %v3545_v5  ;;  %v3530_v5 = vld [vmem:[#allocation7 + $0x158] sm:$0xf0] }
 0xb52   : > { %2510 = vmatpush.bf16.msrb.mxu1 %v3613_v23  ;;  %v3533_v27 = vor.u32 %v3740_v59, %v3530_v5  ;;  %v3560_v23 = vld [vmem:[#allocation7 + $0x190] sm:$0xf]  ;;  %v3752_v5 = vld [vmem:[#allocation7 + $0x1b4] sm:$0xf] }
 0xb53   : > { %2499 = vmatpush.bf16.msra.mxu2 %v3585_v53  ;;  %v3538_v53 = vld [vmem:[#allocation7 + $0x168] sm:$0xf0]  ;;  %v3561_v10 = vor.u32 %v3749_v4, %v3560_v23  ;;  %v3735_v23 = vld [vmem:[#allocation7 + $0x124] sm:$0xf0]  ;;  %v3734_v4 = vld [vmem:[#allocation7 + $0x124] sm:$0xf] }
 0xb54   : > { %v3541_v13 = vor.u32 %v3742_v11, %v3538_v53  ;;  %v3754_v53 = vld [vmem:[#allocation7 + $0x1c4] sm:$0xf] }
 0xb55   : > { %2372 = vmatpush.bf16.msrb.mxu0 %v3537_v45  ;;  %v3522_v45 = vld [vmem:[#allocation7 + $0x148] sm:$0xf0] }
 0xb56   : > { %2386 = vmatpush.bf16.msrb.mxu3 %v3541_v13  ;;  %2511 = vmatpush.bf16.msrb.mxu1 %v3605_v50  ;;  %v3525_v58 = vor.u32 %v3738_v8, %v3522_v45  ;;  %v3589_v13 = vor.u32 %v3754_v53, %v3586_v21  ;;  %v3552_v50 = vld [vmem:[#allocation7 + $0x180] sm:$0xf]  ;;  %v3570_v8 = vld [vmem:[#allocation7 + $0x1a8] sm:$0xf0]  ;;  %v3496_v53 = vld [vmem:[#allocation7 + $0x110] sm:$0xf] }
 0xb57   : > { %2500 = vmatpush.bf16.msra.mxu2 %v3577_v3  ;;  %v3520_v3 = vld [vmem:[#allocation7 + $0x140] sm:$0xf]  ;;  %v3553_v33 = vor.u32 %v3747_v54, %v3552_v50  ;;  %v3733_v21 = vld [vmem:[#allocation7 + $0x114] sm:$0xf0]  ;;  %v3498_v50 = vld [vmem:[#allocation7 + $0x118] sm:$0xf0] }
 0xb58   : > { %v3521_v11 = vor.u32 %v3739_v0, %v3520_v3  ;;  %v3506_v3 = vld [vmem:[#allocation7 + $0x128] sm:$0xf0]  ;;  %v3750_v0 = vld [vmem:[#allocation7 + $0x1a4] sm:$0xf]  ;;  %v3748_v54 = vld [vmem:[#allocation7 + $0x194] sm:$0xf] }
 0xb59   : > { %2373 = vmatpush.bf16.msrb.mxu0 %v3529_v26  ;;  %v3514_v26 = vld [vmem:[#allocation7 + $0x138] sm:$0xf0]  ;;  %v3573_v45 = vor.u32 %v3750_v0, %v3570_v8  ;;  %v2683_v0 = vsel %vm416_vm2, %v4789_v48, %v4803_v46 }
 0xb5a   : > { %2387 = vmatpush.bf16.msrb.mxu3 %v3533_v27  ;;  %2512 = vmatpush.bf16.msrb.mxu1 %v3597_v17  ;;  %v3517_v18 = vor.u32 %v3736_v56, %v3514_v26  ;;  %v3581_v27 = vor.u32 %v3752_v5, %v3578_v63  ;;  %v3504_v17 = vld [vmem:[#allocation7 + $0x120] sm:$0xf]  ;;  %v3730_v26 = vld [vmem:[#allocation7 + $0x104] sm:$0xf]  ;;  %v3490_v63 = vld [vmem:[#allocation7 + $0x108] sm:$0xf0] }
 0xb5b   : > { %2501 = vmatpush.bf16.msra.mxu2 %v3569_v47  ;;  %v3512_v47 = vld [vmem:[#allocation7 + $0x130] sm:$0xf]  ;;  %v3488_v56 = vld [vmem:[#allocation7 + $0x100] sm:$0xf] }
 0xb5c   : > { %v3513_v59 = vor.u32 %v3737_v20, %v3512_v47 }
 0xb5d   : > { %2374 = vmatpush.bf16.msrb.mxu0 %v3521_v11  ;;  %v3509_v11 = vor.u32 %v3734_v4, %v3506_v3 }
 0xb5e   : > { %2388 = vmatpush.bf16.msrb.mxu3 %v3525_v58  ;;  %2513 = vmatpush.bf16.msrb.mxu1 %v3589_v13  ;;  %v3732_v58 = vld [vmem:[#allocation7 + $0x114] sm:$0xf]  ;;  %v3497_v13 = vor.u32 %v3733_v21, %v3496_v53  ;;  %v2675_v53 = vsel %vm400_vm5, %v4793_v57, %v4791_v44  ;;  %v2685_v21 = vmul.f32 %v2683_v0, %v4173_v16 }
 0xb5f   : > { %2502 = vmatpush.bf16.msra.mxu2 %v3561_v10  ;;  %v3505_v10 = vor.u32 %v3735_v23, %v3504_v17  ;;  %v3501_v47 = vor.u32 %v3732_v58, %v3498_v50  ;;  %v3493_v17 = vor.u32 %v3730_v26, %v3490_v63  ;;  %v2666_v50 = vsel %vm375_vm6, %v4799_v49, %v4801_v9 }
 0xb60   : > { %v2667_v46 = vmul.f32 %v2666_v50, %v4229_v61  ;;  %v2658_v44 = vsel %vm359_vm7, %v4833_v29, %v4831_v7  ;;  %v2669_v57 = vmul.f32 %v4391_v52, %v4207_v42  ;;  %v2650_v49 = vsel %vm343_vm9, %v4823_v51, %v4825_v25 }
 0xb61   : > { %2375 = vmatpush.bf16.msrb.mxu0 %v3513_v59  ;;  %v3731_v59 = vld [vmem:[#allocation7 + $0x104] sm:$0xf0]  ;;  %v2659_v9 = vmul.f32 %v2658_v44, %v4227_v60  ;;  %v2533_v7 = vpack.c.bf16 %v4171_v15, %v4171_v15  ;;  %v2532_v51 = vpack.c.bf16 %v4169_v14, %v4169_v14  ;;  %v2668_v44 = vmul.f32 %v4809_v19, %v4233_v2 }
 0xb62   : > { %2389 = vmatpush.bf16.msrb.mxu3 %v3517_v18  ;;  %2514 = vmatpush.bf16.msrb.mxu1 %v3581_v27  ;;  %v3489_v5 = vor.u32 %v3731_v59, %v3488_v56  ;;  %v3746_v18 = vld [vmem:[#allocation7 + $0x184] sm:$0xf]  ;;  %v3554_v27 = vld [vmem:[#allocation7 + $0x188] sm:$0xf0] }
 0xb63   : > { %2503 = vmatpush.bf16.msra.mxu2 %v3553_v33  ;;  %v3562_v33 = vld [vmem:[#allocation7 + $0x198] sm:$0xf0]  ;;  %v3557_v23 = vor.u32 %v3746_v18, %v3554_v27  ;;  %v2543_v29 = vand.u32 %v2533_v7, %v4456_v40  ;;  %v2540_v25 = vand.u32 %v2532_v51, %v4456_v40 }
 0xb64   : > { %v3565_v20 = vor.u32 %v3748_v54, %v3562_v33  ;;  %v2677_v54 = vmul.f32 %v2675_v53, %v4209_v43 }
 0xb65   : > { %2376 = vmatpush.bf16.msrb.mxu0 %v3505_v10 }
 0xb66   : > { %2390 = vmatpush.bf16.msrb.mxu3 %v3509_v11  ;;  %2515 = vmatpush.bf16.msrb.mxu1 %v3573_v45  ;;  %v2717_v33 = vpack.c.bf16 %v2685_v21, %v2677_v54 }
 0xb69   : > { %2377 = vmatpush.bf16.msrb.mxu0 %v3497_v13 }
 0xb6a   : > { %2391 = vmatpush.bf16.msrb.mxu3 %v3501_v47  ;;  %2516 = vmatpush.bf16.msrb.mxu1 %v3565_v20  ;;  %v2715_v47 = vpack.c.bf16 %v2669_v57, %v2667_v46  ;;  %v2651_v20 = vmul.f32 %v2650_v49, %v4251_v30  ;;  %v2534_v46 = vld [vmem:[#allocation2 + $0x108] sm:$0xf]  ;;  %v2670_v57 = vmul.f32 %v4393_v55, %v4201_v38 }
 0xb6c   : > { %v2713_v56 = vpack.c.bf16 %v2659_v9, %v2651_v20  ;;  %v2716_v49 = vpack.c.bf16 %v2670_v57, %v2668_v44  ;;  %v4932_v20 = vpop.permute.xlu1 %2687 }
 0xb6d   : > { %2378 = vmatpush.bf16.msrb.mxu0 %v3489_v5 }
 0xb6e   : > { %2392 = vmatpush.bf16.msrb.mxu3 %v3493_v17  ;;  %2517 = vmatpush.bf16.msrb.mxu1 %v3557_v23 }
 0xba8   : > { %v2017_v4 = vpop.f32.mrf.mxu2 }
 0xbae   : > { %v2003_v10 = vpop.f32.mrf.mxu1 }
 0xbaf   : > { %v2018_v3 = vadd.f32 %v2017_v4, %v2003_v10 }
 0xbb0   : > { %v2019_v8 = vpop.f32.mrf.mxu2 }
 0xbb1   : > { %v2022_v58 = vmax.f32 %v2018_v3, 0.0 }
 0xbb6   : > { %v2005_v11 = vpop.f32.mrf.mxu1 }
 0xbb7   : > { %v2020_v45 = vadd.f32 %v2019_v8, %v2005_v11 }
 0xbb9   : > { %v2023_v13 = vmax.f32 %v2020_v45, 0.0 }
 0xbbb   : > { %v2024_v48 = vpack.c.bf16 %v2023_v13, %v2022_v58 }
 0xbbd   : > { %2129 = vmatmul.bf16.vlgmr.msra.gmra.mxu0 %v2024_v48  ;;  %2143 = vmatmul.bf16.vlgmr.msra.gmra.mxu3 %v2024_v48 }
 0xbbe   : > { %2254 = vmatmul.bf16.vlgmr.msrb.gmra.mxu2 %v2024_v48  ;;  %2268 = vmatmul.bf16.vlgmr.msra.gmra.mxu1 %v2024_v48 }
 0xbbf   : > { %2731 = vmatpush.bf16.msrb.mxu2 %v2717_v33  ;;  %2561 = vmatpush.bf16.msra.mxu3 %v2543_v29 }
 0xbc0   : > { %2548 = vmatpush.bf16.msra.mxu0 %v2540_v25  ;;  %2750 = vmatpush.bf16.msra.mxu1 %v2540_v25 }
 0xbc3   : > { %2732 = vmatpush.bf16.msrb.mxu2 %v2715_v47 }
 0xbc7   : > { %2733 = vmatpush.bf16.msrb.mxu2 %v2713_v56 }
 0xbcd   : > { %2379 = vmatmul.bf16.vlgmr.msrb.gmra.mxu0 %v2024_v48  ;;  %2393 = vmatmul.bf16.vlgmr.msrb.gmra.mxu3 %v2024_v48 }
 0xbce   : > { %2504 = vmatmul.bf16.vlgmr.msra.gmra.mxu2 %v2024_v48  ;;  %2518 = vmatmul.bf16.vlgmr.msrb.gmra.mxu1 %v2024_v48 }
 0xc3a   : > { %v2130_v26 = vpop.f32.mrf.mxu0 }
 0xc3b   : > { %v2269_v59 = vpop.f32.mrf.mxu1 }
 0xc40   : > { %v2144_v5 = vpop.f32.mrf.mxu3 }
 0xc41   : > { %v2255_v63 = vpop.f32.mrf.mxu2 }
 0xc42   : > { %v2132_v27 = vpop.f32.mrf.mxu0 }
 0xc43   : > { %v2271_v18 = vpop.f32.mrf.mxu1  ;;  %v2524_v33 = vpack.c.bf16 %v2132_v27, %v2130_v26 }
 0xc44   : > { %v2527_v13 = vpack.c.bf16 %v2271_v18, %v2269_v59 }
 0xc48   : > { %v2146_v17 = vpop.f32.mrf.mxu3 }
 0xc49   : > { %v2257_v23 = vpop.f32.mrf.mxu2  ;;  %v2525_v54 = vpack.c.bf16 %v2146_v17, %v2144_v5 }
 0xc4a   : > { %v2380_v3 = vpop.f32.mrf.mxu0  ;;  %v2526_v48 = vpack.c.bf16 %v2257_v23, %v2255_v63  ;;  %v5110_v63 = vld [vmem:[#allocation12_spill] sm:$0xff] }
 0xc4b   : > { %v2519_v4 = vpop.f32.mrf.mxu1 }
 0xc50   : > { %v2394_v10 = vpop.f32.mrf.mxu3 }
 0xc51   : > { %v2505_v0 = vpop.f32.mrf.mxu2 }
 0xc52   : > { %v2382_v58 = vpop.f32.mrf.mxu0 }
 0xc53   : > { %v2521_v8 = vpop.f32.mrf.mxu1  ;;  %v2528_v50 = vpack.c.bf16 %v2382_v58, %v2380_v3  ;;  %v5112_v58 = vld [vmem:[#allocation14_spill] sm:$0xff] }
 0xc54   : > { %v2531_v11 = vpack.c.bf16 %v2521_v8, %v2519_v4 }
 0xc56   : > { %2562 = vmatpush.bf16.msra.mxu3 %v2531_v11 }
 0xc58   : > { %v2396_v45 = vpop.f32.mrf.mxu3 }
 0xc59   : > { %v2529_v53 = vpack.c.bf16 %v2396_v45, %v2394_v10  ;;  %v2507_v40 = vpop.f32.mrf.mxu2 }
 0xc5a   : > { %v2530_v21 = vpack.c.bf16 %v2507_v40, %v2505_v0  ;;  %v5111_v40 = vld [vmem:[#allocation13_spill] sm:$0xff] }
 0xc5b   : > { %2563 = vmatpush.bf16.msra.mxu3 %v2529_v53 }
 0xc5c   : > { %2549 = vmatpush.bf16.msra.mxu0 %v2530_v21 }
 0xc5f   : > { %2564 = vmatpush.bf16.msra.mxu3 %v2527_v13 }
 0xc60   : > { %2550 = vmatpush.bf16.msra.mxu0 %v2528_v50 }
 0xc63   : > { %2565 = vmatpush.bf16.msra.mxu3 %v2525_v54 }
 0xc64   : > { %2551 = vmatpush.bf16.msra.mxu0 %v2526_v48 }
 0xc66   : > { %3615 = vmatmul.msk.bf16.vlgmr.msra.gmra.mxu3 %vm2535_vm4, %v2534_v46 }
 0xc67   : > { %2776 = vmatpush.bf16.msrb.mxu3 %v2543_v29 }
 0xc68   : > { %2552 = vmatpush.bf16.msra.mxu0 %v2524_v33 }
 0xc6b   : > { %3614 = vmatmul.msk.bf16.vlgmr.msra.gmra.mxu0 %vm2535_vm4, %v2534_v46 }
 0xc6c   : > { %2757 = vmatpush.bf16.msrb.mxu0 %v2718_v41 }
 0xc70   : > { %2758 = vmatpush.bf16.msrb.mxu0 %v2716_v49 }
 0xc74   : > { %2759 = vmatpush.bf16.msrb.mxu0 %v2714_v62  ;;  %v2638_v62 = vpop.permute.xlu0 %2637 }
 0xc75   : > { %v2641_v56 = vsel %vm328_vm8, %v2638_v62, %v2640_v36 }
 0xc76   : > { %v2644_v26 = vmul.f32 %v2641_v56, %v4253_v31 }
 0xce8   : > { %v4890_v9 = vpop.f32.mrf.mxu0 }
 0xce9   : > { %2605 = vrot.lane.b32.xlu0 %v4890_v9, %s4005_s14  ;;  %2613 = vrot.lane.b32.xlu2 %v4890_v9, %s4002_s11  ;;  %v4896_v19 = vpop.f32.mrf.mxu3 }
 0xcea   : > { %2629 = vrot.lane.b32.xlu1 %v4890_v9, %s4003_s12 }
 0xcf0   : > { %v2556_v24 = vpop.f32.mrf.mxu0 }
 0xcf1   : > { %2571 = vrot.lane.b32.xlu0 %v4890_v9, %s4008_s17  ;;  %2587 = vrot.lane.b32.xlu2 %v4890_v9, %s4006_s15  ;;  %v2569_v35 = vpop.f32.mrf.mxu3 }
 0xcf2   : > { %2621 = vrot.lane.b32.xlu1 %v4890_v9, %s4004_s13 }
 0xcf9   : > { %2615 = vrot.lane.b32.xlu0 %v4896_v19, %s4002_s11  ;;  %2579 = vrot.lane.b32.xlu2 %v4890_v9, %s4009_s18 }
 0xcfa   : > { %2595 = vrot.lane.b32.xlu1 %v4890_v9, %s4007_s16 }
 0xd01   : > { %2589 = vrot.lane.b32.xlu0 %v4896_v19, %s4006_s15  ;;  %2631 = vrot.lane.b32.xlu2 %v4896_v19, %s4003_s12 }
 0xd02   : > { %2607 = vrot.lane.b32.xlu1 %v4896_v19, %s4005_s14 }
 0xd09   : > { %2581 = vrot.lane.b32.xlu0 %v4896_v19, %s4009_s18  ;;  %2623 = vrot.lane.b32.xlu2 %v4896_v19, %s4004_s13 }
 0xd0a   : > { %2573 = vrot.lane.b32.xlu1 %v4896_v19, %s4008_s17 }
 0xd11   : > { %2695 = vrot.lane.b32.xlu0 %v4391_v52, %s4003_s12  ;;  %2597 = vrot.lane.b32.xlu2 %v4896_v19, %s4007_s16  ;;  %v2642_v52 = vsel %vm328_vm8, %v2640_v36, %v2638_v62  ;;  %v2603_v36 = vmul.f32 %v4890_v9, %v4207_v42  ;;  %v2604_v62 = vmul.f32 %v4896_v19, %v4201_v38 }
 0xd12   : > { %2697 = vrot.lane.b32.xlu1 %v4393_v55, %s4003_s12  ;;  %v2643_v59 = vmul.f32 %v2642_v52, %v4248_v28 }
 0xd19   : > { %2689 = vrot.lane.b32.xlu2 %v4393_v55, %s4004_s13 }
 0xd43   : > { %v2614_v41 = vpop.permute.xlu2 %2613 }
 0xd4b   : > { %v2588_v37 = vpop.permute.xlu2 %2587 }
 0xd53   : > { %v2580_v47 = vpop.permute.xlu2 %2579 }
 0xd5b   : > { %v2606_v7 = vpop.permute.xlu0 %2605  ;;  %v2632_v29 = vpop.permute.xlu2 %2631 }
 0xd5c   : > { %v2630_v51 = vpop.permute.xlu1 %2629 }
 0xd5d   : > { %v2633_v25 = vsel %vm448_vm3, %v2630_v51, %v2632_v29  ;;  %v2634_v55 = vsel %vm448_vm3, %v2632_v29, %v2630_v51 }
 0xd5e   : > { %v2635_v5 = vmul.f32 %v2633_v25, %v4165_v12  ;;  %v2636_v18 = vmul.f32 %v2634_v55, %v5110_v63 }
 0xd60   : > { %v2711_v27 = vpack.c.bf16 %v2643_v59, %v2635_v5  ;;  %v2712_v17 = vpack.c.bf16 %v2644_v26, %v2636_v18  ;;  %v2721_v26 = vld [vmem:[#allocation2 + $0x120] sm:$0xff] }
 0xd62   : > { %2734 = vmatpush.bf16.msrb.mxu2 %v2711_v27  ;;  %2760 = vmatpush.bf16.msrb.mxu0 %v2712_v17 }
 0xd63   : > { %v2572_v23 = vpop.permute.xlu0 %2571  ;;  %v2624_v10 = vpop.permute.xlu2 %2623 }
 0xd64   : > { %v2622_v4 = vpop.permute.xlu1 %2621 }
 0xd65   : > { %v2625_v3 = vsel %vm432_vm0, %v2622_v4, %v2624_v10  ;;  %v2626_v0 = vsel %vm432_vm0, %v2624_v10, %v2622_v4 }
 0xd66   : > { %v2627_v21 = vmul.f32 %v2625_v3, %v5111_v40  ;;  %v2628_v13 = vmul.f32 %v2626_v0, %v5112_v58 }
 0xd6b   : > { %v2616_v8 = vpop.permute.xlu0 %2615  ;;  %v2598_v44 = vpop.permute.xlu2 %2597 }
 0xd6c   : > { %v2617_v11 = vsel %vm416_vm2, %v2614_v41, %v2616_v8  ;;  %v2618_v45 = vsel %vm416_vm2, %v2616_v8, %v2614_v41  ;;  %v2596_v53 = vpop.permute.xlu1 %2595 }
 0xd6d   : > { %v2619_v50 = vmul.f32 %v2617_v11, %v4173_v16  ;;  %v2620_v54 = vmul.f32 %v2618_v45, %v4178_v22  ;;  %v2599_v56 = vsel %vm375_vm6, %v2596_v53, %v2598_v44  ;;  %v2600_v52 = vsel %vm375_vm6, %v2598_v44, %v2596_v53 }
 0xd6e   : > { %v2601_v9 = vmul.f32 %v2600_v52, %v4229_v61  ;;  %v2602_v19 = vmul.f32 %v2599_v56, %v4233_v2  ;;  %v2723_v53 = vunpack.c.l.b16 %v2721_v26 }
 0xd6f   : > { %v2709_v48 = vpack.c.bf16 %v2627_v21, %v2619_v50  ;;  %v2710_v46 = vpack.c.bf16 %v2628_v13, %v2620_v54 }
 0xd70   : > { %v2725_v54 = vpack.c.b16 %v2723_v53, %v2723_v53 }
 0xd71   : > { %2735 = vmatpush.bf16.msrb.mxu2 %v2709_v48  ;;  %2761 = vmatpush.bf16.msrb.mxu0 %v2710_v46 }
 0xd73   : > { %v2590_v33 = vpop.permute.xlu0 %2589  ;;  %v2690_v21 = vpop.permute.xlu2 %2689 }
 0xd74   : > { %v2608_v57 = vpop.permute.xlu1 %2607  ;;  %v2591_v49 = vsel %vm359_vm7, %v2588_v37, %v2590_v33  ;;  %v2592_v24 = vsel %vm359_vm7, %v2590_v33, %v2588_v37  ;;  %v2691_v50 = vsel %vm432_vm0, %v4932_v20, %v2690_v21  ;;  %v2692_v48 = vsel %vm432_vm0, %v2690_v21, %v4932_v20 }
 0xd75   : > { %v2609_v35 = vsel %vm400_vm5, %v2606_v7, %v2608_v57  ;;  %v2610_v41 = vsel %vm400_vm5, %v2608_v57, %v2606_v7  ;;  %v2593_v51 = vmul.f32 %v2592_v24, %v4227_v60  ;;  %v2594_v7 = vmul.f32 %v2591_v49, %v4231_v1 }
 0xd76   : > { %v2611_v37 = vmul.f32 %v2609_v35, %v4209_v43  ;;  %v2612_v29 = vmul.f32 %v2610_v41, %v4203_v39  ;;  %v2693_v33 = vmul.f32 %v2691_v50, %v5111_v40  ;;  %v2724_v49 = vunpack.c.h.b16 %v2721_v26 }
 0xd77   : > { %v2705_v17 = vpack.c.bf16 %v2601_v9, %v2593_v51  ;;  %v2706_v4 = vpack.c.bf16 %v2602_v19, %v2594_v7  ;;  %v2694_v24 = vmul.f32 %v2692_v48, %v5112_v58 }
 0xd78   : > { %v2707_v25 = vpack.c.bf16 %v2611_v37, %v2603_v36  ;;  %v2708_v55 = vpack.c.bf16 %v2612_v29, %v2604_v62  ;;  %v2726_v62 = vpack.c.b16 %v2724_v49, %v2724_v49 }
 0xd7a   : > { %2736 = vmatpush.bf16.msrb.mxu2 %v2707_v25  ;;  %2762 = vmatpush.bf16.msrb.mxu0 %v2708_v55 }
 0xd7b   : > { %v2582_v59 = vpop.permute.xlu0 %2581 }
 0xd7c   : > { %v2583_v5 = vsel %vm343_vm9, %v2580_v47, %v2582_v59  ;;  %v2584_v18 = vsel %vm343_vm9, %v2582_v59, %v2580_v47  ;;  %v2574_v27 = vpop.permute.xlu1 %2573 }
 0xd7d   : > { %v2585_v10 = vmul.f32 %v2584_v18, %v4251_v30  ;;  %v2586_v3 = vmul.f32 %v2583_v5, %v4255_v32  ;;  %v2575_v0 = vsel %vm328_vm8, %v2572_v23, %v2574_v27  ;;  %v2576_v8 = vsel %vm328_vm8, %v2574_v27, %v2572_v23 }
 0xd7e   : > { %v2577_v11 = vmul.f32 %v2576_v8, %v4248_v28  ;;  %v2578_v45 = vmul.f32 %v2575_v0, %v4253_v31  ;;  %2737 = vmatpush.bf16.msrb.mxu2 %v2705_v17  ;;  %2763 = vmatpush.bf16.msrb.mxu0 %v2706_v4 }
 0xd80   : > { %v2703_v47 = vpack.c.bf16 %v2585_v10, %v2577_v11  ;;  %v2704_v13 = vpack.c.bf16 %v2586_v3, %v2578_v45 }
 0xd82   : > { %2738 = vmatpush.bf16.msrb.mxu2 %v2703_v47  ;;  %2764 = vmatpush.bf16.msrb.mxu0 %v2704_v13 }
 0xd83   : > { %v2696_v23 = vpop.permute.xlu0 %2695 }
 0xd84   : > { %v2698_v46 = vpop.permute.xlu1 %2697 }
 0xd85   : > { %v2699_v44 = vsel %vm448_vm3, %v2696_v23, %v2698_v46  ;;  %v2700_v57 = vsel %vm448_vm3, %v2698_v46, %v2696_v23  ;;  %2765 = vmatmul.bf16.vlgmr.msrb.gmra.mxu0 %v2725_v54  ;;  %2739 = vmatmul.bf16.vlgmr.msrb.gmra.mxu2 %v2725_v54 }
 0xd86   : > { %v2701_v35 = vmul.f32 %v2699_v44, %v4165_v12  ;;  %v2702_v41 = vmul.f32 %v2700_v57, %v5110_v63 }
 0xd88   : > { %v2719_v20 = vpack.c.bf16 %v2701_v35, %v2693_v33  ;;  %v2720_v36 = vpack.c.bf16 %v2702_v41, %v2694_v24 }
 0xd8a   : > { %2751 = vmatpush.bf16.msra.mxu1 %v2719_v20  ;;  %2777 = vmatpush.bf16.msrb.mxu3 %v2720_v36 }
 0xd8d   : > { %3617 = vmatmul.msk.bf16.vlgmr.msrb.gmra.mxu3 %vm930_vm12, %v2726_v62  ;;  %3616 = vmatmul.msk.bf16.vlgmr.msra.gmra.mxu1 %vm930_vm12, %v2726_v62 }
 0xe02   : > { %v2766_v56 = vpop.f32.mrf.mxu0 }
 0xe08   : > { %v2740_v52 = vpop.f32.mrf.mxu2 }
 0xe0a   : > { %v2753_v37 = vpop.f32.mrf.mxu1  ;;  %v2768_v29 = vpop.f32.mrf.mxu0 }
 0xe0b   : > { %v2754_v59 = vadd.f32 %v2753_v37, %v2740_v52 }
 0xe0d   : > { %v2783_v26 = vmax.f32 %v2754_v59, 0.0 }
 0xe10   : > { %v2779_v51 = vpop.f32.mrf.mxu3  ;;  %v2742_v25 = vpop.f32.mrf.mxu2 }
 0xe11   : > { %v2780_v7 = vadd.f32 %v2779_v51, %v2766_v56 }
 0xe12   : > { %v2755_v55 = vpop.f32.mrf.mxu1 }
 0xe13   : > { %v2784_v9 = vmax.f32 %v2780_v7, 0.0 }
 0xe15   : > { %2837 = vrot.lane.b32.xlu1 %v2784_v9, %s4004_s13  ;;  %2829 = vrot.lane.b32.xlu2 %v2784_v9, %s4002_s11 }
 0xe16   : > { %2845 = vrot.lane.b32.xlu0 %v2784_v9, %s4003_s12 }
 0xe18   : > { %v2781_v19 = vpop.f32.mrf.mxu3 }
 0xe1d   : > { %2811 = vrot.lane.b32.xlu1 %v2784_v9, %s4007_s16  ;;  %2803 = vrot.lane.b32.xlu2 %v2784_v9, %s4006_s15 }
 0xe1e   : > { %2821 = vrot.lane.b32.xlu0 %v2784_v9, %s4005_s14 }
 0xe25   : > { %2827 = vrot.lane.b32.xlu1 %v2783_v26, %s4002_s11  ;;  %2843 = vrot.lane.b32.xlu2 %v2783_v26, %s4003_s12  ;;  %s3625_s11 = sshll.u32 %s5114_s25, 3 }
 0xe26   : > { %2835 = vrot.lane.b32.xlu0 %v2783_v26, %s4004_s13 }
 0xe2d   : > { %2801 = vrot.lane.b32.xlu1 %v2783_v26, %s4006_s15  ;;  %2819 = vrot.lane.b32.xlu2 %v2783_v26, %s4005_s14  ;;  %s318_s14 = scalar_lea.vmem %s5098_s6, %s3625_s11 }
 0xe2e   : > { %2809 = vrot.lane.b32.xlu0 %v2783_v26, %s4007_s16 }
 0xe35   : > { %2793 = vrot.lane.b32.xlu1 %v2783_v26, %s4009_s18  ;;  %2785 = vrot.lane.b32.xlu2 %v2783_v26, %s4008_s17 }
 0xe36   : > { %2787 = vrot.lane.b32.xlu0 %v2784_v9, %s4008_s17 }
 0xe3d   : > { %2795 = vrot.lane.b32.xlu2 %v2784_v9, %s4009_s18 }
 0xe6f   : > { %v2830_v5 = vpop.permute.xlu2 %2829 }
 0xe77   : > { %v2804_v18 = vpop.permute.xlu2 %2803 }
 0xe7f   : > { %v2844_v17 = vpop.permute.xlu2 %2843 }
 0xe87   : > { %v2838_v27 = vpop.permute.xlu1 %2837  ;;  %v2820_v50 = vpop.permute.xlu2 %2819 }
 0xe88   : > { %v2846_v4 = vpop.permute.xlu0 %2845 }
 0xe89   : > { %v2847_v10 = vsel %vm448_vm3, %v2844_v17, %v2846_v4  ;;  %v2848_v3 = vsel %vm448_vm3, %v2846_v4, %v2844_v17 }
 0xe8a   : > { %v2849_v0 = vmul.f32 %v2847_v10, %v4165_v12  ;;  %v2850_v8 = vmul.f32 %v2848_v3, %v5110_v63  ;;  %v2861_v3 = vld [vmem:[#allocation2 + $0x138] sm:$0xf] }
 0xe8c   : > { %v2859_v11 = vpack.c.bf16 %v4169_v14, %v2849_v0  ;;  %v2860_v45 = vpack.c.bf16 %v4171_v15, %v2850_v8 }
 0xe8e   : > { %v2866_v53 = vand.u32 %v2859_v11, %v4196_v34  ;;  %v2869_v21 = vand.u32 %v2860_v45, %v4196_v34 }
 0xe8f   : > { %v2812_v47 = vpop.permute.xlu1 %2811  ;;  %v2786_v56 = vpop.permute.xlu2 %2785 }
 0xe90   : > { %2874 = vmatpush.bf16.msrb.mxu1 %v2866_v53  ;;  %2887 = vmatpush.bf16.msra.mxu2 %v2869_v21  ;;  %v2822_v13 = vpop.permute.xlu0 %2821 }
 0xe91   : > { %v2823_v48 = vsel %vm400_vm5, %v2820_v50, %v2822_v13  ;;  %v2824_v12 = vsel %vm400_vm5, %v2822_v13, %v2820_v50 }
 0xe92   : > { %v2825_v41 = vmul.f32 %v2823_v48, %v4209_v43  ;;  %v2826_v20 = vmul.f32 %v2824_v12, %v4203_v39 }
 0xe97   : > { %v2828_v54 = vpop.permute.xlu1 %2827  ;;  %v2796_v19 = vpop.permute.xlu2 %2795 }
 0xe98   : > { %v2831_v63 = vsel %vm416_vm2, %v2828_v54, %v2830_v5  ;;  %v2832_v23 = vsel %vm416_vm2, %v2830_v5, %v2828_v54  ;;  %v2836_v46 = vpop.permute.xlu0 %2835 }
 0xe99   : > { %v2833_v33 = vmul.f32 %v2831_v63, %v4173_v16  ;;  %v2834_v44 = vmul.f32 %v2832_v23, %v4178_v22  ;;  %v2839_v57 = vsel %vm432_vm0, %v2836_v46, %v2838_v27  ;;  %v2840_v49 = vsel %vm432_vm0, %v2838_v27, %v2836_v46 }
 0xe9a   : > { %v2841_v24 = vmul.f32 %v2839_v57, %v5111_v40  ;;  %v2842_v35 = vmul.f32 %v2840_v49, %v5112_v58  ;;  %v2817_v16 = vmul.f32 %v2783_v26, %v4207_v42  ;;  %v2818_v22 = vmul.f32 %v2784_v9, %v4201_v38 }
 0xe9b   : > { %vm2902_vm0 = vcmask 72704  }
 0xe9c   : > { %v2857_v36 = vpack.c.bf16 %v2841_v24, %v2833_v33  ;;  %v2858_v62 = vpack.c.bf16 %v2842_v35, %v2834_v44  ;;  %v2855_v43 = vpack.c.bf16 %v2825_v41, %v2817_v16  ;;  %v2856_v29 = vpack.c.bf16 %v2826_v20, %v2818_v22 }
 0xe9e   : > { %2875 = vmatpush.bf16.msrb.mxu1 %v2857_v36  ;;  %2888 = vmatpush.bf16.msra.mxu2 %v2858_v62 }
 0xe9f   : > { %v2802_v52 = vpop.permute.xlu1 %2801 }
 0xea0   : > { %v2805_v37 = vsel %vm359_vm7, %v2802_v52, %v2804_v18  ;;  %v2806_v40 = vsel %vm359_vm7, %v2804_v18, %v2802_v52  ;;  %v2810_v58 = vpop.permute.xlu0 %2809 }
 0xea1   : > { %v2807_v39 = vmul.f32 %v2806_v40, %v4227_v60  ;;  %v2808_v51 = vmul.f32 %v2805_v37, %v4231_v1  ;;  %v2813_v7 = vsel %vm375_vm6, %v2810_v58, %v2812_v47  ;;  %v2814_v38 = vsel %vm375_vm6, %v2812_v47, %v2810_v58 }
 0xea2   : > { %v2815_v42 = vmul.f32 %v2814_v38, %v4229_v61  ;;  %v2816_v25 = vmul.f32 %v2813_v7, %v4233_v2  ;;  %2876 = vmatpush.bf16.msrb.mxu1 %v2855_v43  ;;  %2889 = vmatpush.bf16.msra.mxu2 %v2856_v29 }
 0xea4   : > { %v2853_v55 = vpack.c.bf16 %v2815_v42, %v2807_v39  ;;  %v2854_v9 = vpack.c.bf16 %v2816_v25, %v2808_v51 }
 0xea6   : > { %2877 = vmatpush.bf16.msrb.mxu1 %v2853_v55  ;;  %2890 = vmatpush.bf16.msra.mxu2 %v2854_v9 }
 0xea7   : > { %v2794_v60 = vpop.permute.xlu1 %2793 }
 0xea8   : > { %v2797_v1 = vsel %vm343_vm9, %v2794_v60, %v2796_v19  ;;  %v2798_v59 = vsel %vm343_vm9, %v2796_v19, %v2794_v60  ;;  %v2788_v26 = vpop.permute.xlu0 %2787 }
 0xea9   : > { %v2799_v5 = vmul.f32 %v2798_v59, %v4251_v30  ;;  %v2800_v61 = vmul.f32 %v2797_v1, %v4255_v32  ;;  %v2789_v2 = vsel %vm328_vm8, %v2786_v56, %v2788_v26  ;;  %v2790_v18 = vsel %vm328_vm8, %v2788_v26, %v2786_v56 }
 0xeaa   : > { %v2791_v27 = vmul.f32 %v2790_v18, %v4248_v28  ;;  %v2792_v17 = vmul.f32 %v2789_v2, %v4253_v31  ;;  %v2901_v31 = vld [vmem:[#allocation2 + $0x150] sm:$0x3] }
 0xeac   : > { %v2851_v4 = vpack.c.bf16 %v2799_v5, %v2791_v27  ;;  %v2852_v10 = vpack.c.bf16 %v2800_v61, %v2792_v17 }
 0xeae   : > { %2878 = vmatpush.bf16.msrb.mxu1 %v2851_v4  ;;  %2891 = vmatpush.bf16.msra.mxu2 %v2852_v10 }
 0xeb1   : > { %3618 = vmatmul.msk.bf16.vlgmr.msrb.gmra.mxu1 %vm478_vm10, %v2861_v3  ;;  %3619 = vmatmul.msk.bf16.vlgmr.msra.gmra.mxu2 %vm478_vm10, %v2861_v3 }
 0xf2e   : > { %v2880_v30 = vpop.f32.mrf.mxu1 }
 0xf2f   : > { %v2897_v32 = vmax.f32 %v2880_v30, 0.0 }
 0xf31   : > { %v2899_v0 = vpack.c.bf16 %v4169_v14, %v2897_v32 }
 0xf33   : > { %v2907_v6 = vand.u32 %v2899_v0, %v4196_v34 }
 0xf34   : > { %v2893_v8 = vpop.f32.mrf.mxu2 }
 0xf35   : > { %v2898_v28 = vmax.f32 %v2893_v8, 0.0  ;;  %2919 = vmatpush.bf16.msra.mxu3 %v2907_v6 }
 0xf36   : > { %v2882_v11 = vpop.f32.mrf.mxu1 }
 0xf37   : > { %v2900_v45 = vpack.c.bf16 %v4171_v15, %v2898_v28 }
 0xf38   : > { %3620 = vmatmul.msk.bf16.vlgmr.msra.gmra.mxu3 %vm2902_vm0, %v2901_v31 }
 0xf39   : > { %v2910_v53 = vand.u32 %v2900_v45, %v4196_v34 }
 0xf3b   : > { %2932 = vmatpush.bf16.msra.mxu0 %v2910_v53 }
 0xf3c   : > { %v2895_v21 = vpop.f32.mrf.mxu2 }
 0xf3e   : > { %3621 = vmatmul.msk.bf16.vlgmr.msra.gmra.mxu0 %vm2902_vm0, %v2901_v31 }
 0xfbb   : > { %v2921_v47 = vpop.f32.mrf.mxu3  ;;  %v2934_v13 = vpop.f32.mrf.mxu0 }
 0xfbc   : > { %v2940_v14 = vrot.slane %v2934_v13, 4 }
 0xfbe   : > { %v2941_v50 = vsel %vm482_vm1, %v2921_v47, %v2940_v14 }
 0xfbf   : > { %2943 = vst [vmem:[%s318_s14] sm:$0x77] %v2941_v50 }
 0xfc3   : > { %v2923_v54 = vpop.f32.mrf.mxu3  ;;  %v2936_v48 = vpop.f32.mrf.mxu0 }
 0xfc4 PF: > { %s19_s21 = sadd.s32 1, %s3988_s21  }
 0xfc5   : > { %p16_p7 = scmp.ge.s32.totalorder %s19_s21, 4  }
 0xfc7   :  { %18 = sbr.rel (!%p16_p7) target bundleno = 3 (0x3), region = 106 }
 0xfcc   :  { %2965 = vsyncpa [#allocation3], 1 }
 0xfcd   :  { %2967 = vsyncpa [#allocation3 + $0x1], 1 }
 0xfce   :  { %2968 = vsyncpa [#allocation5], 1 }
 0xfcf   :  { %2969 = vsyncpa [#allocation8], 1 }

</bundles_post_ra>
